<compile_context>
chip_gen: v5e
topology: v5e:2x2
jax: 0.10.0
libtpu: 0.0.40
codegen_flags: <defaults>
</compile_context>

<pallas_src>
import functools
import math

import jax
import jax.numpy as jnp
from jax import lax
from jax.experimental import pallas as pl
from jax.experimental.pallas import tpu as pltpu


_PAR = pltpu.CompilerParams(dimension_semantics=("parallel",))


# --------------------------------------------------------------------------
# small traced helper used inside kernels: per-(sample) group norm on (C, HW)
# --------------------------------------------------------------------------
def _group_norm_2d(x, num_groups, eps):
    C, HW = x.shape
    Cg = C // num_groups
    xg = x.reshape(num_groups, Cg, HW)
    mean = jnp.mean(jnp.mean(xg, axis=2, keepdims=True), axis=1, keepdims=True)
    xc = xg - mean
    var = jnp.mean(jnp.mean(xc * xc, axis=2, keepdims=True), axis=1, keepdims=True)
    return (xc * lax.rsqrt(var + eps)).reshape(C, HW)


# --------------------------------------------------------------------------
# Kernel 1: GroupNorm0 + SiLU on x, plus skip 1x1 conv on the original x
# --------------------------------------------------------------------------
def gn0_silu_skip_kernel(x_ref, g_ref, b_ref, ws_ref, bs_ref, h_ref, s_ref,
                         *, num_groups, eps):
    x = x_ref[0]                                   # (Cin, HW) f32
    y = _group_norm_2d(x, num_groups, eps)
    y = y * g_ref[...] + b_ref[...]                # (Cin, 1) broadcast over HW
    y = y * jax.nn.sigmoid(y)                      # SiLU
    h_ref[0] = y.astype(h_ref.dtype)               # bf16 activations for conv0
    s_ref[0] = (jnp.dot(ws_ref[...], x.astype(jnp.bfloat16),
                        preferred_element_type=jnp.float32) + bs_ref[...])


# --------------------------------------------------------------------------
# Kernel 2: conv0 (im2col matmul) + adaptive GroupNorm1 + SiLU
# --------------------------------------------------------------------------
def conv0_gn1_silu_kernel(p_ref, w_ref, b_ref, eg_ref, eb_ref, o_ref,
                          *, num_groups, eps):
    h = (jnp.dot(w_ref[...], p_ref[0], preferred_element_type=jnp.float32)
         + b_ref[...])                             # (Cout, HW) f32
    y = _group_norm_2d(h, num_groups, eps)
    y = y * eg_ref[0] + eb_ref[0]                  # fused gamma*(scale+1), beta*(scale+1)+shift
    y = y * jax.nn.sigmoid(y)
    o_ref[0] = y.astype(o_ref.dtype)               # bf16 activations for conv1


# --------------------------------------------------------------------------
# Kernel 3: conv1 (im2col matmul) + skip add + skip_scale + GroupNorm2 + qkv
# --------------------------------------------------------------------------
def conv1_skip_gn2_qkv_kernel(p_ref, w_ref, b_ref, skip_ref, g_ref, bg_ref,
                              wq_ref, bq_ref, h2_ref, qkv_ref,
                              *, num_groups, eps, skip_scale):
    h = (jnp.dot(w_ref[...], p_ref[0], preferred_element_type=jnp.float32)
         + b_ref[...])
    h = (h + skip_ref[0]) * skip_scale             # residual with skip branch
    h2_ref[0] = h
    y = _group_norm_2d(h, num_groups, eps)
    y = y * g_ref[...] + bg_ref[...]               # norm2 (no SiLU)
    qkv_ref[0] = (jnp.dot(wq_ref[...], y.astype(jnp.bfloat16),
                          preferred_element_type=jnp.float32) + bq_ref[...])


# --------------------------------------------------------------------------
# Kernel 4: per-head attention + proj 1x1 + residual + skip_scale
# (1/sqrt(Ch) is pre-folded into the k rows of the qkv weight/bias)
# --------------------------------------------------------------------------
def attn_proj_kernel(qkv_ref, wp_ref, bp_ref, h_ref, o_ref,
                     *, num_heads, head_ch, skip_scale):
    cout = num_heads * head_ch
    qkv = qkv_ref[0]                               # (3*Cout, HW) f32
    hw = qkv.shape[-1]
    ones_row = jnp.ones((1, hw), jnp.bfloat16)
    # TODO(synk): scores are materialized per head (HW x HW); flash-style key
    # tiling would be needed at large HW to fit v7x's smaller VMEM.
    outs = []
    for hd in range(num_heads):
        q = qkv[hd * head_ch:(hd + 1) * head_ch, :].astype(jnp.bfloat16)
        k = qkv[cout + hd * head_ch:cout + (hd + 1) * head_ch, :].astype(jnp.bfloat16)
        v = qkv[2 * cout + hd * head_ch:2 * cout + (hd + 1) * head_ch, :].astype(jnp.bfloat16)
        # s[qpos, kpos] = sum_c q[c, qpos] * k_scaled[c, kpos]
        s = lax.dot_general(q, k, (((0,), (0,)), ((), ())),
                            preferred_element_type=jnp.float32)      # (HW, HW)
        m = jnp.max(s, axis=-1, keepdims=True)
        p = jnp.exp(s - m).astype(jnp.bfloat16)
        # a_unnorm[c, qpos] = sum_k p[qpos, k] * v[c, k]
        a = lax.dot_general(v, p, (((1,), (1,)), ((), ())),
                            preferred_element_type=jnp.float32)      # (Ch, HW)
        # row-sum of p in lane-dense (1, HW) layout via a ones-row matmul
        l = lax.dot_general(ones_row, p, (((1,), (1,)), ((), ())),
                            preferred_element_type=jnp.float32)      # (1, HW)
        outs.append(a * pl.reciprocal(l, approx=True))
    a_full = jnp.concatenate(outs, axis=0)                           # (Cout, HW)
    out = (jnp.dot(wp_ref[...], a_full.astype(jnp.bfloat16),
                   preferred_element_type=jnp.float32) + bp_ref[...])
    o_ref[0] = (out + h_ref[0]) * skip_scale


# --------------------------------------------------------------------------
# tiny affine (Linear) kernel: params = emb @ W^T + b
# --------------------------------------------------------------------------
def affine_kernel(e_ref, w_ref, b_ref, o_ref):
    o_ref[...] = (jnp.dot(e_ref[...], w_ref[...],
                          preferred_element_type=jnp.float32) + b_ref[...])


# --------------------------------------------------------------------------
# plain-JAX glue: transpose-free im2col (channel-major patches)
# --------------------------------------------------------------------------
def im2col_3x3_cm(x_nchw):
    # x: (N, C, H, W) -> (N, 9*C, H*W), patch row index = (dy*3 + dx)*C + c
    N, C, H, W = x_nchw.shape
    xp = jnp.pad(x_nchw, ((0, 0), (0, 0), (1, 1), (1, 1)))
    views = [xp[:, :, dy:dy + H, dx:dx + W] for dy in range(3) for dx in range(3)]
    return jnp.concatenate(views, axis=1).reshape(N, 9 * C, H * W)


def _conv3x3_weight_cm(w):
    # (Cout, Cin, 3, 3) -> (Cout, 9*Cin), column index = (dy*3 + dx)*Cin + ci
    Cout, Cin = w.shape[0], w.shape[1]
    return w.transpose(0, 2, 3, 1).reshape(Cout, 9 * Cin)


# --------------------------------------------------------------------------
# UNetBlock forward
# --------------------------------------------------------------------------
def unet_block_forward(x, emb, p, *, num_heads, skip_scale=1.0, eps=1e-5):
    N, Cin, H, W = x.shape
    Cout = p["conv0_w"].shape[0]
    HW = H * W
    Ch = Cout // num_heads
    g_in = min(16, Cin // 4)
    g_out = min(16, Cout // 4)
    bf16 = jnp.bfloat16

    # ---- parameter prep (tiny, channels-major / bf16 / reordered) ----------
    w0 = _conv3x3_weight_cm(p["conv0_w"]).astype(bf16)            # (Cout, 9Cin)
    b0 = p["conv0_b"].reshape(Cout, 1)
    w1 = _conv3x3_weight_cm(p["conv1_w"]).astype(bf16)            # (Cout, 9Cout)
    b1 = p["conv1_b"].reshape(Cout, 1)
    wskip = p["skip_w"].reshape(Cout, Cin).astype(bf16)
    bskip = p["skip_b"].reshape(Cout, 1)
    wproj = p["proj_w"].reshape(Cout, Cout).astype(bf16)
    bproj = p["proj_b"].reshape(Cout, 1)
    g0 = p["norm0_g"].reshape(Cin, 1)
    b0n = p["norm0_b"].reshape(Cin, 1)
    g2 = p["norm2_g"].reshape(Cout, 1)
    b2n = p["norm2_b"].reshape(Cout, 1)

    # qkv weight: reorder rows so the output channel layout is
    # (which_qkv, head, ch) -> contiguous q/k/v slices per head; fold 1/sqrt(Ch)
    # into the k rows (weight + bias).
    perm = []
    for which in range(3):
        for hd in range(num_heads):
            for c in range(Ch):
                perm.append(hd * Ch * 3 + c * 3 + which)
    perm = jnp.array(perm, dtype=jnp.int32)
    att_scale = 1.0 / math.sqrt(Ch)
    row_scale = jnp.concatenate([jnp.ones((Cout,), jnp.float32),
                                 jnp.full((Cout,), att_scale, jnp.float32),
                                 jnp.ones((Cout,), jnp.float32)])
    wqkv = (p["qkv_w"].reshape(3 * Cout, Cout)[perm] * row_scale[:, None]).astype(bf16)
    bqkv = (p["qkv_b"][perm] * row_scale).reshape(3 * Cout, 1)

    x_f = x.reshape(N, Cin, HW)

    # ---- stage 1: GN0 + SiLU, and skip 1x1 conv on the original x ----------
    h0, skip_out = pl.pallas_call(
        functools.partial(gn0_silu_skip_kernel, num_groups=g_in, eps=eps),
        out_shape=(jax.ShapeDtypeStruct((N, Cin, HW), bf16),
                   jax.ShapeDtypeStruct((N, Cout, HW), jnp.float32)),
        grid=(N,),
        in_specs=[
            pl.BlockSpec((1, Cin, HW), lambda n: (n, 0, 0)),
            pl.BlockSpec((Cin, 1), lambda n: (0, 0)),
            pl.BlockSpec((Cin, 1), lambda n: (0, 0)),
            pl.BlockSpec((Cout, Cin), lambda n: (0, 0)),
            pl.BlockSpec((Cout, 1), lambda n: (0, 0)),
        ],
        out_specs=[
            pl.BlockSpec((1, Cin, HW), lambda n: (n, 0, 0)),
            pl.BlockSpec((1, Cout, HW), lambda n: (n, 0, 0)),
        ],
        compiler_params=_PAR,
    )(x_f, g0, b0n, wskip, bskip)

    # ---- affine(emb) -> fused adaptive scale/shift for norm1 ---------------
    params = pl.pallas_call(
        affine_kernel,
        out_shape=jax.ShapeDtypeStruct((N, 2 * Cout), jnp.float32),
    )(emb, p["affine_w"].T, p["affine_b"].reshape(1, 2 * Cout))
    scale, shift = params[:, :Cout], params[:, Cout:]
    eff_g1 = (p["norm1_g"][None, :] * (scale + 1.0))[:, :, None]          # (N, Cout, 1)
    eff_b1 = (p["norm1_b"][None, :] * (scale + 1.0) + shift)[:, :, None]  # (N, Cout, 1)

    # ---- stage 2: conv0 + adaptive GN1 + SiLU -------------------------------
    patches0 = im2col_3x3_cm(h0.reshape(N, Cin, H, W))        # (N, 9Cin, HW) bf16
    h1 = pl.pallas_call(
        functools.partial(conv0_gn1_silu_kernel, num_groups=g_out, eps=eps),
        out_shape=jax.ShapeDtypeStruct((N, Cout, HW), bf16),
        grid=(N,),
        in_specs=[
            pl.BlockSpec((1, 9 * Cin, HW), lambda n: (n, 0, 0)),
            pl.BlockSpec((Cout, 9 * Cin), lambda n: (0, 0)),
            pl.BlockSpec((Cout, 1), lambda n: (0, 0)),
            pl.BlockSpec((1, Cout, 1), lambda n: (n, 0, 0)),
            pl.BlockSpec((1, Cout, 1), lambda n: (n, 0, 0)),
        ],
        out_specs=pl.BlockSpec((1, Cout, HW), lambda n: (n, 0, 0)),
        compiler_params=_PAR,
    )(patches0, w0, b0, eff_g1, eff_b1)

    # ---- stage 3: conv1 + skip add + skip_scale + GN2 + qkv -----------------
    # TODO(synk): dropout is identity here (p=0 / eval mode), so it is omitted.
    patches1 = im2col_3x3_cm(h1.reshape(N, Cout, H, W))       # (N, 9Cout, HW) bf16
    h2, qkv = pl.pallas_call(
        functools.partial(conv1_skip_gn2_qkv_kernel, num_groups=g_out, eps=eps,
                          skip_scale=skip_scale),
        out_shape=(jax.ShapeDtypeStruct((N, Cout, HW), jnp.float32),
                   jax.ShapeDtypeStruct((N, 3 * Cout, HW), jnp.float32)),
        grid=(N,),
        in_specs=[
            pl.BlockSpec((1, 9 * Cout, HW), lambda n: (n, 0, 0)),
            pl.BlockSpec((Cout, 9 * Cout), lambda n: (0, 0)),
            pl.BlockSpec((Cout, 1), lambda n: (0, 0)),
            pl.BlockSpec((1, Cout, HW), lambda n: (n, 0, 0)),
            pl.BlockSpec((Cout, 1), lambda n: (0, 0)),
            pl.BlockSpec((Cout, 1), lambda n: (0, 0)),
            pl.BlockSpec((3 * Cout, Cout), lambda n: (0, 0)),
            pl.BlockSpec((3 * Cout, 1), lambda n: (0, 0)),
        ],
        out_specs=[
            pl.BlockSpec((1, Cout, HW), lambda n: (n, 0, 0)),
            pl.BlockSpec((1, 3 * Cout, HW), lambda n: (n, 0, 0)),
        ],
        compiler_params=_PAR,
    )(patches1, w1, b1, skip_out, g2, b2n, wqkv, bqkv)

    # ---- stage 4: attention + proj + residual + skip_scale ------------------
    out = pl.pallas_call(
        functools.partial(attn_proj_kernel, num_heads=num_heads, head_ch=Ch,
                          skip_scale=skip_scale),
        out_shape=jax.ShapeDtypeStruct((N, Cout, HW), jnp.float32),
        grid=(N,),
        in_specs=[
            pl.BlockSpec((1, 3 * Cout, HW), lambda n: (n, 0, 0)),
            pl.BlockSpec((Cout, Cout), lambda n: (0, 0)),
            pl.BlockSpec((Cout, 1), lambda n: (0, 0)),
            pl.BlockSpec((1, Cout, HW), lambda n: (n, 0, 0)),
        ],
        out_specs=pl.BlockSpec((1, Cout, HW), lambda n: (n, 0, 0)),
        compiler_params=_PAR,
    )(qkv, wproj, bproj, h2)

    return out.reshape(N, Cout, H, W)


# --------------------------------------------------------------------------
# Deterministic synthetic parameters + driver
# --------------------------------------------------------------------------
def make_params(key, in_ch, out_ch, emb_ch):
    ks = jax.random.split(key, 8)

    def kn(k, shape, fan_in):
        return (jax.random.normal(k, shape, jnp.float32)
                * jnp.float32(math.sqrt(1.0 / fan_in)))

    return {
        "norm0_g": jnp.ones((in_ch,), jnp.float32),
        "norm0_b": jnp.zeros((in_ch,), jnp.float32),
        "conv0_w": kn(ks[0], (out_ch, in_ch, 3, 3), in_ch * 9),
        "conv0_b": jnp.zeros((out_ch,), jnp.float32),
        "affine_w": kn(ks[1], (2 * out_ch, emb_ch), emb_ch),
        "affine_b": jnp.zeros((2 * out_ch,), jnp.float32),
        "norm1_g": jnp.ones((out_ch,), jnp.float32),
        "norm1_b": jnp.zeros((out_ch,), jnp.float32),
        # conv1 / proj are zero-init in the reference (init_zero); nonzero
        # synthetic weights are used so the whole path is exercised.
        "conv1_w": kn(ks[2], (out_ch, out_ch, 3, 3), out_ch * 9),
        "conv1_b": jnp.zeros((out_ch,), jnp.float32),
        "skip_w": kn(ks[3], (out_ch, in_ch, 1, 1), in_ch),
        "skip_b": jnp.zeros((out_ch,), jnp.float32),
        "norm2_g": jnp.ones((out_ch,), jnp.float32),
        "norm2_b": jnp.zeros((out_ch,), jnp.float32),
        "qkv_w": kn(ks[4], (out_ch * 3, out_ch, 1, 1), out_ch),
        "qkv_b": jnp.zeros((out_ch * 3,), jnp.float32),
        "proj_w": kn(ks[5], (out_ch, out_ch, 1, 1), out_ch),
        "proj_b": jnp.zeros((out_ch,), jnp.float32),
    }


if __name__ == "__main__":
    N, IN_CH, OUT_CH, EMB_CH, H, W = 2, 8, 16, 32, 16, 16
    NUM_HEADS = 2

    key = jax.random.PRNGKey(0)
    kx, ke, kp = jax.random.split(key, 3)
    x = jax.random.normal(kx, (N, IN_CH, H, W), jnp.float32)
    emb = jax.random.normal(ke, (N, EMB_CH), jnp.float32)
    params = make_params(kp, IN_CH, OUT_CH, EMB_CH)

    fwd = jax.jit(functools.partial(unet_block_forward,
                                    num_heads=NUM_HEADS, skip_scale=1.0))
    out = fwd(x, emb, params)
    out = jax.block_until_ready(out)
    assert out.shape == (N, OUT_CH, H, W)
    assert bool(jnp.all(jnp.isfinite(out)))
    print("KERNEL_OK")
</pallas_src>

<mosaic_0001>
module attributes {stable_mosaic.version = 11 : i64} {
  func.func @gn0_silu_skip_kernel(%arg0: i32, %arg1: memref<1x8x256xf32, #tpu.memory_space<vmem>>, %arg2: memref<8x1xf32, #tpu.memory_space<vmem>>, %arg3: memref<8x1xf32, #tpu.memory_space<vmem>>, %arg4: memref<16x8xbf16, #tpu.memory_space<vmem>>, %arg5: memref<16x1xf32, #tpu.memory_space<vmem>>, %arg6: memref<1x8x256xbf16, #tpu.memory_space<vmem>>, %arg7: memref<1x16x256xf32, #tpu.memory_space<vmem>>) attributes {dimension_semantics = [#tpu.dimension_semantics<parallel>], iteration_bounds = array<i64: 2>, scalar_prefetch = 0 : i64, scratch_operands = 0 : i64, tpu.core_type = #tpu.core_type<tc>, window_params = [{transform_indices = @transform_0, window_bounds = array<i64: 1, 8, 256>}, {pipeline_mode = #tpu.pipeline_mode<synchronous>, transform_indices = @transform_1, window_bounds = array<i64: 8, 1>}, {pipeline_mode = #tpu.pipeline_mode<synchronous>, transform_indices = @transform_2, window_bounds = array<i64: 8, 1>}, {pipeline_mode = #tpu.pipeline_mode<synchronous>, transform_indices = @transform_3, window_bounds = array<i64: 16, 8>}, {pipeline_mode = #tpu.pipeline_mode<synchronous>, transform_indices = @transform_4, window_bounds = array<i64: 16, 1>}, {transform_indices = @transform_5, window_bounds = array<i64: 1, 8, 256>}, {transform_indices = @transform_6, window_bounds = array<i64: 1, 16, 256>}]} {
    %c0 = arith.constant 0 : index
    %c0_0 = arith.constant 0 : index
    %c0_1 = arith.constant 0 : index
    %0 = vector.load %arg1[%c0, %c0_0, %c0_1] : memref<1x8x256xf32, #tpu.memory_space<vmem>>, vector<1x8x256xf32>
    %1 = vector.shape_cast %0 : vector<1x8x256xf32> to vector<8x256xf32>
    %2 = vector.shape_cast %1 : vector<8x256xf32> to vector<2x4x256xf32>
    %cst = arith.constant dense<0.000000e+00> : vector<2x4xf32>
    %3 = vector.multi_reduction <add>, %2, %cst [2] : vector<2x4x256xf32> to vector<2x4xf32>
    %4 = vector.shape_cast %3 : vector<2x4xf32> to vector<2x4x1xf32>
    %cst_2 = arith.constant 2.560000e+02 : f32
    %5 = vector.broadcast %cst_2 : f32 to vector<2x4x1xf32>
    %6 = arith.divf %4, %5 : vector<2x4x1xf32>
    %cst_3 = arith.constant dense<0.000000e+00> : vector<2x1xf32>
    %7 = vector.multi_reduction <add>, %6, %cst_3 [1] : vector<2x4x1xf32> to vector<2x1xf32>
    %8 = vector.shape_cast %7 : vector<2x1xf32> to vector<2x1x1xf32>
    %cst_4 = arith.constant 4.000000e+00 : f32
    %9 = vector.broadcast %cst_4 : f32 to vector<2x1x1xf32>
    %10 = arith.divf %8, %9 : vector<2x1x1xf32>
    %11 = vector.broadcast %10 : vector<2x1x1xf32> to vector<2x4x256xf32>
    %12 = arith.subf %2, %11 : vector<2x4x256xf32>
    %13 = arith.mulf %12, %12 : vector<2x4x256xf32>
    %cst_5 = arith.constant dense<0.000000e+00> : vector<2x4xf32>
    %14 = vector.multi_reduction <add>, %13, %cst_5 [2] : vector<2x4x256xf32> to vector<2x4xf32>
    %15 = vector.shape_cast %14 : vector<2x4xf32> to vector<2x4x1xf32>
    %cst_6 = arith.constant 2.560000e+02 : f32
    %16 = vector.broadcast %cst_6 : f32 to vector<2x4x1xf32>
    %17 = arith.divf %15, %16 : vector<2x4x1xf32>
    %cst_7 = arith.constant dense<0.000000e+00> : vector<2x1xf32>
    %18 = vector.multi_reduction <add>, %17, %cst_7 [1] : vector<2x4x1xf32> to vector<2x1xf32>
    %19 = vector.shape_cast %18 : vector<2x1xf32> to vector<2x1x1xf32>
    %cst_8 = arith.constant 4.000000e+00 : f32
    %20 = vector.broadcast %cst_8 : f32 to vector<2x1x1xf32>
    %21 = arith.divf %19, %20 : vector<2x1x1xf32>
    %cst_9 = arith.constant 9.99999974E-6 : f32
    %22 = vector.broadcast %cst_9 : f32 to vector<2x1x1xf32>
    %23 = arith.addf %21, %22 : vector<2x1x1xf32>
    %24 = math.rsqrt %23 : vector<2x1x1xf32>
    %25 = vector.broadcast %24 : vector<2x1x1xf32> to vector<2x4x256xf32>
    %26 = arith.mulf %12, %25 : vector<2x4x256xf32>
    %27 = vector.shape_cast %26 : vector<2x4x256xf32> to vector<8x256xf32>
    %c0_10 = arith.constant 0 : index
    %c0_11 = arith.constant 0 : index
    %28 = vector.load %arg2[%c0_10, %c0_11] : memref<8x1xf32, #tpu.memory_space<vmem>>, vector<8x1xf32>
    %29 = vector.broadcast %28 : vector<8x1xf32> to vector<8x256xf32>
    %30 = arith.mulf %27, %29 : vector<8x256xf32>
    %c0_12 = arith.constant 0 : index
    %c0_13 = arith.constant 0 : index
    %31 = vector.load %arg3[%c0_12, %c0_13] : memref<8x1xf32, #tpu.memory_space<vmem>>, vector<8x1xf32>
    %32 = vector.broadcast %31 : vector<8x1xf32> to vector<8x256xf32>
    %33 = arith.addf %30, %32 : vector<8x256xf32>
    %34 = arith.negf %33 : vector<8x256xf32>
    %35 = math.exp %34 : vector<8x256xf32>
    %cst_14 = arith.constant 1.000000e+00 : f32
    %36 = vector.broadcast %cst_14 : f32 to vector<8x256xf32>
    %37 = arith.addf %36, %35 : vector<8x256xf32>
    %38 = arith.divf %36, %37 : vector<8x256xf32>
    %39 = arith.mulf %33, %38 : vector<8x256xf32>
    %40 = arith.truncf %39 : vector<8x256xf32> to vector<8x256xbf16>
    %c0_15 = arith.constant 0 : index
    %c0_16 = arith.constant 0 : index
    %c0_17 = arith.constant 0 : index
    %41 = vector.load %arg6[%c0_15, %c0_16, %c0_17] : memref<1x8x256xbf16, #tpu.memory_space<vmem>>, vector<1x8x256xbf16>
    %42 = vector.shape_cast %41 : vector<1x8x256xbf16> to vector<8x256xbf16>
    %43 = vector.shape_cast %40 : vector<8x256xbf16> to vector<1x8x256xbf16>
    tpu.vector_store %arg6[%c0_15, %c0_16, %c0_17], %43 {strides = array<i32>} : memref<1x8x256xbf16, #tpu.memory_space<vmem>>, vector<1x8x256xbf16>,
    %c0_18 = arith.constant 0 : index
    %c0_19 = arith.constant 0 : index
    %44 = vector.load %arg4[%c0_18, %c0_19] : memref<16x8xbf16, #tpu.memory_space<vmem>>, vector<16x8xbf16>
    %45 = arith.truncf %1 : vector<8x256xf32> to vector<8x256xbf16>
    %cst_20 = arith.constant dense<0.000000e+00> : vector<16x256xf32>
    %46 = tpu.matmul %44, %45, %cst_20 {dimension_numbers = #tpu.dot_dimension_numbers<[1], [0], [0], [1], [0, 0, 1, 1], [], []>} : vector<16x8xbf16>, vector<8x256xbf16>, vector<16x256xf32> -> vector<16x256xf32>
    %c0_21 = arith.constant 0 : index
    %c0_22 = arith.constant 0 : index
    %47 = vector.load %arg5[%c0_21, %c0_22] : memref<16x1xf32, #tpu.memory_space<vmem>>, vector<16x1xf32>
    %48 = vector.broadcast %47 : vector<16x1xf32> to vector<16x256xf32>
    %49 = arith.addf %46, %48 : vector<16x256xf32>
    %c0_23 = arith.constant 0 : index
    %c0_24 = arith.constant 0 : index
    %c0_25 = arith.constant 0 : index
    %50 = vector.load %arg7[%c0_23, %c0_24, %c0_25] : memref<1x16x256xf32, #tpu.memory_space<vmem>>, vector<1x16x256xf32>
    %51 = vector.shape_cast %50 : vector<1x16x256xf32> to vector<16x256xf32>
    %52 = vector.shape_cast %49 : vector<16x256xf32> to vector<1x16x256xf32>
    tpu.vector_store %arg7[%c0_23, %c0_24, %c0_25], %52 {strides = array<i32>} : memref<1x16x256xf32, #tpu.memory_space<vmem>>, vector<1x16x256xf32>,
    return
  }
  func.func @transform_0(%arg0: i32) -> (i32, i32, i32) {
    %c0_i32 = arith.constant 0 : i32
    %c0_i32_0 = arith.constant 0 : i32
    %c0_i32_1 = arith.constant 0 : i32
    return %arg0, %c0_i32, %c0_i32_0 : i32, i32, i32
  }
  func.func @transform_1(%arg0: i32) -> (i32, i32) {
    %c0_i32 = arith.constant 0 : i32
    %c0_i32_0 = arith.constant 0 : i32
    %c0_i32_1 = arith.constant 0 : i32
    return %c0_i32, %c0_i32_0 : i32, i32
  }
  func.func @transform_2(%arg0: i32) -> (i32, i32) {
    %c0_i32 = arith.constant 0 : i32
    %c0_i32_0 = arith.constant 0 : i32
    %c0_i32_1 = arith.constant 0 : i32
    return %c0_i32, %c0_i32_0 : i32, i32
  }
  func.func @transform_3(%arg0: i32) -> (i32, i32) {
    %c0_i32 = arith.constant 0 : i32
    %c0_i32_0 = arith.constant 0 : i32
    %c0_i32_1 = arith.constant 0 : i32
    return %c0_i32, %c0_i32_0 : i32, i32
  }
  func.func @transform_4(%arg0: i32) -> (i32, i32) {
    %c0_i32 = arith.constant 0 : i32
    %c0_i32_0 = arith.constant 0 : i32
    %c0_i32_1 = arith.constant 0 : i32
    return %c0_i32, %c0_i32_0 : i32, i32
  }
  func.func @transform_5(%arg0: i32) -> (i32, i32, i32) {
    %c0_i32 = arith.constant 0 : i32
    %c0_i32_0 = arith.constant 0 : i32
    %c0_i32_1 = arith.constant 0 : i32
    return %arg0, %c0_i32, %c0_i32_0 : i32, i32, i32
  }
  func.func @transform_6(%arg0: i32) -> (i32, i32, i32) {
    %c0_i32 = arith.constant 0 : i32
    %c0_i32_0 = arith.constant 0 : i32
    %c0_i32_1 = arith.constant 0 : i32
    return %arg0, %c0_i32, %c0_i32_0 : i32, i32, i32
  }
}

module attributes {stable_mosaic.version = 11 : i64} {
  func.func @affine_kernel(%arg0: memref<2x32xf32, #tpu.memory_space<vmem>>, %arg1: memref<32x32xf32, #tpu.memory_space<vmem>>, %arg2: memref<1x32xf32, #tpu.memory_space<vmem>>, %arg3: memref<2x32xf32, #tpu.memory_space<vmem>>) attributes {dimension_semantics = [], scalar_prefetch = 0 : i64, scratch_operands = 0 : i64, tpu.core_type = #tpu.core_type<tc>} {
    %c0 = arith.constant 0 : index
    %c0_0 = arith.constant 0 : index
    %0 = vector.load %arg0[%c0, %c0_0] : memref<2x32xf32, #tpu.memory_space<vmem>>, vector<2x32xf32>
    %c0_1 = arith.constant 0 : index
    %c0_2 = arith.constant 0 : index
    %1 = vector.load %arg1[%c0_1, %c0_2] : memref<32x32xf32, #tpu.memory_space<vmem>>, vector<32x32xf32>
    %cst = arith.constant dense<0.000000e+00> : vector<2x32xf32>
    %2 = tpu.matmul %0, %1, %cst {dimension_numbers = #tpu.dot_dimension_numbers<[1], [0], [0], [1], [0, 0, 1, 1], [], []>} : vector<2x32xf32>, vector<32x32xf32>, vector<2x32xf32> -> vector<2x32xf32>
    %c0_3 = arith.constant 0 : index
    %c0_4 = arith.constant 0 : index
    %3 = vector.load %arg2[%c0_3, %c0_4] : memref<1x32xf32, #tpu.memory_space<vmem>>, vector<1x32xf32>
    %4 = vector.broadcast %3 : vector<1x32xf32> to vector<2x32xf32>
    %5 = arith.addf %2, %4 : vector<2x32xf32>
    %c0_5 = arith.constant 0 : index
    %c0_6 = arith.constant 0 : index
    %6 = vector.load %arg3[%c0_5, %c0_6] : memref<2x32xf32, #tpu.memory_space<vmem>>, vector<2x32xf32>
    tpu.vector_store %arg3[%c0_5, %c0_6], %5 {strides = array<i32>} : memref<2x32xf32, #tpu.memory_space<vmem>>, vector<2x32xf32>,
    return
  }
}

module attributes {stable_mosaic.version = 11 : i64} {
  func.func @conv0_gn1_silu_kernel(%arg0: i32, %arg1: memref<1x72x256xbf16, #tpu.memory_space<vmem>>, %arg2: memref<16x72xbf16, #tpu.memory_space<vmem>>, %arg3: memref<16x1xf32, #tpu.memory_space<vmem>>, %arg4: memref<1x16x1xf32, #tpu.memory_space<vmem>>, %arg5: memref<1x16x1xf32, #tpu.memory_space<vmem>>, %arg6: memref<1x16x256xbf16, #tpu.memory_space<vmem>>) attributes {dimension_semantics = [#tpu.dimension_semantics<parallel>], iteration_bounds = array<i64: 2>, scalar_prefetch = 0 : i64, scratch_operands = 0 : i64, tpu.core_type = #tpu.core_type<tc>, window_params = [{transform_indices = @transform_0, window_bounds = array<i64: 1, 72, 256>}, {pipeline_mode = #tpu.pipeline_mode<synchronous>, transform_indices = @transform_1, window_bounds = array<i64: 16, 72>}, {pipeline_mode = #tpu.pipeline_mode<synchronous>, transform_indices = @transform_2, window_bounds = array<i64: 16, 1>}, {transform_indices = @transform_3, window_bounds = array<i64: 1, 16, 1>}, {transform_indices = @transform_4, window_bounds = array<i64: 1, 16, 1>}, {transform_indices = @transform_5, window_bounds = array<i64: 1, 16, 256>}]} {
    %c0 = arith.constant 0 : index
    %c0_0 = arith.constant 0 : index
    %0 = vector.load %arg2[%c0, %c0_0] : memref<16x72xbf16, #tpu.memory_space<vmem>>, vector<16x72xbf16>
    %c0_1 = arith.constant 0 : index
    %c0_2 = arith.constant 0 : index
    %c0_3 = arith.constant 0 : index
    %1 = vector.load %arg1[%c0_1, %c0_2, %c0_3] : memref<1x72x256xbf16, #tpu.memory_space<vmem>>, vector<1x72x256xbf16>
    %2 = vector.shape_cast %1 : vector<1x72x256xbf16> to vector<72x256xbf16>
    %cst = arith.constant dense<0.000000e+00> : vector<16x256xf32>
    %3 = tpu.matmul %0, %2, %cst {dimension_numbers = #tpu.dot_dimension_numbers<[1], [0], [0], [1], [0, 0, 1, 1], [], []>} : vector<16x72xbf16>, vector<72x256xbf16>, vector<16x256xf32> -> vector<16x256xf32>
    %c0_4 = arith.constant 0 : index
    %c0_5 = arith.constant 0 : index
    %4 = vector.load %arg3[%c0_4, %c0_5] : memref<16x1xf32, #tpu.memory_space<vmem>>, vector<16x1xf32>
    %5 = vector.broadcast %4 : vector<16x1xf32> to vector<16x256xf32>
    %6 = arith.addf %3, %5 : vector<16x256xf32>
    %7 = vector.shape_cast %6 : vector<16x256xf32> to vector<4x4x256xf32>
    %cst_6 = arith.constant dense<0.000000e+00> : vector<4x4xf32>
    %8 = vector.multi_reduction <add>, %7, %cst_6 [2] : vector<4x4x256xf32> to vector<4x4xf32>
    %9 = vector.shape_cast %8 : vector<4x4xf32> to vector<4x4x1xf32>
    %cst_7 = arith.constant 2.560000e+02 : f32
    %10 = vector.broadcast %cst_7 : f32 to vector<4x4x1xf32>
    %11 = arith.divf %9, %10 : vector<4x4x1xf32>
    %cst_8 = arith.constant dense<0.000000e+00> : vector<4x1xf32>
    %12 = vector.multi_reduction <add>, %11, %cst_8 [1] : vector<4x4x1xf32> to vector<4x1xf32>
    %13 = vector.shape_cast %12 : vector<4x1xf32> to vector<4x1x1xf32>
    %cst_9 = arith.constant 4.000000e+00 : f32
    %14 = vector.broadcast %cst_9 : f32 to vector<4x1x1xf32>
    %15 = arith.divf %13, %14 : vector<4x1x1xf32>
    %16 = vector.broadcast %15 : vector<4x1x1xf32> to vector<4x4x256xf32>
    %17 = arith.subf %7, %16 : vector<4x4x256xf32>
    %18 = arith.mulf %17, %17 : vector<4x4x256xf32>
    %cst_10 = arith.constant dense<0.000000e+00> : vector<4x4xf32>
    %19 = vector.multi_reduction <add>, %18, %cst_10 [2] : vector<4x4x256xf32> to vector<4x4xf32>
    %20 = vector.shape_cast %19 : vector<4x4xf32> to vector<4x4x1xf32>
    %cst_11 = arith.constant 2.560000e+02 : f32
    %21 = vector.broadcast %cst_11 : f32 to vector<4x4x1xf32>
    %22 = arith.divf %20, %21 : vector<4x4x1xf32>
    %cst_12 = arith.constant dense<0.000000e+00> : vector<4x1xf32>
    %23 = vector.multi_reduction <add>, %22, %cst_12 [1] : vector<4x4x1xf32> to vector<4x1xf32>
    %24 = vector.shape_cast %23 : vector<4x1xf32> to vector<4x1x1xf32>
    %cst_13 = arith.constant 4.000000e+00 : f32
    %25 = vector.broadcast %cst_13 : f32 to vector<4x1x1xf32>
    %26 = arith.divf %24, %25 : vector<4x1x1xf32>
    %cst_14 = arith.constant 9.99999974E-6 : f32
    %27 = vector.broadcast %cst_14 : f32 to vector<4x1x1xf32>
    %28 = arith.addf %26, %27 : vector<4x1x1xf32>
    %29 = math.rsqrt %28 : vector<4x1x1xf32>
    %30 = vector.broadcast %29 : vector<4x1x1xf32> to vector<4x4x256xf32>
    %31 = arith.mulf %17, %30 : vector<4x4x256xf32>
    %32 = vector.shape_cast %31 : vector<4x4x256xf32> to vector<16x256xf32>
    %c0_15 = arith.constant 0 : index
    %c0_16 = arith.constant 0 : index
    %c0_17 = arith.constant 0 : index
    %33 = vector.load %arg4[%c0_15, %c0_16, %c0_17] : memref<1x16x1xf32, #tpu.memory_space<vmem>>, vector<1x16x1xf32>
    %34 = vector.shape_cast %33 : vector<1x16x1xf32> to vector<16x1xf32>
    %35 = vector.broadcast %34 : vector<16x1xf32> to vector<16x256xf32>
    %36 = arith.mulf %32, %35 : vector<16x256xf32>
    %c0_18 = arith.constant 0 : index
    %c0_19 = arith.constant 0 : index
    %c0_20 = arith.constant 0 : index
    %37 = vector.load %arg5[%c0_18, %c0_19, %c0_20] : memref<1x16x1xf32, #tpu.memory_space<vmem>>, vector<1x16x1xf32>
    %38 = vector.shape_cast %37 : vector<1x16x1xf32> to vector<16x1xf32>
    %39 = vector.broadcast %38 : vector<16x1xf32> to vector<16x256xf32>
    %40 = arith.addf %36, %39 : vector<16x256xf32>
    %41 = arith.negf %40 : vector<16x256xf32>
    %42 = math.exp %41 : vector<16x256xf32>
    %cst_21 = arith.constant 1.000000e+00 : f32
    %43 = vector.broadcast %cst_21 : f32 to vector<16x256xf32>
    %44 = arith.addf %43, %42 : vector<16x256xf32>
    %45 = arith.divf %43, %44 : vector<16x256xf32>
    %46 = arith.mulf %40, %45 : vector<16x256xf32>
    %47 = arith.truncf %46 : vector<16x256xf32> to vector<16x256xbf16>
    %c0_22 = arith.constant 0 : index
    %c0_23 = arith.constant 0 : index
    %c0_24 = arith.constant 0 : index
    %48 = vector.load %arg6[%c0_22, %c0_23, %c0_24] : memref<1x16x256xbf16, #tpu.memory_space<vmem>>, vector<1x16x256xbf16>
    %49 = vector.shape_cast %48 : vector<1x16x256xbf16> to vector<16x256xbf16>
    %50 = vector.shape_cast %47 : vector<16x256xbf16> to vector<1x16x256xbf16>
    tpu.vector_store %arg6[%c0_22, %c0_23, %c0_24], %50 {strides = array<i32>} : memref<1x16x256xbf16, #tpu.memory_space<vmem>>, vector<1x16x256xbf16>,
    return
  }
  func.func @transform_0(%arg0: i32) -> (i32, i32, i32) {
    %c0_i32 = arith.constant 0 : i32
    %c0_i32_0 = arith.constant 0 : i32
    %c0_i32_1 = arith.constant 0 : i32
    return %arg0, %c0_i32, %c0_i32_0 : i32, i32, i32
  }
  func.func @transform_1(%arg0: i32) -> (i32, i32) {
    %c0_i32 = arith.constant 0 : i32
    %c0_i32_0 = arith.constant 0 : i32
    %c0_i32_1 = arith.constant 0 : i32
    return %c0_i32, %c0_i32_0 : i32, i32
  }
  func.func @transform_2(%arg0: i32) -> (i32, i32) {
    %c0_i32 = arith.constant 0 : i32
    %c0_i32_0 = arith.constant 0 : i32
    %c0_i32_1 = arith.constant 0 : i32
    return %c0_i32, %c0_i32_0 : i32, i32
  }
  func.func @transform_3(%arg0: i32) -> (i32, i32, i32) {
    %c0_i32 = arith.constant 0 : i32
    %c0_i32_0 = arith.constant 0 : i32
    %c0_i32_1 = arith.constant 0 : i32
    return %arg0, %c0_i32, %c0_i32_0 : i32, i32, i32
  }
  func.func @transform_4(%arg0: i32) -> (i32, i32, i32) {
    %c0_i32 = arith.constant 0 : i32
    %c0_i32_0 = arith.constant 0 : i32
    %c0_i32_1 = arith.constant 0 : i32
    return %arg0, %c0_i32, %c0_i32_0 : i32, i32, i32
  }
  func.func @transform_5(%arg0: i32) -> (i32, i32, i32) {
    %c0_i32 = arith.constant 0 : i32
    %c0_i32_0 = arith.constant 0 : i32
    %c0_i32_1 = arith.constant 0 : i32
    return %arg0, %c0_i32, %c0_i32_0 : i32, i32, i32
  }
}

module attributes {stable_mosaic.version = 11 : i64} {
  func.func @conv1_skip_gn2_qkv_kernel(%arg0: i32, %arg1: memref<1x144x256xbf16, #tpu.memory_space<vmem>>, %arg2: memref<16x144xbf16, #tpu.memory_space<vmem>>, %arg3: memref<16x1xf32, #tpu.memory_space<vmem>>, %arg4: memref<1x16x256xf32, #tpu.memory_space<vmem>>, %arg5: memref<16x1xf32, #tpu.memory_space<vmem>>, %arg6: memref<16x1xf32, #tpu.memory_space<vmem>>, %arg7: memref<48x16xbf16, #tpu.memory_space<vmem>>, %arg8: memref<48x1xf32, #tpu.memory_space<vmem>>, %arg9: memref<1x16x256xf32, #tpu.memory_space<vmem>>, %arg10: memref<1x48x256xf32, #tpu.memory_space<vmem>>) attributes {dimension_semantics = [#tpu.dimension_semantics<parallel>], iteration_bounds = array<i64: 2>, scalar_prefetch = 0 : i64, scratch_operands = 0 : i64, tpu.core_type = #tpu.core_type<tc>, window_params = [{transform_indices = @transform_0, window_bounds = array<i64: 1, 144, 256>}, {pipeline_mode = #tpu.pipeline_mode<synchronous>, transform_indices = @transform_1, window_bounds = array<i64: 16, 144>}, {pipeline_mode = #tpu.pipeline_mode<synchronous>, transform_indices = @transform_2, window_bounds = array<i64: 16, 1>}, {transform_indices = @transform_3, window_bounds = array<i64: 1, 16, 256>}, {pipeline_mode = #tpu.pipeline_mode<synchronous>, transform_indices = @transform_4, window_bounds = array<i64: 16, 1>}, {pipeline_mode = #tpu.pipeline_mode<synchronous>, transform_indices = @transform_5, window_bounds = array<i64: 16, 1>}, {pipeline_mode = #tpu.pipeline_mode<synchronous>, transform_indices = @transform_6, window_bounds = array<i64: 48, 16>}, {pipeline_mode = #tpu.pipeline_mode<synchronous>, transform_indices = @transform_7, window_bounds = array<i64: 48, 1>}, {transform_indices = @transform_8, window_bounds = array<i64: 1, 16, 256>}, {transform_indices = @transform_9, window_bounds = array<i64: 1, 48, 256>}]} {
    %c0 = arith.constant 0 : index
    %c0_0 = arith.constant 0 : index
    %0 = vector.load %arg2[%c0, %c0_0] : memref<16x144xbf16, #tpu.memory_space<vmem>>, vector<16x144xbf16>
    %c0_1 = arith.constant 0 : index
    %c0_2 = arith.constant 0 : index
    %c0_3 = arith.constant 0 : index
    %1 = vector.load %arg1[%c0_1, %c0_2, %c0_3] : memref<1x144x256xbf16, #tpu.memory_space<vmem>>, vector<1x144x256xbf16>
    %2 = vector.shape_cast %1 : vector<1x144x256xbf16> to vector<144x256xbf16>
    %cst = arith.constant dense<0.000000e+00> : vector<16x256xf32>
    %3 = tpu.matmul %0, %2, %cst {dimension_numbers = #tpu.dot_dimension_numbers<[1], [0], [0], [1], [0, 0, 1, 1], [], []>} : vector<16x144xbf16>, vector<144x256xbf16>, vector<16x256xf32> -> vector<16x256xf32>
    %c0_4 = arith.constant 0 : index
    %c0_5 = arith.constant 0 : index
    %4 = vector.load %arg3[%c0_4, %c0_5] : memref<16x1xf32, #tpu.memory_space<vmem>>, vector<16x1xf32>
    %5 = vector.broadcast %4 : vector<16x1xf32> to vector<16x256xf32>
    %6 = arith.addf %3, %5 : vector<16x256xf32>
    %c0_6 = arith.constant 0 : index
    %c0_7 = arith.constant 0 : index
    %c0_8 = arith.constant 0 : index
    %7 = vector.load %arg4[%c0_6, %c0_7, %c0_8] : memref<1x16x256xf32, #tpu.memory_space<vmem>>, vector<1x16x256xf32>
    %8 = vector.shape_cast %7 : vector<1x16x256xf32> to vector<16x256xf32>
    %9 = arith.addf %6, %8 : vector<16x256xf32>
    %cst_9 = arith.constant 1.000000e+00 : f32
    %10 = vector.broadcast %cst_9 : f32 to vector<16x256xf32>
    %11 = arith.mulf %9, %10 : vector<16x256xf32>
    %c0_10 = arith.constant 0 : index
    %c0_11 = arith.constant 0 : index
    %c0_12 = arith.constant 0 : index
    %12 = vector.load %arg9[%c0_10, %c0_11, %c0_12] : memref<1x16x256xf32, #tpu.memory_space<vmem>>, vector<1x16x256xf32>
    %13 = vector.shape_cast %12 : vector<1x16x256xf32> to vector<16x256xf32>
    %14 = vector.shape_cast %11 : vector<16x256xf32> to vector<1x16x256xf32>
    tpu.vector_store %arg9[%c0_10, %c0_11, %c0_12], %14 {strides = array<i32>} : memref<1x16x256xf32, #tpu.memory_space<vmem>>, vector<1x16x256xf32>,
    %15 = vector.shape_cast %11 : vector<16x256xf32> to vector<4x4x256xf32>
    %cst_13 = arith.constant dense<0.000000e+00> : vector<4x4xf32>
    %16 = vector.multi_reduction <add>, %15, %cst_13 [2] : vector<4x4x256xf32> to vector<4x4xf32>
    %17 = vector.shape_cast %16 : vector<4x4xf32> to vector<4x4x1xf32>
    %cst_14 = arith.constant 2.560000e+02 : f32
    %18 = vector.broadcast %cst_14 : f32 to vector<4x4x1xf32>
    %19 = arith.divf %17, %18 : vector<4x4x1xf32>
    %cst_15 = arith.constant dense<0.000000e+00> : vector<4x1xf32>
    %20 = vector.multi_reduction <add>, %19, %cst_15 [1] : vector<4x4x1xf32> to vector<4x1xf32>
    %21 = vector.shape_cast %20 : vector<4x1xf32> to vector<4x1x1xf32>
    %cst_16 = arith.constant 4.000000e+00 : f32
    %22 = vector.broadcast %cst_16 : f32 to vector<4x1x1xf32>
    %23 = arith.divf %21, %22 : vector<4x1x1xf32>
    %24 = vector.broadcast %23 : vector<4x1x1xf32> to vector<4x4x256xf32>
    %25 = arith.subf %15, %24 : vector<4x4x256xf32>
    %26 = arith.mulf %25, %25 : vector<4x4x256xf32>
    %cst_17 = arith.constant dense<0.000000e+00> : vector<4x4xf32>
    %27 = vector.multi_reduction <add>, %26, %cst_17 [2] : vector<4x4x256xf32> to vector<4x4xf32>
    %28 = vector.shape_cast %27 : vector<4x4xf32> to vector<4x4x1xf32>
    %cst_18 = arith.constant 2.560000e+02 : f32
    %29 = vector.broadcast %cst_18 : f32 to vector<4x4x1xf32>
    %30 = arith.divf %28, %29 : vector<4x4x1xf32>
    %cst_19 = arith.constant dense<0.000000e+00> : vector<4x1xf32>
    %31 = vector.multi_reduction <add>, %30, %cst_19 [1] : vector<4x4x1xf32> to vector<4x1xf32>
    %32 = vector.shape_cast %31 : vector<4x1xf32> to vector<4x1x1xf32>
    %cst_20 = arith.constant 4.000000e+00 : f32
    %33 = vector.broadcast %cst_20 : f32 to vector<4x1x1xf32>
    %34 = arith.divf %32, %33 : vector<4x1x1xf32>
    %cst_21 = arith.constant 9.99999974E-6 : f32
    %35 = vector.broadcast %cst_21 : f32 to vector<4x1x1xf32>
    %36 = arith.addf %34, %35 : vector<4x1x1xf32>
    %37 = math.rsqrt %36 : vector<4x1x1xf32>
    %38 = vector.broadcast %37 : vector<4x1x1xf32> to vector<4x4x256xf32>
    %39 = arith.mulf %25, %38 : vector<4x4x256xf32>
    %40 = vector.shape_cast %39 : vector<4x4x256xf32> to vector<16x256xf32>
    %c0_22 = arith.constant 0 : index
    %c0_23 = arith.constant 0 : index
    %41 = vector.load %arg5[%c0_22, %c0_23] : memref<16x1xf32, #tpu.memory_space<vmem>>, vector<16x1xf32>
    %42 = vector.broadcast %41 : vector<16x1xf32> to vector<16x256xf32>
    %43 = arith.mulf %40, %42 : vector<16x256xf32>
    %c0_24 = arith.constant 0 : index
    %c0_25 = arith.constant 0 : index
    %44 = vector.load %arg6[%c0_24, %c0_25] : memref<16x1xf32, #tpu.memory_space<vmem>>, vector<16x1xf32>
    %45 = vector.broadcast %44 : vector<16x1xf32> to vector<16x256xf32>
    %46 = arith.addf %43, %45 : vector<16x256xf32>
    %c0_26 = arith.constant 0 : index
    %c0_27 = arith.constant 0 : index
    %47 = vector.load %arg7[%c0_26, %c0_27] : memref<48x16xbf16, #tpu.memory_space<vmem>>, vector<48x16xbf16>
    %48 = arith.truncf %46 : vector<16x256xf32> to vector<16x256xbf16>
    %cst_28 = arith.constant dense<0.000000e+00> : vector<48x256xf32>
    %49 = tpu.matmul %47, %48, %cst_28 {dimension_numbers = #tpu.dot_dimension_numbers<[1], [0], [0], [1], [0, 0, 1, 1], [], []>} : vector<48x16xbf16>, vector<16x256xbf16>, vector<48x256xf32> -> vector<48x256xf32>
    %c0_29 = arith.constant 0 : index
    %c0_30 = arith.constant 0 : index
    %50 = vector.load %arg8[%c0_29, %c0_30] : memref<48x1xf32, #tpu.memory_space<vmem>>, vector<48x1xf32>
    %51 = vector.broadcast %50 : vector<48x1xf32> to vector<48x256xf32>
    %52 = arith.addf %49, %51 : vector<48x256xf32>
    %c0_31 = arith.constant 0 : index
    %c0_32 = arith.constant 0 : index
    %c0_33 = arith.constant 0 : index
    %53 = vector.load %arg10[%c0_31, %c0_32, %c0_33] : memref<1x48x256xf32, #tpu.memory_space<vmem>>, vector<1x48x256xf32>
    %54 = vector.shape_cast %53 : vector<1x48x256xf32> to vector<48x256xf32>
    %55 = vector.shape_cast %52 : vector<48x256xf32> to vector<1x48x256xf32>
    tpu.vector_store %arg10[%c0_31, %c0_32, %c0_33], %55 {strides = array<i32>} : memref<1x48x256xf32, #tpu.memory_space<vmem>>, vector<1x48x256xf32>,
    return
  }
  func.func @transform_0(%arg0: i32) -> (i32, i32, i32) {
    %c0_i32 = arith.constant 0 : i32
    %c0_i32_0 = arith.constant 0 : i32
    %c0_i32_1 = arith.constant 0 : i32
    return %arg0, %c0_i32, %c0_i32_0 : i32, i32, i32
  }
  func.func @transform_1(%arg0: i32) -> (i32, i32) {
    %c0_i32 = arith.constant 0 : i32
    %c0_i32_0 = arith.constant 0 : i32
    %c0_i32_1 = arith.constant 0 : i32
    return %c0_i32, %c0_i32_0 : i32, i32
  }
  func.func @transform_2(%arg0: i32) -> (i32, i32) {
    %c0_i32 = arith.constant 0 : i32
    %c0_i32_0 = arith.constant 0 : i32
    %c0_i32_1 = arith.constant 0 : i32
    return %c0_i32, %c0_i32_0 : i32, i32
  }
  func.func @transform_3(%arg0: i32) -> (i32, i32, i32) {
    %c0_i32 = arith.constant 0 : i32
    %c0_i32_0 = arith.constant 0 : i32
    %c0_i32_1 = arith.constant 0 : i32
    return %arg0, %c0_i32, %c0_i32_0 : i32, i32, i32
  }
  func.func @transform_4(%arg0: i32) -> (i32, i32) {
    %c0_i32 = arith.constant 0 : i32
    %c0_i32_0 = arith.constant 0 : i32
    %c0_i32_1 = arith.constant 0 : i32
    return %c0_i32, %c0_i32_0 : i32, i32
  }
  func.func @transform_5(%arg0: i32) -> (i32, i32) {
    %c0_i32 = arith.constant 0 : i32
    %c0_i32_0 = arith.constant 0 : i32
    %c0_i32_1 = arith.constant 0 : i32
    return %c0_i32, %c0_i32_0 : i32, i32
  }
  func.func @transform_6(%arg0: i32) -> (i32, i32) {
    %c0_i32 = arith.constant 0 : i32
    %c0_i32_0 = arith.constant 0 : i32
    %c0_i32_1 = arith.constant 0 : i32
    return %c0_i32, %c0_i32_0 : i32, i32
  }
  func.func @transform_7(%arg0: i32) -> (i32, i32) {
    %c0_i32 = arith.constant 0 : i32
    %c0_i32_0 = arith.constant 0 : i32
    %c0_i32_1 = arith.constant 0 : i32
    return %c0_i32, %c0_i32_0 : i32, i32
  }
  func.func @transform_8(%arg0: i32) -> (i32, i32, i32) {
    %c0_i32 = arith.constant 0 : i32
    %c0_i32_0 = arith.constant 0 : i32
    %c0_i32_1 = arith.constant 0 : i32
    return %arg0, %c0_i32, %c0_i32_0 : i32, i32, i32
  }
  func.func @transform_9(%arg0: i32) -> (i32, i32, i32) {
    %c0_i32 = arith.constant 0 : i32
    %c0_i32_0 = arith.constant 0 : i32
    %c0_i32_1 = arith.constant 0 : i32
    return %arg0, %c0_i32, %c0_i32_0 : i32, i32, i32
  }
}

module attributes {stable_mosaic.version = 11 : i64} {
  func.func @attn_proj_kernel(%arg0: i32, %arg1: memref<1x48x256xf32, #tpu.memory_space<vmem>>, %arg2: memref<16x16xbf16, #tpu.memory_space<vmem>>, %arg3: memref<16x1xf32, #tpu.memory_space<vmem>>, %arg4: memref<1x16x256xf32, #tpu.memory_space<vmem>>, %arg5: memref<1x16x256xf32, #tpu.memory_space<vmem>>) attributes {dimension_semantics = [#tpu.dimension_semantics<parallel>], iteration_bounds = array<i64: 2>, scalar_prefetch = 0 : i64, scratch_operands = 0 : i64, tpu.core_type = #tpu.core_type<tc>, window_params = [{transform_indices = @transform_0, window_bounds = array<i64: 1, 48, 256>}, {pipeline_mode = #tpu.pipeline_mode<synchronous>, transform_indices = @transform_1, window_bounds = array<i64: 16, 16>}, {pipeline_mode = #tpu.pipeline_mode<synchronous>, transform_indices = @transform_2, window_bounds = array<i64: 16, 1>}, {transform_indices = @transform_3, window_bounds = array<i64: 1, 16, 256>}, {transform_indices = @transform_4, window_bounds = array<i64: 1, 16, 256>}]} {
    %c0 = arith.constant 0 : index
    %c0_0 = arith.constant 0 : index
    %c0_1 = arith.constant 0 : index
    %0 = vector.load %arg1[%c0, %c0_0, %c0_1] : memref<1x48x256xf32, #tpu.memory_space<vmem>>, vector<1x48x256xf32>
    %1 = vector.shape_cast %0 : vector<1x48x256xf32> to vector<48x256xf32>
    %cst = arith.constant 1.000000e+00 : bf16
    %2 = vector.broadcast %cst : bf16 to vector<1x256xbf16>
    %3 = vector.extract_strided_slice %1 {offsets = [0, 0], sizes = [8, 256], strides = [1, 1]} : vector<48x256xf32> to vector<8x256xf32>
    %4 = arith.truncf %3 : vector<8x256xf32> to vector<8x256xbf16>
    %5 = vector.extract_strided_slice %1 {offsets = [16, 0], sizes = [8, 256], strides = [1, 1]} : vector<48x256xf32> to vector<8x256xf32>
    %6 = arith.truncf %5 : vector<8x256xf32> to vector<8x256xbf16>
    %7 = vector.extract_strided_slice %1 {offsets = [32, 0], sizes = [8, 256], strides = [1, 1]} : vector<48x256xf32> to vector<8x256xf32>
    %8 = arith.truncf %7 : vector<8x256xf32> to vector<8x256xbf16>
    %cst_2 = arith.constant dense<0.000000e+00> : vector<256x256xf32>
    %9 = tpu.matmul %4, %6, %cst_2 {dimension_numbers = #tpu.dot_dimension_numbers<[0], [0], [1], [1], [0, 1, 1, 1], [], []>} : vector<8x256xbf16>, vector<8x256xbf16>, vector<256x256xf32> -> vector<256x256xf32>
    %cst_3 = arith.constant dense<0xFF800000> : vector<256xf32>
    %10 = vector.multi_reduction <maximumf>, %9, %cst_3 [1] : vector<256x256xf32> to vector<256xf32>
    %11 = vector.shape_cast %10 : vector<256xf32> to vector<256x1xf32>
    %12 = vector.broadcast %11 : vector<256x1xf32> to vector<256x256xf32>
    %13 = arith.subf %9, %12 : vector<256x256xf32>
    %14 = math.exp %13 : vector<256x256xf32>
    %15 = arith.truncf %14 : vector<256x256xf32> to vector<256x256xbf16>
    %cst_4 = arith.constant dense<0.000000e+00> : vector<8x256xf32>
    %16 = tpu.matmul %8, %15, %cst_4 {dimension_numbers = #tpu.dot_dimension_numbers<[1], [1], [0], [0], [0, 0, 1, 0], [], []>} : vector<8x256xbf16>, vector<256x256xbf16>, vector<8x256xf32> -> vector<8x256xf32>
    %cst_5 = arith.constant dense<0.000000e+00> : vector<1x256xf32>
    %17 = tpu.matmul %2, %15, %cst_5 {dimension_numbers = #tpu.dot_dimension_numbers<[1], [1], [0], [0], [0, 0, 1, 0], [], []>} : vector<1x256xbf16>, vector<256x256xbf16>, vector<1x256xf32> -> vector<1x256xf32>
    %18 = tpu.reciprocal %17 {approx = true} : vector<1x256xf32> -> vector<1x256xf32>
    %19 = vector.broadcast %18 : vector<1x256xf32> to vector<8x256xf32>
    %20 = arith.mulf %16, %19 : vector<8x256xf32>
    %21 = vector.extract_strided_slice %1 {offsets = [8, 0], sizes = [8, 256], strides = [1, 1]} : vector<48x256xf32> to vector<8x256xf32>
    %22 = arith.truncf %21 : vector<8x256xf32> to vector<8x256xbf16>
    %23 = vector.extract_strided_slice %1 {offsets = [24, 0], sizes = [8, 256], strides = [1, 1]} : vector<48x256xf32> to vector<8x256xf32>
    %24 = arith.truncf %23 : vector<8x256xf32> to vector<8x256xbf16>
    %25 = vector.extract_strided_slice %1 {offsets = [40, 0], sizes = [8, 256], strides = [1, 1]} : vector<48x256xf32> to vector<8x256xf32>
    %26 = arith.truncf %25 : vector<8x256xf32> to vector<8x256xbf16>
    %cst_6 = arith.constant dense<0.000000e+00> : vector<256x256xf32>
    %27 = tpu.matmul %22, %24, %cst_6 {dimension_numbers = #tpu.dot_dimension_numbers<[0], [0], [1], [1], [0, 1, 1, 1], [], []>} : vector<8x256xbf16>, vector<8x256xbf16>, vector<256x256xf32> -> vector<256x256xf32>
    %cst_7 = arith.constant dense<0xFF800000> : vector<256xf32>
    %28 = vector.multi_reduction <maximumf>, %27, %cst_7 [1] : vector<256x256xf32> to vector<256xf32>
    %29 = vector.shape_cast %28 : vector<256xf32> to vector<256x1xf32>
    %30 = vector.broadcast %29 : vector<256x1xf32> to vector<256x256xf32>
    %31 = arith.subf %27, %30 : vector<256x256xf32>
    %32 = math.exp %31 : vector<256x256xf32>
    %33 = arith.truncf %32 : vector<256x256xf32> to vector<256x256xbf16>
    %cst_8 = arith.constant dense<0.000000e+00> : vector<8x256xf32>
    %34 = tpu.matmul %26, %33, %cst_8 {dimension_numbers = #tpu.dot_dimension_numbers<[1], [1], [0], [0], [0, 0, 1, 0], [], []>} : vector<8x256xbf16>, vector<256x256xbf16>, vector<8x256xf32> -> vector<8x256xf32>
    %cst_9 = arith.constant dense<0.000000e+00> : vector<1x256xf32>
    %35 = tpu.matmul %2, %33, %cst_9 {dimension_numbers = #tpu.dot_dimension_numbers<[1], [1], [0], [0], [0, 0, 1, 0], [], []>} : vector<1x256xbf16>, vector<256x256xbf16>, vector<1x256xf32> -> vector<1x256xf32>
    %36 = tpu.reciprocal %35 {approx = true} : vector<1x256xf32> -> vector<1x256xf32>
    %37 = vector.broadcast %36 : vector<1x256xf32> to vector<8x256xf32>
    %38 = arith.mulf %34, %37 : vector<8x256xf32>
    %39 = tpu.concatenate %20, %38 in 0 : vector<8x256xf32>, vector<8x256xf32> -> vector<16x256xf32>
    %c0_10 = arith.constant 0 : index
    %c0_11 = arith.constant 0 : index
    %40 = vector.load %arg2[%c0_10, %c0_11] : memref<16x16xbf16, #tpu.memory_space<vmem>>, vector<16x16xbf16>
    %41 = arith.truncf %39 : vector<16x256xf32> to vector<16x256xbf16>
    %cst_12 = arith.constant dense<0.000000e+00> : vector<16x256xf32>
    %42 = tpu.matmul %40, %41, %cst_12 {dimension_numbers = #tpu.dot_dimension_numbers<[1], [0], [0], [1], [0, 0, 1, 1], [], []>} : vector<16x16xbf16>, vector<16x256xbf16>, vector<16x256xf32> -> vector<16x256xf32>
    %c0_13 = arith.constant 0 : index
    %c0_14 = arith.constant 0 : index
    %43 = vector.load %arg3[%c0_13, %c0_14] : memref<16x1xf32, #tpu.memory_space<vmem>>, vector<16x1xf32>
    %44 = vector.broadcast %43 : vector<16x1xf32> to vector<16x256xf32>
    %45 = arith.addf %42, %44 : vector<16x256xf32>
    %c0_15 = arith.constant 0 : index
    %c0_16 = arith.constant 0 : index
    %c0_17 = arith.constant 0 : index
    %46 = vector.load %arg4[%c0_15, %c0_16, %c0_17] : memref<1x16x256xf32, #tpu.memory_space<vmem>>, vector<1x16x256xf32>
    %47 = vector.shape_cast %46 : vector<1x16x256xf32> to vector<16x256xf32>
    %48 = arith.addf %45, %47 : vector<16x256xf32>
    %cst_18 = arith.constant 1.000000e+00 : f32
    %49 = vector.broadcast %cst_18 : f32 to vector<16x256xf32>
    %50 = arith.mulf %48, %49 : vector<16x256xf32>
    %c0_19 = arith.constant 0 : index
    %c0_20 = arith.constant 0 : index
    %c0_21 = arith.constant 0 : index
    %51 = vector.load %arg5[%c0_19, %c0_20, %c0_21] : memref<1x16x256xf32, #tpu.memory_space<vmem>>, vector<1x16x256xf32>
    %52 = vector.shape_cast %51 : vector<1x16x256xf32> to vector<16x256xf32>
    %53 = vector.shape_cast %50 : vector<16x256xf32> to vector<1x16x256xf32>
    tpu.vector_store %arg5[%c0_19, %c0_20, %c0_21], %53 {strides = array<i32>} : memref<1x16x256xf32, #tpu.memory_space<vmem>>, vector<1x16x256xf32>,
    return
  }
  func.func @transform_0(%arg0: i32) -> (i32, i32, i32) {
    %c0_i32 = arith.constant 0 : i32
    %c0_i32_0 = arith.constant 0 : i32
    %c0_i32_1 = arith.constant 0 : i32
    return %arg0, %c0_i32, %c0_i32_0 : i32, i32, i32
  }
  func.func @transform_1(%arg0: i32) -> (i32, i32) {
    %c0_i32 = arith.constant 0 : i32
    %c0_i32_0 = arith.constant 0 : i32
    %c0_i32_1 = arith.constant 0 : i32
    return %c0_i32, %c0_i32_0 : i32, i32
  }
  func.func @transform_2(%arg0: i32) -> (i32, i32) {
    %c0_i32 = arith.constant 0 : i32
    %c0_i32_0 = arith.constant 0 : i32
    %c0_i32_1 = arith.constant 0 : i32
    return %c0_i32, %c0_i32_0 : i32, i32
  }
  func.func @transform_3(%arg0: i32) -> (i32, i32, i32) {
    %c0_i32 = arith.constant 0 : i32
    %c0_i32_0 = arith.constant 0 : i32
    %c0_i32_1 = arith.constant 0 : i32
    return %arg0, %c0_i32, %c0_i32_0 : i32, i32, i32
  }
  func.func @transform_4(%arg0: i32) -> (i32, i32, i32) {
    %c0_i32 = arith.constant 0 : i32
    %c0_i32_0 = arith.constant 0 : i32
    %c0_i32_1 = arith.constant 0 : i32
    return %arg0, %c0_i32, %c0_i32_0 : i32, i32, i32
  }
}

</mosaic_0001>

<bundles_post_ra>
// kernel: unet_block_forward.6
= control target key start
LH: loop header
LB: loop body
LE: loop exit
PB: predicated region body
PF: predicated region fallthrough
CT: control target
= control target key end

     0   :  { %vm23_vm0 = vcmask 261120   ;;  %vm47_vm1 = vcmask 254976   ;;  %s96_s1 = inlined_call_operand.vmem [shape: f32[32,32], index: 1, kind: input, shape index: {}]   ;;  %s97_s2 = inlined_call_operand.vmem [shape: f32[1,32], index: 2, kind: input, shape index: {}]   ;;  %s98_s0 = inlined_call_operand.vmem [shape: f32[2,32], index: 0, kind: input, shape index: {}]   ;;  %s99_s3 = inlined_call_operand.vmem [shape: f32[2,32], index: 3, kind: output, shape index: {}]  }
   0x1   :  { %v18_v0 = vld [vmem:[%s96_s1 + $0x18] sm:$0xff]  ;;  %v17_v1 = vld [vmem:[%s96_s1 + $0x10] sm:$0xff]  ;;  %v16_v2 = vld [vmem:[%s96_s1 + $0x8] sm:$0xff] }
   0x2   :  { %39 = vmatpush.msra.mxu0 %v18_v0  ;;  %v15_v3 = vld [vmem:[%s96_s1] sm:$0xff] }
   0x3   :  { %v14_v4 = vld [vmem:[%s98_s0] sm:$0x3] }
   0x4   :  { %40 = vmatpush.msra.mxu0 %v17_v1  ;;  %v54_v5 = vld [vmem:[%s97_s2] ss:$0 sm:$0xff] }
   0x6   :  { %41 = vmatpush.msra.mxu0 %v16_v2 }
   0x8   :  { %42 = vmatpush.msra.mxu0 %v15_v3 }
   0x9   :  { %53 = vmatmul.msk.f32.vlgmr.msra.gmra.mxu0 %vm23_vm0, %v14_v4 }
  0x86   :  { %v44_v6 = vpop.f32.mrf.mxu0 }
  0x87   :  { %v45_v7 = vadd.f32 %v54_v5, %v44_v6 }
  0x89   :  { %48 = vst.msk [vmem:[%s99_s3] sm:$0x3] %vm47_vm1, %v45_v7 }

// kernel: unet_block_forward.5
= control target key start
LH: loop header
LB: loop body
LE: loop exit
PB: predicated region body
PF: predicated region fallthrough
CT: control target
= control target key end

     0   :  { %s740_s21 = smov 0   ;;  %s824_s0 = inlined_call_operand.vmem [shape: f32[2,8,256], index: 0, kind: input, shape index: {}]   ;;  %s825_s1 = inlined_call_operand.vmem [shape: f32[8,1], index: 1, kind: input, shape index: {}]   ;;  %s826_s2 = inlined_call_operand.vmem [shape: f32[8,1], index: 2, kind: input, shape index: {}]   ;;  %s827_s3 = inlined_call_operand.vmem [shape: bf16[16,8], index: 3, kind: input, shape index: {}]   ;;  %s828_s4 = inlined_call_operand.vmem [shape: f32[16,1], index: 4, kind: input, shape index: {}]   ;;  %s829_s5 = inlined_call_operand.vmem [shape: bf16[2,8,256], index: 5, kind: output, shape index: {0}]   ;;  %s830_s6 = inlined_call_operand.vmem [shape: f32[2,16,256], index: 6, kind: output, shape index: {1}]  }
   0x1 LB: > { %s635_s22 = sadd.s32 4294967295, %s698_s21   ;;  %p639_p0 = scmp.ge.s32.totalorder %s698_s21, 1  ;;  %s698_s21 = sphi %s740_s21, %s17_s21  }
   0x2   : > { %p215_p1 = scmp.lt.s32.totalorder %s698_s21, 3 }
   0x4   : > { %p216_p2 = pnand %p639_p0, %p215_p1 }
   0x5   : > { %p250_p3 = scmp.lt.s32.totalorder (!%p216_p2), %s635_s22, 1 }
   0x6   : > { %219 = sbr.rel (%p216_p2) target bundleno = 385 (0x181), region = 40 }
   0xb   : > { %s832_s22 = smov (!%p250_p3, %s635_s22), 1  ;;  %vm271_vm0 = vcmask 1043456   ;;  %v700_v16 = vmov 256.0   ;;  %v701_v20 = vmov 4.0   ;;  %v399_v37 = vld [vmem:[%s825_s1] sm:$0xff]  ;;  %v702_v41 = vmov 0  }
   0xc   : > { %s656_s23 = sshll.u32 %s832_s22, 4  ;;  %676 = vrcp.f32 %v700_v16  ;;  %673 = vset.pattern.permute.xlu2 %v702_v41  ;;  %675 = vset.pattern.permute.xlu1 %v702_v41  ;;  %v488_v42 = vld [vmem:[%s828_s4] sm:$0xff]  ;;  %vm505_vm3 = vcmask 64512   ;;  %s658_s13 = sshll.u32 %s832_s22, 5 }
   0xd   : > { %s254_s26 = scalar_lea.vmem %s824_s0, %s656_s23  ;;  %678 = vrcp.f32 %v701_v20  ;;  %402 = vperm.xlu2 %673, %v399_v37   ;;  %v659_v46 = vld [vmem:[%s827_s3] sm:$0xff]  ;;  %674 = vset.pattern.permute.xlu0 %v702_v41  ;;  %s264_s16 = scalar_lea.vmem %s830_s6, %s658_s13 }
   0xe   : > { %v266_v0 = vld [vmem:[%s254_s26] sm:$0xff]  ;;  %v267_v1 = vld [vmem:[%s254_s26 + $0x8] sm:$0xff]  ;;  %s657_s17 = sshll.u32 %s832_s22, 3 }
   0xf   : > { %v270_v2 = vrot.slane %v267_v1, 4  ;;  %v486_v38 = vpack.c.bf16 %v266_v0, %v266_v0  ;;  %v487_v39 = vpack.c.bf16 %v267_v1, %v267_v1  ;;  %v416_v54 = vld [vmem:[%s826_s2] sm:$0xff]  ;;  %s259_s20 = scalar_lea.vmem %s829_s5, %s657_s17 }
  0x11   : > { %v755_v3 = vsel %vm271_vm0, %v266_v0, %v270_v2  ;;  %v758_v4 = vsel %vm271_vm0, %v270_v2, %v266_v0  ;;  %v510_v44 = vsel %vm271_vm0, %v486_v38, 0  ;;  %v513_v45 = vsel %vm271_vm0, %v487_v39, 0 }
  0x12   : > { %277 = vst [vmem:[#allocation1] ss:$2 sm:$0xff] %v755_v3  ;;  %v274_v5 = vrot.slane %v758_v4, 4  ;;  %v677_v17 = vpop.eup %676  ;;  %522 = vmatpush.bf16.msra.mxu0 %v510_v44  ;;  %536 = vmatpush.bf16.msra.mxu1 %v513_v45 }
  0x13   : > { %v299_v18 = vmul.f32 256.0, %v677_v17  ;;  %v679_v22 = vpop.eup %678  ;;  %vm303_vm1 = vweird.f32 %v677_v17 }
  0x14   : > { %281 = vst [vmem:[#allocation1 + $0x10] ss:$2 sm:$0xff] %v274_v5  ;;  %v322_v24 = vmul.f32 4.0, %v679_v22  ;;  %vm326_vm2 = vweird.f32 %v679_v22 }
  0x15   : > { %v300_v19 = vsub.f32 1.0, %v299_v18  ;;  %652 = vmatmul.msk.bf16.vlgmr.msra.gmra.mxu0 %vm505_vm3, %v659_v46  ;;  %653 = vmatmul.msk.bf16.vlgmr.msra.gmra.mxu1 %vm505_vm3, %v659_v46 }
  0x16   : > { %v323_v26 = vsub.f32 1.0, %v322_v24  ;;  %419 = vperm.xlu2 %673, %v416_v54  }
  0x17   : > { %v301_v21 = vmul.f32 %v677_v17, %v300_v19 }
  0x18   : > { %v324_v30 = vmul.f32 %v679_v22, %v323_v26 }
  0x19   : > { %v278_v6 = vld.sshfl [vmem:[#allocation1] sm:$0xff pattern:$0x75316420]  ;;  %v279_v7 = vld.sshfl [vmem:[#allocation1 + $0x8] sm:$0xff pattern:$0x75316420]  ;;  %v302_v23 = vadd.f32 %v677_v17, %v301_v21 }
  0x1a   : > { %v288_v8 = vsel %vm271_vm0, %v278_v6, 0.0  ;;  %v289_v9 = vsel %vm271_vm0, %v279_v7, 0.0  ;;  %v325_v33 = vadd.f32 %v679_v22, %v324_v30 }
  0x1b   : > { %v290_v10 = vadd.f32 %v289_v9, %v288_v8  ;;  %v282_v11 = vld.sshfl [vmem:[#allocation1 + $0x10] sm:$0xff pattern:$0x75316420]  ;;  %v283_v12 = vld.sshfl [vmem:[#allocation1 + $0x18] sm:$0xff pattern:$0x75316420]  ;;  %v768_v25 = vsel %vm303_vm1, %v677_v17, %v302_v23 }
  0x1c   : > { %v293_v13 = vsel %vm271_vm0, %v282_v11, 0.0  ;;  %v294_v14 = vsel %vm271_vm0, %v283_v12, 0.0  ;;  %v327_v49 = vsel %vm326_vm2, %v679_v22, %v325_v33  ;;  %v489_v9 = vld [vmem:[%s828_s4 + $0x8] sm:$0xff] }
  0x1d   : > { %291 = vadd.xlane.f32.xlu0 %v290_v10  ;;  %v295_v15 = vadd.f32 %v294_v14, %v293_v13 }
  0x25   : > { %296 = vadd.xlane.f32.xlu0 %v295_v15 }
  0x39   : > { %492 = vperm.xlu0 %674, %v488_v42  }
  0x90   : > { %v292_v27 = vpop.xlane.xlu0 %291 }
  0x91   : > { %v305_v28 = vmul.f32 %v768_v25, %v292_v27 }
  0x93   : > { %v307_v29 = vsel %vm271_vm0, %v305_v28, 0.0 }
  0x94   : > { %v308_v31 = vrot.slane %v307_v29, 4 }
  0x96   : > { %v309_v32 = vadd.f32 %v308_v31, %v307_v29 }
  0x98   : > { %v310_v34 = vrot.slane %v309_v32, 2  ;;  %v297_v35 = vpop.xlane.xlu0 %296 }
  0x99   : > { %v306_v36 = vmul.f32 %v768_v25, %v297_v35 }
  0x9a   : > { %v311_v40 = vadd.f32 %v310_v34, %v309_v32  ;;  %v403_v32 = vpop.permute.xlu2 %402 }
  0x9b   : > { %v314_v43 = vsel %vm271_vm0, %v306_v36, 0.0 }
  0x9c   : > { %v312_v47 = vrot.slane %v311_v40, 1  ;;  %v315_v48 = vrot.slane %v314_v43, 4 }
  0x9e   : > { %v313_v50 = vadd.f32 %v312_v47, %v311_v40  ;;  %v316_v51 = vadd.f32 %v315_v48, %v314_v43  ;;  %v704_v48 = vmov 1985246804  }
  0xa0   : > { %v328_v52 = vmul.f32 %v327_v49, %v313_v50  ;;  %v317_v53 = vrot.slane %v316_v51, 2 }
  0xa2   : > { %v790_v55 = vsub.f32 %v755_v3, %v328_v52  ;;  %v318_v56 = vadd.f32 %v317_v53, %v316_v51  ;;  %v420_v44 = vpop.permute.xlu2 %419 }
  0xa4   : > { %v332_v57 = vmul.f32 %v790_v55, %v790_v55  ;;  %v319_v58 = vrot.slane %v318_v56, 1 }
  0xa6   : > { %336 = vst [vmem:[#allocation1] ss:$2 sm:$0xff] %v332_v57  ;;  %v320_v59 = vadd.f32 %v319_v58, %v318_v56  ;;  %v524_v56 = vpop.f32.mrf.mxu0  ;;  %v538_v57 = vpop.f32.mrf.mxu1 }
  0xa8   : > { %v329_v60 = vmul.f32 %v327_v49, %v320_v59 }
  0xaa   : > { %v796_v61 = vsub.f32 %v274_v5, %v329_v60 }
  0xac   : > { %v333_v62 = vmul.f32 %v796_v61, %v796_v61 }
  0xad   : > { %v337_v63 = vld.sshfl [vmem:[#allocation1] sm:$0xff pattern:$0x75316420]  ;;  %v338_v0 = vld.sshfl [vmem:[#allocation1 + $0x8] sm:$0xff pattern:$0x75316420] }
  0xae   : > { %340 = vst [vmem:[#allocation1 + $0x10] ss:$2 sm:$0xff] %v333_v62  ;;  %v347_v1 = vsel %vm271_vm0, %v337_v63, 0.0  ;;  %v348_v2 = vsel %vm271_vm0, %v338_v0, 0.0 }
  0xaf   : > { %v349_v3 = vadd.f32 %v348_v2, %v347_v1 }
  0xb1   : > { %350 = vadd.xlane.f32.xlu1 %v349_v3  ;;  %v526_v3 = vpop.f32.mrf.mxu0 }
  0xb5   : > { %v341_v6 = vld.sshfl [vmem:[#allocation1 + $0x10] sm:$0xff pattern:$0x75316420]  ;;  %v342_v7 = vld.sshfl [vmem:[#allocation1 + $0x18] sm:$0xff pattern:$0x75316420] }
  0xb6   : > { %v352_v8 = vsel %vm271_vm0, %v341_v6, 0.0  ;;  %v353_v4 = vsel %vm271_vm0, %v342_v7, 0.0  ;;  %v540_v6 = vpop.f32.mrf.mxu1 }
  0xb7   : > { %v354_v5 = vadd.f32 %v353_v4, %v352_v8  ;;  %v493_v4 = vpop.permute.xlu0 %492 }
  0xb9   : > { %355 = vadd.xlane.f32.xlu1 %v354_v5 }
  0xd2   : > { %497 = vperm.xlu1 %675, %v489_v9  }
 0x124   : > { %v351_v10 = vpop.xlane.xlu1 %350 }
 0x125   : > { %v357_v11 = vmul.f32 %v351_v10, %v768_v25  ;;  %v525_v10 = vadd.f32 %v524_v56, %v493_v4 }
 0x127   : > { %v359_v12 = vsel %vm271_vm0, %v357_v11, 0.0  ;;  %543 = vst [vmem:[%s264_s16] sm:$0xff] %v525_v10 }
 0x128   : > { %v360_v13 = vrot.slane %v359_v12, 4 }
 0x12a   : > { %v361_v14 = vadd.f32 %v360_v13, %v359_v12 }
 0x12c   : > { %v362_v15 = vrot.slane %v361_v14, 2  ;;  %v356_v16 = vpop.xlane.xlu1 %355 }
 0x12d   : > { %v358_v17 = vmul.f32 %v356_v16, %v768_v25  ;;  %v703_v25 = vmov 839922192  }
 0x12e   : > { %v363_v18 = vadd.f32 %v362_v15, %v361_v14  ;;  %v405_v36 = vunpack.c.l.s4 %v703_v25 }
 0x12f   : > { %v366_v19 = vsel %vm271_vm0, %v358_v17, 0.0 }
 0x130   : > { %v364_v20 = vrot.slane %v363_v18, 1  ;;  %v367_v21 = vrot.slane %v366_v19, 4  ;;  %v406_v39 = vunpack.c.0.s8 %v405_v36 }
 0x132   : > { %v365_v22 = vadd.f32 %v364_v20, %v363_v18  ;;  %v368_v23 = vadd.f32 %v367_v21, %v366_v19  ;;  %v407_v45 = vperm.slane %v403_v32, %v406_v39  ;;  %v424_v51 = vperm.slane %v420_v44, %v406_v39 }
 0x134   : > { %v373_v24 = vmul.f32 %v365_v22, %v327_v49  ;;  %v369_v26 = vrot.slane %v368_v23, 2 }
 0x136   : > { %v375_v27 = vadd.f32 1e-05, %v373_v24  ;;  %v370_v28 = vadd.f32 %v369_v26, %v368_v23 }
 0x138   : > { %680 = vrsqrt.f32 %v375_v27  ;;  %v371_v29 = vrot.slane %v370_v28, 1  ;;  %vm383_vm5 = vweird.f32 %v375_v27 }
 0x13a   : > { %v372_v30 = vadd.f32 %v371_v29, %v370_v28 }
 0x13c   : > { %v374_v31 = vmul.f32 %v372_v30, %v327_v49  ;;  %v409_v49 = vunpack.c.l.s4 %v704_v48 }
 0x13e   : > { %v681_v33 = vpop.eup %680  ;;  %v376_v34 = vadd.f32 1e-05, %v374_v31  ;;  %v410_v58 = vunpack.c.0.s8 %v409_v49 }
 0x13f   : > { %v378_v35 = vmul.f32 %v681_v33, %v375_v27  ;;  %vm384_vm4 = vweird.f32 %v681_v33 }
 0x140   : > { %682 = vrsqrt.f32 %v376_v34  ;;  %vm385_vm6 = vmor %vm383_vm5, %vm384_vm4  ;;  %vm393_vm8 = vweird.f32 %v376_v34  ;;  %v411_v1 = vperm.slane %v403_v32, %v410_v58  ;;  %v428_v2 = vperm.slane %v420_v44, %v410_v58 }
 0x141   : > { %v379_v37 = vmul.f32 %v681_v33, %v378_v35 }
 0x143   : > { %v380_v38 = vmul.f32 0.5, %v379_v37 }
 0x144   : > { %v498_v8 = vpop.permute.xlu1 %497 }
 0x145   : > { %v381_v40 = vsub.f32 1.5, %v380_v38  ;;  %v527_v5 = vadd.f32 %v526_v3, %v498_v8  ;;  %v541_v9 = vadd.f32 %v540_v6, %v498_v8 }
 0x146   : > { %v683_v41 = vpop.eup %682 }
 0x147   : > { %v388_v42 = vmul.f32 %v683_v41, %v376_v34  ;;  %v382_v43 = vmul.f32 %v681_v33, %v381_v40  ;;  %vm394_vm7 = vweird.f32 %v683_v41  ;;  %545 = vst [vmem:[%s264_s16 + $0x10] sm:$0xff] %v527_v5 }
 0x148   : > { %vm395_vm9 = vmor %vm393_vm8, %vm394_vm7  ;;  %546 = vst [vmem:[%s264_s16 + $0x18] sm:$0xff] %v541_v9 }
 0x149   : > { %v386_v46 = vsel %vm385_vm6, %v681_v33, %v382_v43  ;;  %v389_v47 = vmul.f32 %v683_v41, %v388_v42 }
 0x14a   : > { %v397_v50 = vmul.f32 %v386_v46, %v790_v55 }
 0x14b   : > { %v390_v52 = vmul.f32 0.5, %v389_v47 }
 0x14c   : > { %v414_v53 = vmul.f32 %v407_v45, %v397_v50 }
 0x14d   : > { %v391_v54 = vsub.f32 1.5, %v390_v52 }
 0x14e   : > { %v431_v59 = vadd.f32 %v424_v51, %v414_v53 }
 0x14f   : > { %v392_v60 = vmul.f32 %v683_v41, %v391_v54 }
 0x150   : > { %v646_v62 = vmul.f32 -1.442695, %v431_v59 }
 0x151   : > { %v396_v63 = vsel %vm395_vm9, %v683_v41, %v392_v60 }
 0x152   : > { %v398_v0 = vmul.f32 %v396_v63, %v796_v61  ;;  %684 = vpow2.f32 %v646_v62  ;;  %v539_v61 = vadd.f32 %v538_v57, %v493_v4 }
 0x154   : > { %v415_v55 = vmul.f32 %v411_v1, %v398_v0  ;;  %544 = vst [vmem:[%s264_s16 + $0x8] sm:$0xff] %v539_v61 }
 0x156   : > { %v432_v7 = vadd.f32 %v428_v2, %v415_v55 }
 0x158   : > { %v685_v11 = vpop.eup %684  ;;  %v647_v12 = vmul.f32 -1.442695, %v432_v7 }
 0x159   : > { %v439_v13 = vadd.f32 1.0, %v685_v11 }
 0x15a   : > { %686 = vpow2.f32 %v647_v12 }
 0x15b   : > { %688 = vrcp.f32 %v439_v13  ;;  %v452_v19 = vand.u32 2147483648, %v439_v13  ;;  %v450_v21 = vand.u32 2147483647, %v439_v13  ;;  %vm446_vm11 = vweird.f32 %v439_v13 }
 0x15d   : > { %v453_v24 = vor.u32 1.1754944e-38, %v452_v19  ;;  %vm451_vm13 = vcmp.eq.f32.partialorder %v450_v21, 8.507059e+37 }
 0x160   : > { %v687_v14 = vpop.eup %686 }
 0x161   : > { %v689_v15 = vpop.eup %688  ;;  %v440_v16 = vadd.f32 1.0, %v687_v14 }
 0x162   : > { %v442_v17 = vmul.f32 %v689_v15, %v439_v13  ;;  %vm447_vm10 = vweird.f32 %v689_v15 }
 0x163   : > { %690 = vrcp.f32 %v440_v16  ;;  %vm448_vm12 = vmor %vm446_vm11, %vm447_vm10  ;;  %v467_v31 = vand.u32 2147483648, %v440_v16  ;;  %v465_v33 = vand.u32 2147483647, %v440_v16  ;;  %vm461_vm15 = vweird.f32 %v440_v16 }
 0x164   : > { %v443_v18 = vsub.f32 1.0, %v442_v17 }
 0x165   : > { %v468_v35 = vor.u32 1.1754944e-38, %v467_v31  ;;  %vm466_vm1 = vcmp.eq.f32.partialorder %v465_v33, 8.507059e+37 }
 0x166   : > { %v444_v20 = vmul.f32 %v689_v15, %v443_v18 }
 0x168   : > { %v445_v22 = vadd.f32 %v689_v15, %v444_v20 }
 0x169   : > { %v691_v23 = vpop.eup %690 }
 0x16a   : > { %v449_v26 = vsel %vm448_vm12, %v689_v15, %v445_v22  ;;  %v457_v27 = vmul.f32 %v691_v23, %v440_v16  ;;  %vm462_vm14 = vweird.f32 %v691_v23 }
 0x16b   : > { %v454_v28 = vsel %vm451_vm13, %v453_v24, %v449_v26  ;;  %vm463_vm0 = vmor %vm461_vm15, %vm462_vm14 }
 0x16c   : > { %v458_v29 = vsub.f32 1.0, %v457_v27  ;;  %v471_v30 = vmul.f32 %v454_v28, %v431_v59 }
 0x16e   : > { %v459_v32 = vmul.f32 %v691_v23, %v458_v29  ;;  %475 = vst [vmem:[#allocation1] ss:$2 sm:$0xff] %v471_v30 }
 0x170   : > { %v460_v34 = vadd.f32 %v691_v23, %v459_v32 }
 0x172   : > { %v464_v25 = vsel %vm463_vm0, %v691_v23, %v460_v34 }
 0x173   : > { %v469_v36 = vsel %vm466_vm1, %v468_v35, %v464_v25 }
 0x174   : > { %v472_v37 = vmul.f32 %v469_v36, %v432_v7 }
 0x176   : > { %477 = vst [vmem:[#allocation1 + $0x1] ss:$2 sm:$0xff] %v472_v37 }
 0x17d   : > { %v478_v38 = vld.sshfl [vmem:[#allocation1] sm:$0xff pattern:$0x75316420]  ;;  %v479_v39 = vld.sshfl [vmem:[#allocation1 + $0x8] sm:$0xff pattern:$0x75316420] }
 0x17e   : > { %v482_v40 = vpack.c.bf16 %v479_v39, %v478_v38 }
 0x180   : > { %483 = vst [vmem:[%s259_s20] sm:$0xff] %v482_v40 }
 0x181 PF: > { %s17_s21 = sadd.s32 1, %s698_s21  }
 0x182   : > { %p14_p4 = scmp.ge.s32.totalorder %s17_s21, 4  }
 0x184   :  { %16 = sbr.rel (!%p14_p4) target bundleno = 1 (0x1), region = 85 }

// kernel: unet_block_forward.7
= control target key start
LH: loop header
LB: loop body
LE: loop exit
PB: predicated region body
PF: predicated region fallthrough
CT: control target
= control target key end

     0   :  { %s1032_s18 = smov 0   ;;  %s1208_s0 = inlined_call_operand.vmem [shape: bf16[2,72,256], index: 0, kind: input, shape index: {}]   ;;  %s1209_s1 = inlined_call_operand.vmem [shape: bf16[16,72], index: 1, kind: input, shape index: {}]   ;;  %s1210_s2 = inlined_call_operand.vmem [shape: f32[16,1], index: 2, kind: input, shape index: {}]   ;;  %s1211_s3 = inlined_call_operand.vmem [shape: f32[2,16,1], index: 3, kind: input, shape index: {}]   ;;  %s1212_s4 = inlined_call_operand.vmem [shape: f32[2,16,1], index: 4, kind: input, shape index: {}]   ;;  %s1213_s5 = inlined_call_operand.vmem [shape: bf16[2,16,256], index: 5, kind: output, shape index: {}]  }
   0x1 LB: > { %s876_s19 = sadd.s32 4294967295, %s995_s18   ;;  %p880_p0 = scmp.ge.s32.totalorder %s995_s18, 1  ;;  %s995_s18 = sphi %s1032_s18, %s15_s18  }
   0x2   : > { %p207_p1 = scmp.lt.s32.totalorder %s995_s18, 3 }
   0x4   : > { %p208_p2 = pnand %p880_p0, %p207_p1 }
   0x5   : > { %p245_p3 = scmp.lt.s32.totalorder (!%p208_p2), %s876_s19, 1 }
   0x6   : > { %211 = sbr.rel (%p208_p2) target bundleno = 552 (0x228), region = 40 }
   0xb   : > { %v277_v0 = vld [vmem:[%s1210_s2] sm:$0xff]  ;;  %v997_v1 = vmov 0   ;;  %s1215_s19 = smov (!%p245_p3, %s876_s19), 1  ;;  %v278_v3 = vld [vmem:[%s1210_s2 + $0x8] sm:$0xff]  ;;  %vm343_vm0 = vcmask 1043456   ;;  %vm339_vm1 = vcmask 588800  }
   0xc   : > { %958 = vset.pattern.permute.xlu0 %v997_v1  ;;  %959 = vset.pattern.permute.xlu2 %v997_v1  ;;  %s944_s22 = smul.u32 72, %s1215_s19  ;;  %v935_v34 = vld [vmem:[%s1209_s1] sm:$0xff]  ;;  %s1105_s30 = sshll.u32 %s1215_s19, 4 }
   0xd   : > { %281 = vperm.xlu0 %958, %v277_v0   ;;  %960 = vset.pattern.permute.xlu1 %v997_v1  ;;  %s1111_s8 = scalar_lea.vmem %s1211_s3, %s1105_s30  ;;  %s259_s11 = scalar_lea.vmem %s1212_s4, %s1105_s30 }
   0xe   : > { %s1049_s25 = scalar_lea.vmem %s1208_s0, %s944_s22  ;;  %s264_s14 = scalar_lea.vmem %s1213_s5, %s1105_s30 }
   0xf   : > { %v276_v2 = vld [vmem:[%s1049_s25 + $0x40] sm:$0xff]  ;;  %v918_v6 = vld [vmem:[%s1049_s25 + $0x30] sm:$0xf]  ;;  %v943_v9 = vld [vmem:[%s1049_s25 + $0x34] sm:$0xf0] }
  0x10   : > { %v319_v4 = vunpack.c.l.b16 %v276_v2  ;;  %v320_v5 = vunpack.c.h.b16 %v276_v2  ;;  %v942_v10 = vld [vmem:[%s1049_s25 + $0x34] sm:$0xf]  ;;  %v920_v11 = vld [vmem:[%s1049_s25 + $0x38] sm:$0xf0]  ;;  %v919_v14 = vor.u32 %v943_v9, %v918_v6  ;;  %v910_v16 = vld [vmem:[%s1049_s25 + $0x20] sm:$0xf] }
  0x11   : > { %v923_v15 = vor.u32 %v942_v10, %v920_v11  ;;  %v941_v17 = vld [vmem:[%s1049_s25 + $0x24] sm:$0xf0]  ;;  %v940_v18 = vld [vmem:[%s1049_s25 + $0x24] sm:$0xf]  ;;  %v912_v19 = vld [vmem:[%s1049_s25 + $0x28] sm:$0xf0] }
  0x12   : > { %v329_v7 = vpack.c.b16 %v319_v4, %v319_v4  ;;  %v330_v8 = vpack.c.b16 %v320_v5, %v320_v5  ;;  %v911_v20 = vor.u32 %v941_v17, %v910_v16  ;;  %v915_v21 = vor.u32 %v940_v18, %v912_v19  ;;  %v902_v22 = vld [vmem:[%s1049_s25 + $0x10] sm:$0xf]  ;;  %v939_v23 = vld [vmem:[%s1049_s25 + $0x14] sm:$0xf0]  ;;  %v938_v24 = vld [vmem:[%s1049_s25 + $0x14] sm:$0xf] }
  0x13   : > { %v904_v25 = vld [vmem:[%s1049_s25 + $0x18] sm:$0xf0]  ;;  %v903_v26 = vor.u32 %v939_v23, %v902_v22  ;;  %v894_v28 = vld [vmem:[%s1049_s25] sm:$0xf]  ;;  %v937_v29 = vld [vmem:[%s1049_s25 + $0x4] sm:$0xf0] }
  0x14   : > { %v345_v12 = vsel %vm343_vm0, %v329_v7, 0  ;;  %v348_v13 = vsel %vm343_vm0, %v330_v8, 0  ;;  %v907_v27 = vor.u32 %v938_v24, %v904_v25  ;;  %v936_v30 = vld [vmem:[%s1049_s25 + $0x4] sm:$0xf]  ;;  %v896_v31 = vld [vmem:[%s1049_s25 + $0x8] sm:$0xf0]  ;;  %v895_v32 = vor.u32 %v937_v29, %v894_v28 }
  0x15   : > { %286 = vperm.xlu0 %958, %v278_v3   ;;  %353 = vmatpush.bf16.msra.mxu0 %v345_v12  ;;  %v899_v33 = vor.u32 %v936_v30, %v896_v31  ;;  %v626_v9 = vld [vmem:[%s1111_s8] sm:$0xff]  ;;  %v998_v10 = vmov 256.0  }
  0x16   : > { %367 = vmatpush.bf16.msra.mxu1 %v348_v13  ;;  %961 = vrcp.f32 %v998_v10 }
  0x19   : > { %354 = vmatpush.bf16.msra.mxu0 %v919_v14  ;;  %v999_v14 = vmov 4.0  }
  0x1a   : > { %368 = vmatpush.bf16.msra.mxu1 %v923_v15  ;;  %963 = vrcp.f32 %v999_v14 }
  0x1c   : > { %v962_v11 = vpop.eup %961 }
  0x1d   : > { %355 = vmatpush.bf16.msra.mxu0 %v911_v20  ;;  %v438_v12 = vmul.f32 256.0, %v962_v11  ;;  %vm442_vm2 = vweird.f32 %v962_v11 }
  0x1e   : > { %369 = vmatpush.bf16.msra.mxu1 %v915_v21 }
  0x1f   : > { %v439_v13 = vsub.f32 1.0, %v438_v12 }
  0x20   : > { %v964_v16 = vpop.eup %963 }
  0x21   : > { %356 = vmatpush.bf16.msra.mxu0 %v903_v26  ;;  %v440_v15 = vmul.f32 %v962_v11, %v439_v13  ;;  %v477_v18 = vmul.f32 4.0, %v964_v16  ;;  %vm481_vm3 = vweird.f32 %v964_v16 }
  0x22   : > { %370 = vmatpush.bf16.msra.mxu1 %v907_v27 }
  0x23   : > { %v441_v17 = vadd.f32 %v962_v11, %v440_v15  ;;  %v478_v21 = vsub.f32 1.0, %v477_v18 }
  0x25   : > { %357 = vmatpush.bf16.msra.mxu0 %v895_v32  ;;  %v1114_v19 = vsel %vm442_vm2, %v962_v11, %v441_v17  ;;  %v479_v25 = vmul.f32 %v964_v16, %v478_v21 }
  0x26   : > { %371 = vmatpush.bf16.msra.mxu1 %v899_v33 }
  0x27   : > { %v480_v30 = vadd.f32 %v964_v16, %v479_v25 }
  0x28   : > { %924 = vmatmul.msk.bf16.vlgmr.msra.gmra.mxu0 %vm339_vm1, %v935_v34 }
  0x29   : > { %925 = vmatmul.msk.bf16.vlgmr.msra.gmra.mxu1 %vm339_vm1, %v935_v34 }
  0x7f   : > { %v282_v35 = vpop.permute.xlu0 %281 }
  0x87   : > { %v287_v44 = vpop.permute.xlu0 %286 }
  0xa5   : > { %v359_v36 = vpop.f32.mrf.mxu0 }
  0xa6   : > { %v373_v37 = vpop.f32.mrf.mxu1  ;;  %v360_v39 = vadd.f32 %v359_v36, %v282_v35 }
  0xa7   : > { %v374_v38 = vadd.f32 %v373_v37, %v282_v35 }
  0xa9   : > { %v382_v40 = vrot.slane %v374_v38, 4 }
  0xab   : > { %v1077_v41 = vsel %vm343_vm0, %v360_v39, %v382_v40  ;;  %v1080_v42 = vsel %vm343_vm0, %v382_v40, %v360_v39  ;;  %v1122_v39 = vsel %vm481_vm3, %v964_v16, %v480_v30  ;;  %v661_v30 = vld [vmem:[%s259_s11 + $0x8] sm:$0xff] }
  0xac   : > { %v386_v43 = vrot.slane %v1080_v42, 4  ;;  %394 = vst [vmem:[#allocation1] ss:$2 sm:$0xff] %v1077_v41 }
  0xad   : > { %v361_v45 = vpop.f32.mrf.mxu0 }
  0xae   : > { %398 = vst [vmem:[#allocation1 + $0x10] ss:$2 sm:$0xff] %v386_v43  ;;  %v375_v46 = vpop.f32.mrf.mxu1  ;;  %v362_v48 = vadd.f32 %v361_v45, %v287_v44 }
  0xaf   : > { %v376_v47 = vadd.f32 %v375_v46, %v287_v44 }
  0xb1   : > { %v383_v49 = vrot.slane %v376_v47, 4 }
  0xb3   : > { %v1087_v50 = vsel %vm343_vm0, %v362_v48, %v383_v49  ;;  %v1090_v51 = vsel %vm343_vm0, %v383_v49, %v362_v48  ;;  %v395_v52 = vld.sshfl [vmem:[#allocation1] sm:$0xff pattern:$0x75316420]  ;;  %v396_v53 = vld.sshfl [vmem:[#allocation1 + $0x8] sm:$0xff pattern:$0x75316420] }
  0xb4   : > { %v389_v54 = vrot.slane %v1090_v51, 4  ;;  %402 = vst [vmem:[#allocation1 + $0x20] ss:$2 sm:$0xff] %v1087_v50  ;;  %v417_v55 = vsel %vm343_vm0, %v395_v52, 0.0  ;;  %v418_v56 = vsel %vm343_vm0, %v396_v53, 0.0 }
  0xb5   : > { %v419_v57 = vadd.f32 %v418_v56, %v417_v55  ;;  %v399_v58 = vld.sshfl [vmem:[#allocation1 + $0x10] sm:$0xff pattern:$0x75316420]  ;;  %v400_v59 = vld.sshfl [vmem:[#allocation1 + $0x18] sm:$0xff pattern:$0x75316420] }
  0xb6   : > { %406 = vst [vmem:[#allocation1 + $0x30] ss:$2 sm:$0xff] %v389_v54  ;;  %v422_v60 = vsel %vm343_vm0, %v399_v58, 0.0  ;;  %v423_v61 = vsel %vm343_vm0, %v400_v59, 0.0 }
  0xb7   : > { %420 = vadd.xlane.f32.xlu1 %v419_v57  ;;  %v424_v3 = vadd.f32 %v423_v61, %v422_v60 }
  0xbb   : > { %v403_v62 = vld.sshfl [vmem:[#allocation1 + $0x20] sm:$0xff pattern:$0x75316420]  ;;  %v404_v63 = vld.sshfl [vmem:[#allocation1 + $0x28] sm:$0xff pattern:$0x75316420] }
  0xbc   : > { %v427_v0 = vsel %vm343_vm0, %v403_v62, 0.0  ;;  %v428_v1 = vsel %vm343_vm0, %v404_v63, 0.0 }
  0xbd   : > { %v429_v2 = vadd.f32 %v428_v1, %v427_v0  ;;  %v407_v4 = vld.sshfl [vmem:[#allocation1 + $0x30] sm:$0xff pattern:$0x75316420]  ;;  %v408_v5 = vld.sshfl [vmem:[#allocation1 + $0x38] sm:$0xff pattern:$0x75316420] }
  0xbe   : > { %v432_v6 = vsel %vm343_vm0, %v407_v4, 0.0  ;;  %v433_v7 = vsel %vm343_vm0, %v408_v5, 0.0 }
  0xbf   : > { %430 = vadd.xlane.f32.xlu2 %v429_v2  ;;  %425 = vadd.xlane.f32.xlu1 %v424_v3  ;;  %v434_v8 = vadd.f32 %v433_v7, %v432_v6 }
  0xc7   : > { %435 = vadd.xlane.f32.xlu2 %v434_v8 }
  0xdf   : > { %630 = vperm.xlu2 %959, %v626_v9  }
 0x12a   : > { %v421_v20 = vpop.xlane.xlu1 %420 }
 0x12b   : > { %v444_v22 = vmul.f32 %v1114_v19, %v421_v20 }
 0x12d   : > { %v448_v23 = vsel %vm343_vm0, %v444_v22, 0.0 }
 0x12e   : > { %v449_v24 = vrot.slane %v448_v23, 4 }
 0x130   : > { %v450_v26 = vadd.f32 %v449_v24, %v448_v23 }
 0x132   : > { %v451_v27 = vrot.slane %v450_v26, 2  ;;  %v431_v28 = vpop.xlane.xlu2 %430  ;;  %v426_v29 = vpop.xlane.xlu1 %425 }
 0x133   : > { %v446_v31 = vmul.f32 %v1114_v19, %v431_v28  ;;  %v445_v32 = vmul.f32 %v1114_v19, %v426_v29  ;;  %v660_v29 = vld [vmem:[%s259_s11] sm:$0xff] }
 0x134   : > { %v452_v33 = vadd.f32 %v451_v27, %v450_v26 }
 0x135   : > { %v462_v34 = vsel %vm343_vm0, %v446_v31, 0.0  ;;  %v455_v35 = vsel %vm343_vm0, %v445_v32, 0.0  ;;  %v627_v31 = vld [vmem:[%s1111_s8 + $0x8] sm:$0xff] }
 0x136   : > { %v453_v36 = vrot.slane %v452_v33, 1  ;;  %v463_v37 = vrot.slane %v462_v34, 4  ;;  %v456_v38 = vrot.slane %v455_v35, 4 }
 0x138   : > { %v454_v40 = vadd.f32 %v453_v36, %v452_v33  ;;  %v464_v44 = vadd.f32 %v463_v37, %v462_v34  ;;  %v457_v45 = vadd.f32 %v456_v38, %v455_v35 }
 0x13a   : > { %v483_v46 = vmul.f32 %v1122_v39, %v454_v40  ;;  %v465_v47 = vrot.slane %v464_v44, 2  ;;  %v458_v48 = vrot.slane %v457_v45, 2  ;;  %v436_v49 = vpop.xlane.xlu2 %435 }
 0x13b   : > { %v447_v52 = vmul.f32 %v1114_v19, %v436_v49 }
 0x13c   : > { %v1127_v53 = vsub.f32 %v1077_v41, %v483_v46  ;;  %v466_v55 = vadd.f32 %v465_v47, %v464_v44  ;;  %v459_v56 = vadd.f32 %v458_v48, %v457_v45 }
 0x13d   : > { %v469_v57 = vsel %vm343_vm0, %v447_v52, 0.0 }
 0x13e   : > { %v491_v58 = vmul.f32 %v1127_v53, %v1127_v53  ;;  %v467_v59 = vrot.slane %v466_v55, 1  ;;  %v460_v60 = vrot.slane %v459_v56, 1  ;;  %v470_v61 = vrot.slane %v469_v57, 4 }
 0x140   : > { %499 = vst [vmem:[#allocation1] ss:$2 sm:$0xff] %v491_v58  ;;  %v468_v62 = vadd.f32 %v467_v59, %v466_v55  ;;  %v461_v63 = vadd.f32 %v460_v60, %v459_v56  ;;  %v471_v0 = vadd.f32 %v470_v61, %v469_v57 }
 0x142   : > { %v485_v1 = vmul.f32 %v1122_v39, %v468_v62  ;;  %v484_v2 = vmul.f32 %v1122_v39, %v461_v63  ;;  %v472_v41 = vrot.slane %v471_v0, 2  ;;  %v1165_v32 = vpop.permute.xlu2 %630 }
 0x144   : > { %v1135_v3 = vsub.f32 %v1087_v50, %v485_v1  ;;  %v1139_v4 = vsub.f32 %v386_v43, %v484_v2  ;;  %v473_v5 = vadd.f32 %v472_v41, %v471_v0 }
 0x146   : > { %v493_v6 = vmul.f32 %v1135_v3, %v1135_v3  ;;  %v492_v7 = vmul.f32 %v1139_v4, %v1139_v4  ;;  %v474_v8 = vrot.slane %v473_v5, 1 }
 0x147   : > { %v500_v9 = vld.sshfl [vmem:[#allocation1] sm:$0xff pattern:$0x75316420]  ;;  %v501_v10 = vld.sshfl [vmem:[#allocation1 + $0x8] sm:$0xff pattern:$0x75316420] }
 0x148   : > { %507 = vst [vmem:[#allocation1 + $0x20] ss:$2 sm:$0xff] %v493_v6  ;;  %v475_v11 = vadd.f32 %v474_v8, %v473_v5  ;;  %v522_v12 = vsel %vm343_vm0, %v500_v9, 0.0  ;;  %v523_v50 = vsel %vm343_vm0, %v501_v10, 0.0 }
 0x149   : > { %503 = vst [vmem:[#allocation1 + $0x10] ss:$2 sm:$0xff] %v492_v7  ;;  %v524_v42 = vadd.f32 %v523_v50, %v522_v12 }
 0x14a   : > { %v486_v43 = vmul.f32 %v1122_v39, %v475_v11 }
 0x14b   : > { %525 = vadd.xlane.f32.xlu0 %v524_v42 }
 0x14c   : > { %v1150_v13 = vsub.f32 %v389_v54, %v486_v43 }
 0x14e   : > { %v494_v14 = vmul.f32 %v1150_v13, %v1150_v13 }
 0x14f   : > { %v508_v15 = vld.sshfl [vmem:[#allocation1 + $0x20] sm:$0xff pattern:$0x75316420]  ;;  %v509_v16 = vld.sshfl [vmem:[#allocation1 + $0x28] sm:$0xff pattern:$0x75316420] }
 0x150   : > { %511 = vst [vmem:[#allocation1 + $0x30] ss:$2 sm:$0xff] %v494_v14  ;;  %v532_v17 = vsel %vm343_vm0, %v508_v15, 0.0  ;;  %v533_v18 = vsel %vm343_vm0, %v509_v16, 0.0 }
 0x151   : > { %v534_v20 = vadd.f32 %v533_v18, %v532_v17  ;;  %v504_v21 = vld.sshfl [vmem:[#allocation1 + $0x10] sm:$0xff pattern:$0x75316420]  ;;  %v505_v22 = vld.sshfl [vmem:[#allocation1 + $0x18] sm:$0xff pattern:$0x75316420] }
 0x152   : > { %v527_v23 = vsel %vm343_vm0, %v504_v21, 0.0  ;;  %v528_v51 = vsel %vm343_vm0, %v505_v22, 0.0  ;;  %v1000_v18 = vmov 839922192  }
 0x153   : > { %535 = vadd.xlane.f32.xlu2 %v534_v20  ;;  %v529_v54 = vadd.f32 %v528_v51, %v527_v23  ;;  %v637_v20 = vunpack.c.l.s4 %v1000_v18 }
 0x155   : > { %530 = vadd.xlane.f32.xlu1 %v529_v54 }
 0x157   : > { %v512_v24 = vld.sshfl [vmem:[#allocation1 + $0x30] sm:$0xff pattern:$0x75316420]  ;;  %v513_v25 = vld.sshfl [vmem:[#allocation1 + $0x38] sm:$0xff pattern:$0x75316420] }
 0x158   : > { %v537_v26 = vsel %vm343_vm0, %v512_v24, 0.0  ;;  %v538_v27 = vsel %vm343_vm0, %v513_v25, 0.0  ;;  %v638_v24 = vunpack.c.0.s8 %v637_v20 }
 0x159   : > { %v539_v28 = vadd.f32 %v538_v27, %v537_v26 }
 0x15d   : > { %540 = vadd.xlane.f32.xlu1 %v539_v28 }
 0x16b   : > { %664 = vperm.xlu2 %959, %v660_v29  }
 0x173   : > { %668 = vperm.xlu2 %959, %v661_v30  }
 0x176   : > { %634 = vperm.xlu1 %960, %v627_v31  }
 0x1be   : > { %v526_v33 = vpop.xlane.xlu0 %525 }
 0x1bf   : > { %v542_v34 = vmul.f32 %v526_v33, %v1114_v19 }
 0x1c1   : > { %v546_v35 = vsel %vm343_vm0, %v542_v34, 0.0 }
 0x1c2   : > { %v547_v36 = vrot.slane %v546_v35, 4 }
 0x1c4   : > { %v548_v37 = vadd.f32 %v547_v36, %v546_v35  ;;  %v639_v35 = vperm.slane %v1165_v32, %v638_v24 }
 0x1c6   : > { %v549_v38 = vrot.slane %v548_v37, 2  ;;  %v536_v40 = vpop.xlane.xlu2 %535 }
 0x1c7   : > { %v544_v44 = vmul.f32 %v536_v40, %v1114_v19  ;;  %v1001_v40 = vmov 1985246804  }
 0x1c8   : > { %v550_v45 = vadd.f32 %v549_v38, %v548_v37  ;;  %v531_v46 = vpop.xlane.xlu1 %530 }
 0x1c9   : > { %v560_v47 = vsel %vm343_vm0, %v544_v44, 0.0  ;;  %v543_v48 = vmul.f32 %v531_v46, %v1114_v19  ;;  %v641_v44 = vunpack.c.l.s4 %v1001_v40 }
 0x1ca   : > { %v551_v49 = vrot.slane %v550_v45, 1  ;;  %v561_v52 = vrot.slane %v560_v47, 4 }
 0x1cb   : > { %v553_v55 = vsel %vm343_vm0, %v543_v48, 0.0 }
 0x1cc   : > { %v552_v56 = vadd.f32 %v551_v49, %v550_v45  ;;  %v562_v57 = vadd.f32 %v561_v52, %v560_v47  ;;  %v554_v58 = vrot.slane %v553_v55, 4 }
 0x1ce   : > { %v574_v59 = vmul.f32 %v552_v56, %v1122_v39  ;;  %v563_v60 = vrot.slane %v562_v57, 2  ;;  %v555_v61 = vadd.f32 %v554_v58, %v553_v55  ;;  %v665_v27 = vpop.permute.xlu2 %664 }
 0x1cf   : > { %v673_v45 = vperm.slane %v665_v27, %v638_v24 }
 0x1d0   : > { %v578_v62 = vadd.f32 1e-05, %v574_v59  ;;  %v564_v63 = vadd.f32 %v563_v60, %v562_v57  ;;  %v556_v0 = vrot.slane %v555_v61, 2  ;;  %v541_v1 = vpop.xlane.xlu1 %540  ;;  %v642_v57 = vunpack.c.0.s8 %v641_v44 }
 0x1d1   : > { %v545_v2 = vmul.f32 %v541_v1, %v1114_v19 }
 0x1d2   : > { %965 = vrsqrt.f32 %v578_v62  ;;  %v565_v41 = vrot.slane %v564_v63, 1  ;;  %v557_v5 = vadd.f32 %v556_v0, %v555_v61  ;;  %vm588_vm5 = vweird.f32 %v578_v62 }
 0x1d3   : > { %v567_v6 = vsel %vm343_vm0, %v545_v2, 0.0  ;;  %v643_v2 = vperm.slane %v1165_v32, %v642_v57 }
 0x1d4   : > { %v566_v7 = vadd.f32 %v565_v41, %v564_v63  ;;  %v558_v8 = vrot.slane %v557_v5, 1  ;;  %v568_v9 = vrot.slane %v567_v6, 4 }
 0x1d6   : > { %v576_v10 = vmul.f32 %v566_v7, %v1122_v39  ;;  %v559_v11 = vadd.f32 %v558_v8, %v557_v5  ;;  %v569_v12 = vadd.f32 %v568_v9, %v567_v6  ;;  %v669_v61 = vpop.permute.xlu2 %668  ;;  %v677_v9 = vperm.slane %v665_v27, %v642_v57 }
 0x1d7   : > { %v681_v5 = vperm.slane %v669_v61, %v638_v24 }
 0x1d8   : > { %v966_v50 = vpop.eup %965  ;;  %v580_v42 = vadd.f32 1e-05, %v576_v10  ;;  %v575_v43 = vmul.f32 %v559_v11, %v1122_v39  ;;  %v570_v14 = vrot.slane %v569_v12, 2 }
 0x1d9   : > { %v583_v15 = vmul.f32 %v966_v50, %v578_v62  ;;  %vm589_vm4 = vweird.f32 %v966_v50 }
 0x1da   : > { %967 = vrsqrt.f32 %v580_v42  ;;  %v579_v19 = vadd.f32 1e-05, %v575_v43  ;;  %v571_v16 = vadd.f32 %v570_v14, %v569_v12  ;;  %vm590_vm6 = vmor %vm588_vm5, %vm589_vm4  ;;  %vm608_vm9 = vweird.f32 %v580_v42 }
 0x1db   : > { %v584_v17 = vmul.f32 %v966_v50, %v583_v15 }
 0x1dc   : > { %969 = vrsqrt.f32 %v579_v19  ;;  %v572_v21 = vrot.slane %v571_v16, 1  ;;  %vm598_vm11 = vweird.f32 %v579_v19 }
 0x1dd   : > { %v585_v22 = vmul.f32 0.5, %v584_v17 }
 0x1de   : > { %v573_v23 = vadd.f32 %v572_v21, %v571_v16 }
 0x1df   : > { %v586_v51 = vsub.f32 1.5, %v585_v22 }
 0x1e0   : > { %v968_v54 = vpop.eup %967  ;;  %v577_v25 = vmul.f32 %v573_v23, %v1122_v39 }
 0x1e1   : > { %v603_v26 = vmul.f32 %v968_v54, %v580_v42  ;;  %v587_v28 = vmul.f32 %v966_v50, %v586_v51  ;;  %vm609_vm7 = vweird.f32 %v968_v54 }
 0x1e2   : > { %v970_v29 = vpop.eup %969  ;;  %v581_v30 = vadd.f32 1e-05, %v577_v25  ;;  %vm610_vm10 = vmor %vm608_vm9, %vm609_vm7 }
 0x1e3   : > { %v593_v31 = vmul.f32 %v970_v29, %v579_v19  ;;  %v591_v33 = vsel %vm590_vm6, %v966_v50, %v587_v28  ;;  %v604_v34 = vmul.f32 %v968_v54, %v603_v26  ;;  %vm599_vm8 = vweird.f32 %v970_v29 }
 0x1e4   : > { %v622_v36 = vmul.f32 %v591_v33, %v1127_v53  ;;  %971 = vrsqrt.f32 %v581_v30  ;;  %vm600_vm12 = vmor %vm598_vm11, %vm599_vm8  ;;  %vm618_vm14 = vweird.f32 %v581_v30  ;;  %v685_v19 = vperm.slane %v669_v61, %v642_v57 }
 0x1e5   : > { %v594_v37 = vmul.f32 %v970_v29, %v593_v31  ;;  %v605_v38 = vmul.f32 0.5, %v604_v34 }
 0x1e6   : > { %v656_v39 = vmul.f32 %v639_v35, %v622_v36 }
 0x1e7   : > { %v595_v46 = vmul.f32 0.5, %v594_v37  ;;  %v606_v47 = vsub.f32 1.5, %v605_v38 }
 0x1e8   : > { %v1181_v48 = vadd.f32 %v673_v45, %v656_v39  ;;  %v635_v49 = vpop.permute.xlu1 %634 }
 0x1e9   : > { %v596_v52 = vsub.f32 1.5, %v595_v46  ;;  %v607_v55 = vmul.f32 %v968_v54, %v606_v47  ;;  %v647_v58 = vperm.slane %v635_v49, %v638_v24 }
 0x1ea   : > { %v972_v56 = vpop.eup %971  ;;  %v926_v53 = vmul.f32 -1.442695, %v1181_v48 }
 0x1eb   : > { %v597_v59 = vmul.f32 %v970_v29, %v596_v52  ;;  %v613_v60 = vmul.f32 %v972_v56, %v581_v30  ;;  %v611_v62 = vsel %vm610_vm10, %v968_v54, %v607_v55  ;;  %vm619_vm13 = vweird.f32 %v972_v56 }
 0x1ec   : > { %973 = vpow2.f32 %v926_v53  ;;  %v624_v63 = vmul.f32 %v611_v62, %v1135_v3  ;;  %vm620_vm15 = vmor %vm618_vm14, %vm619_vm13 }
 0x1ed   : > { %v601_v0 = vsel %vm600_vm12, %v970_v29, %v597_v59  ;;  %v614_v1 = vmul.f32 %v972_v56, %v613_v60 }
 0x1ee   : > { %v623_v41 = vmul.f32 %v601_v0, %v1139_v4  ;;  %v658_v6 = vmul.f32 %v647_v58, %v624_v63  ;;  %v651_v4 = vperm.slane %v635_v49, %v642_v57 }
 0x1ef   : > { %v615_v7 = vmul.f32 0.5, %v614_v1 }
 0x1f0   : > { %v657_v8 = vmul.f32 %v643_v2, %v623_v41  ;;  %v1187_v10 = vadd.f32 %v681_v5, %v658_v6 }
 0x1f1   : > { %v616_v11 = vsub.f32 1.5, %v615_v7 }
 0x1f2   : > { %v974_v12 = vpop.eup %973  ;;  %v1189_v50 = vadd.f32 %v677_v9, %v657_v8  ;;  %v928_v3 = vmul.f32 -1.442695, %v1187_v10 }
 0x1f3   : > { %v706_v42 = vadd.f32 1.0, %v974_v12  ;;  %v617_v43 = vmul.f32 %v972_v56, %v616_v11 }
 0x1f4   : > { %v927_v32 = vmul.f32 -1.442695, %v1189_v50  ;;  %975 = vpow2.f32 %v928_v3 }
 0x1f5   : > { %977 = vrcp.f32 %v706_v42  ;;  %v621_v14 = vsel %vm620_vm15, %v972_v56, %v617_v43  ;;  %v721_v25 = vand.u32 2147483648, %v706_v42  ;;  %v719_v27 = vand.u32 2147483647, %v706_v42 }
 0x1f6   : > { %979 = vpow2.f32 %v927_v32  ;;  %v625_v15 = vmul.f32 %v621_v14, %v1150_v13  ;;  %vm715_vm1 = vweird.f32 %v706_v42 }
 0x1f7   : > { %v722_v29 = vor.u32 1.1754944e-38, %v721_v25  ;;  %vm720_vm3 = vcmp.eq.f32.partialorder %v719_v27, 8.507059e+37 }
 0x1f8   : > { %v659_v16 = vmul.f32 %v651_v4, %v625_v15 }
 0x1fa   : > { %v976_v17 = vpop.eup %975  ;;  %v1194_v20 = vadd.f32 %v685_v19, %v659_v16 }
 0x1fb   : > { %v978_v18 = vpop.eup %977  ;;  %v708_v21 = vadd.f32 1.0, %v976_v17 }
 0x1fc   : > { %v980_v22 = vpop.eup %979  ;;  %v711_v23 = vmul.f32 %v978_v18, %v706_v42  ;;  %v929_v54 = vmul.f32 -1.442695, %v1194_v20  ;;  %vm716_vm0 = vweird.f32 %v978_v18 }
 0x1fd   : > { %v707_v51 = vadd.f32 1.0, %v980_v22  ;;  %981 = vrcp.f32 %v708_v21  ;;  %vm717_vm2 = vmor %vm715_vm1, %vm716_vm0  ;;  %v751_v44 = vand.u32 2147483648, %v708_v21  ;;  %v749_v46 = vand.u32 2147483647, %v708_v21 }
 0x1fe   : > { %v712_v24 = vsub.f32 1.0, %v711_v23  ;;  %vm745_vm5 = vweird.f32 %v708_v21 }
 0x1ff   : > { %983 = vrcp.f32 %v707_v51  ;;  %v736_v47 = vand.u32 2147483648, %v707_v51  ;;  %v734_v52 = vand.u32 2147483647, %v707_v51  ;;  %v752_v56 = vor.u32 1.1754944e-38, %v751_v44 }
 0x200   : > { %v713_v26 = vmul.f32 %v978_v18, %v712_v24  ;;  %985 = vpow2.f32 %v929_v54  ;;  %vm730_vm8 = vweird.f32 %v707_v51  ;;  %vm750_vm9 = vcmp.eq.f32.partialorder %v749_v46, 8.507059e+37 }
 0x201   : > { %v737_v53 = vor.u32 1.1754944e-38, %v736_v47  ;;  %vm735_vm11 = vcmp.eq.f32.partialorder %v734_v52, 8.507059e+37 }
 0x202   : > { %v714_v13 = vadd.f32 %v978_v18, %v713_v26 }
 0x203   : > { %v982_v28 = vpop.eup %981 }
 0x204   : > { %v718_v30 = vsel %vm717_vm2, %v978_v18, %v714_v13  ;;  %v741_v31 = vmul.f32 %v982_v28, %v708_v21  ;;  %vm746_vm4 = vweird.f32 %v982_v28 }
 0x205   : > { %v984_v33 = vpop.eup %983  ;;  %v723_v34 = vsel %vm720_vm3, %v722_v29, %v718_v30  ;;  %vm747_vm7 = vmor %vm745_vm5, %vm746_vm4 }
 0x206   : > { %v986_v35 = vpop.eup %985  ;;  %v726_v36 = vmul.f32 %v984_v33, %v707_v51  ;;  %v770_v37 = vmul.f32 %v723_v34, %v1181_v48  ;;  %v742_v38 = vsub.f32 1.0, %v741_v31  ;;  %vm731_vm6 = vweird.f32 %v984_v33 }
 0x207   : > { %v709_v40 = vadd.f32 1.0, %v986_v35  ;;  %vm732_vm10 = vmor %vm730_vm8, %vm731_vm6 }
 0x208   : > { %v727_v39 = vsub.f32 1.0, %v726_v36  ;;  %778 = vst [vmem:[#allocation1] ss:$2 sm:$0xff] %v770_v37  ;;  %v743_v45 = vmul.f32 %v982_v28, %v742_v38 }
 0x209   : > { %987 = vrcp.f32 %v709_v40  ;;  %v766_v2 = vand.u32 2147483648, %v709_v40  ;;  %v764_v5 = vand.u32 2147483647, %v709_v40  ;;  %vm760_vm13 = vweird.f32 %v709_v40 }
 0x20a   : > { %v728_v49 = vmul.f32 %v984_v33, %v727_v39  ;;  %v744_v55 = vadd.f32 %v982_v28, %v743_v45 }
 0x20b   : > { %v767_v7 = vor.u32 1.1754944e-38, %v766_v2  ;;  %vm765_vm15 = vcmp.eq.f32.partialorder %v764_v5, 8.507059e+37 }
 0x20c   : > { %v729_v57 = vadd.f32 %v984_v33, %v728_v49  ;;  %v748_v48 = vsel %vm747_vm7, %v982_v28, %v744_v55 }
 0x20d   : > { %v753_v58 = vsel %vm750_vm9, %v752_v56, %v748_v48 }
 0x20e   : > { %v733_v59 = vsel %vm732_vm10, %v984_v33, %v729_v57  ;;  %v772_v60 = vmul.f32 %v753_v58, %v1187_v10 }
 0x20f   : > { %v988_v61 = vpop.eup %987  ;;  %v738_v62 = vsel %vm735_vm11, %v737_v53, %v733_v59 }
 0x210   : > { %v771_v63 = vmul.f32 %v738_v62, %v1189_v50  ;;  %v756_v0 = vmul.f32 %v988_v61, %v709_v40  ;;  %782 = vst [vmem:[#allocation1 + $0x10] ss:$2 sm:$0xff] %v772_v60  ;;  %vm761_vm12 = vweird.f32 %v988_v61 }
 0x211   : > { %vm762_vm14 = vmor %vm760_vm13, %vm761_vm12 }
 0x212   : > { %780 = vst [vmem:[#allocation1 + $0x1] ss:$2 sm:$0xff] %v771_v63  ;;  %v757_v1 = vsub.f32 1.0, %v756_v0 }
 0x214   : > { %v758_v41 = vmul.f32 %v988_v61, %v757_v1 }
 0x216   : > { %v759_v6 = vadd.f32 %v988_v61, %v758_v41 }
 0x218   : > { %v763_v8 = vsel %vm762_vm14, %v988_v61, %v759_v6 }
 0x219   : > { %v785_v9 = vld.sshfl [vmem:[#allocation1] sm:$0xff pattern:$0x75316420]  ;;  %v786_v10 = vld.sshfl [vmem:[#allocation1 + $0x8] sm:$0xff pattern:$0x75316420]  ;;  %v768_v11 = vsel %vm765_vm15, %v767_v7, %v763_v8 }
 0x21a   : > { %v793_v12 = vpack.c.bf16 %v786_v10, %v785_v9  ;;  %v773_v50 = vmul.f32 %v768_v11, %v1194_v20 }
 0x21c   : > { %795 = vst [vmem:[%s264_s14] sm:$0xff] %v793_v12 }
 0x21d   : > { %784 = vst [vmem:[#allocation1 + $0x11] ss:$2 sm:$0xff] %v773_v50 }
 0x224   : > { %v787_v3 = vld.sshfl [vmem:[#allocation1 + $0x10] sm:$0xff pattern:$0x75316420]  ;;  %v788_v42 = vld.sshfl [vmem:[#allocation1 + $0x18] sm:$0xff pattern:$0x75316420] }
 0x225   : > { %v794_v43 = vpack.c.bf16 %v788_v42, %v787_v3 }
 0x227   : > { %796 = vst [vmem:[%s264_s14 + $0x8] sm:$0xff] %v794_v43 }
 0x228 PF: > { %s15_s18 = sadd.s32 1, %s995_s18  }
 0x229   : > { %p12_p4 = scmp.ge.s32.totalorder %s15_s18, 4  }
 0x22b   :  { %14 = sbr.rel (!%p12_p4) target bundleno = 1 (0x1), region = 85 }

// kernel: unet_block_forward.8
= control target key start
LH: loop header
LB: loop body
LE: loop exit
PB: predicated region body
PF: predicated region fallthrough
CT: control target
= control target key end

     0   :  { %s1365_s30 = smov 0   ;;  %s1604_s0 = inlined_call_operand.vmem [shape: bf16[2,144,256], index: 0, kind: input, shape index: {}]   ;;  %s1605_s1 = inlined_call_operand.vmem [shape: bf16[16,144], index: 1, kind: input, shape index: {}]   ;;  %s1606_s2 = inlined_call_operand.vmem [shape: f32[16,1], index: 2, kind: input, shape index: {}]   ;;  %s1607_s3 = inlined_call_operand.vmem [shape: f32[2,16,256], index: 3, kind: input, shape index: {}]   ;;  %s1608_s4 = inlined_call_operand.vmem [shape: f32[16,1], index: 4, kind: input, shape index: {}]   ;;  %s1609_s5 = inlined_call_operand.vmem [shape: f32[16,1], index: 5, kind: input, shape index: {}]   ;;  %s1610_s6 = inlined_call_operand.vmem [shape: bf16[48,16], index: 6, kind: input, shape index: {}]   ;;  %s1611_s7 = inlined_call_operand.vmem [shape: f32[48,1], index: 7, kind: input, shape index: {}]   ;;  %s1612_s8 = inlined_call_operand.vmem [shape: f32[2,16,256], index: 8, kind: output, shape index: {0}]   ;;  %s1613_s9 = inlined_call_operand.vmem [shape: f32[2,48,256], index: 9, kind: output, shape index: {1}]  }
   0x1 LB: > { %s1134_s10 = sadd.s32 4294967295, %s1308_s30   ;;  %p1138_p0 = scmp.ge.s32.totalorder %s1308_s30, 1  ;;  %s1308_s30 = sphi %s1365_s30, %s20_s30  }
   0x2   : > { %p300_p1 = scmp.lt.s32.totalorder %s1308_s30, 3 }
   0x4   : > { %p301_p2 = pnand %p1138_p0, %p300_p1 }
   0x5   : > { %p346_p3 = scmp.lt.s32.totalorder (!%p301_p2), %s1134_s10, 1 }
   0x6   : > { %304 = sbr.rel (%p301_p2) target bundleno = 729 (0x2d9), region = 52 }
   0xb   : > { %s1615_s10 = smov (!%p346_p3, %s1134_s10), 1  ;;  %v387_v26 = vld [vmem:[%s1606_s2] sm:$0xff]  ;;  %v1310_v29 = vmov 0   ;;  %v388_v37 = vld [vmem:[%s1606_s2 + $0x8] sm:$0xff]  ;;  %vm498_vm0 = vcmask 130048   ;;  %vm576_vm1 = vcmask 1043456  }
   0xc   : > { %s1272_s11 = smul.u32 144, %s1615_s10  ;;  %1287 = vset.pattern.permute.xlu0 %v1310_v29  ;;  %1288 = vset.pattern.permute.xlu2 %v1310_v29  ;;  %v1147_v54 = vld [vmem:[%s1605_s1] sm:$0xf]  ;;  %v1250_v55 = vld [vmem:[%s1605_s1 + $0x4] sm:$0xf0]  ;;  %s1247_s27 = sshll.u32 %s1615_s10, 5 }
   0xd   : > { %391 = vperm.xlu0 %1287, %v387_v26   ;;  %1289 = vset.pattern.permute.xlu1 %v1310_v29  ;;  %v1148_v59 = vor.u32 %v1250_v55, %v1147_v54  ;;  %v1249_v60 = vld [vmem:[%s1605_s1 + $0x4] sm:$0xf]  ;;  %v1149_v61 = vld [vmem:[%s1605_s1 + $0x8] sm:$0xf0]  ;;  %v1311_v54 = vmov 256.0   ;;  %s1273_s22 = smul.u32 96, %s1615_s10 }
   0xe   : > { %s1379_s14 = scalar_lea.vmem %s1604_s0, %s1272_s11  ;;  %v1152_v62 = vor.u32 %v1249_v60, %v1149_v61  ;;  %s355_s11 = scalar_lea.vmem %s1607_s3, %s1247_s27  ;;  %1290 = vrcp.f32 %v1311_v54 }
   0xf   : > { %v1211_v0 = vld [vmem:[%s1379_s14 + $0x70] sm:$0xf]  ;;  %v1266_v1 = vld [vmem:[%s1379_s14 + $0x74] sm:$0xf0]  ;;  %v1265_v2 = vld [vmem:[%s1379_s14 + $0x74] sm:$0xf]  ;;  %s1587_s25 = scalar_lea.vmem %s1613_s9, %s1273_s22 }
  0x10   : > { %v1212_v3 = vor.u32 %v1266_v1, %v1211_v0  ;;  %v1213_v4 = vld [vmem:[%s1379_s14 + $0x78] sm:$0xf0]  ;;  %v1203_v5 = vld [vmem:[%s1379_s14 + $0x60] sm:$0xf]  ;;  %v1264_v6 = vld [vmem:[%s1379_s14 + $0x64] sm:$0xf0] }
  0x11   : > { %v1216_v7 = vor.u32 %v1265_v2, %v1213_v4  ;;  %v1263_v8 = vld [vmem:[%s1379_s14 + $0x64] sm:$0xf]  ;;  %v1205_v9 = vld [vmem:[%s1379_s14 + $0x68] sm:$0xf0]  ;;  %v1204_v10 = vor.u32 %v1264_v6, %v1203_v5  ;;  %v1195_v12 = vld [vmem:[%s1379_s14 + $0x50] sm:$0xf] }
  0x12   : > { %502 = vmatpush.bf16.msra.mxu0 %v1212_v3  ;;  %v1208_v11 = vor.u32 %v1263_v8, %v1205_v9  ;;  %v1262_v13 = vld [vmem:[%s1379_s14 + $0x54] sm:$0xf0]  ;;  %v1261_v14 = vld [vmem:[%s1379_s14 + $0x54] sm:$0xf]  ;;  %v1197_v15 = vld [vmem:[%s1379_s14 + $0x58] sm:$0xf0] }
  0x13   : > { %530 = vmatpush.bf16.msra.mxu2 %v1216_v7  ;;  %v1196_v16 = vor.u32 %v1262_v13, %v1195_v12  ;;  %v1200_v17 = vor.u32 %v1261_v14, %v1197_v15  ;;  %v1187_v18 = vld [vmem:[%s1379_s14 + $0x40] sm:$0xf]  ;;  %v1260_v19 = vld [vmem:[%s1379_s14 + $0x44] sm:$0xf0]  ;;  %v1259_v20 = vld [vmem:[%s1379_s14 + $0x44] sm:$0xf] }
  0x14   : > { %v1189_v21 = vld [vmem:[%s1379_s14 + $0x48] sm:$0xf0]  ;;  %v1188_v22 = vor.u32 %v1260_v19, %v1187_v18  ;;  %v1179_v24 = vld [vmem:[%s1379_s14 + $0x30] sm:$0xf]  ;;  %v1258_v25 = vld [vmem:[%s1379_s14 + $0x34] sm:$0xf0]  ;;  %v1291_v55 = vpop.eup %1290 }
  0x15   : > { %v1192_v23 = vor.u32 %v1259_v20, %v1189_v21  ;;  %v1257_v27 = vld [vmem:[%s1379_s14 + $0x34] sm:$0xf]  ;;  %v1181_v28 = vld [vmem:[%s1379_s14 + $0x38] sm:$0xf0]  ;;  %v1180_v30 = vor.u32 %v1258_v25, %v1179_v24  ;;  %v1171_v32 = vld [vmem:[%s1379_s14 + $0x20] sm:$0xf]  ;;  %396 = vperm.xlu0 %1287, %v388_v37   ;;  %vm635_vm2 = vweird.f32 %v1291_v55 }
  0x16   : > { %503 = vmatpush.bf16.msra.mxu0 %v1204_v10  ;;  %v1184_v31 = vor.u32 %v1257_v27, %v1181_v28  ;;  %v1256_v33 = vld [vmem:[%s1379_s14 + $0x24] sm:$0xf0]  ;;  %v1255_v34 = vld [vmem:[%s1379_s14 + $0x24] sm:$0xf]  ;;  %v1173_v35 = vld [vmem:[%s1379_s14 + $0x28] sm:$0xf0] }
  0x17   : > { %531 = vmatpush.bf16.msra.mxu2 %v1208_v11  ;;  %v1172_v36 = vor.u32 %v1256_v33, %v1171_v32  ;;  %v1176_v38 = vor.u32 %v1255_v34, %v1173_v35  ;;  %v1163_v39 = vld [vmem:[%s1379_s14 + $0x10] sm:$0xf]  ;;  %v1254_v40 = vld [vmem:[%s1379_s14 + $0x14] sm:$0xf0]  ;;  %v1253_v41 = vld [vmem:[%s1379_s14 + $0x14] sm:$0xf] }
  0x18   : > { %v1165_v42 = vld [vmem:[%s1379_s14 + $0x18] sm:$0xf0]  ;;  %v1164_v43 = vor.u32 %v1254_v40, %v1163_v39  ;;  %v1155_v45 = vld [vmem:[%s1379_s14] sm:$0xf]  ;;  %v1252_v46 = vld [vmem:[%s1379_s14 + $0x4] sm:$0xf0] }
  0x19   : > { %v1168_v44 = vor.u32 %v1253_v41, %v1165_v42  ;;  %v1251_v47 = vld [vmem:[%s1379_s14 + $0x4] sm:$0xf]  ;;  %v1157_v48 = vld [vmem:[%s1379_s14 + $0x8] sm:$0xf0]  ;;  %v1219_v49 = vld [vmem:[%s1379_s14 + $0x80] sm:$0xf]  ;;  %v1156_v53 = vor.u32 %v1252_v46, %v1155_v45 }
  0x1a   : > { %504 = vmatpush.bf16.msra.mxu0 %v1196_v16  ;;  %v1268_v50 = vld [vmem:[%s1379_s14 + $0x84] sm:$0xf0]  ;;  %v1267_v51 = vld [vmem:[%s1379_s14 + $0x84] sm:$0xf]  ;;  %v1221_v52 = vld [vmem:[%s1379_s14 + $0x88] sm:$0xf0]  ;;  %v1160_v56 = vor.u32 %v1251_v47, %v1157_v48  ;;  %s360_s14 = scalar_lea.vmem %s1612_s8, %s1247_s27 }
  0x1b   : > { %532 = vmatpush.bf16.msra.mxu2 %v1200_v17  ;;  %v1220_v57 = vor.u32 %v1268_v50, %v1219_v49  ;;  %v1224_v58 = vor.u32 %v1267_v51, %v1221_v52  ;;  %v558_v6 = vld [vmem:[%s355_s11] sm:$0xff]  ;;  %v559_v13 = vld [vmem:[%s355_s11 + $0x8] sm:$0xff]  ;;  %v560_v16 = vld [vmem:[%s355_s11 + $0x10] sm:$0xff] }
  0x1c   : > { %v561_v26 = vld [vmem:[%s355_s11 + $0x18] sm:$0xff] }
  0x1e   : > { %505 = vmatpush.bf16.msra.mxu0 %v1188_v22 }
  0x1f   : > { %533 = vmatpush.bf16.msra.mxu2 %v1192_v23 }
  0x22   : > { %506 = vmatpush.bf16.msra.mxu0 %v1180_v30 }
  0x23   : > { %534 = vmatpush.bf16.msra.mxu2 %v1184_v31 }
  0x26   : > { %507 = vmatpush.bf16.msra.mxu0 %v1172_v36 }
  0x27   : > { %535 = vmatpush.bf16.msra.mxu2 %v1176_v38 }
  0x2a   : > { %508 = vmatpush.bf16.msra.mxu0 %v1164_v43 }
  0x2b   : > { %536 = vmatpush.bf16.msra.mxu2 %v1168_v44 }
  0x2e   : > { %509 = vmatpush.bf16.msra.mxu0 %v1156_v53  ;;  %v819_v53 = vld [vmem:[%s1608_s4] sm:$0xff] }
  0x2f   : > { %537 = vmatpush.bf16.msra.mxu2 %v1160_v56  ;;  %v631_v56 = vmul.f32 256.0, %v1291_v55 }
  0x31   : > { %510 = vmatmul.bf16.vlgmr.msra.gmra.mxu0 %v1148_v59 }
  0x32   : > { %523 = vmatpush.bf16.msrb.mxu0 %v1220_v57  ;;  %538 = vmatmul.bf16.vlgmr.msra.gmra.mxu2 %v1148_v59  ;;  %v632_v57 = vsub.f32 1.0, %v631_v56 }
  0x33   : > { %551 = vmatpush.bf16.msrb.mxu2 %v1224_v58  ;;  %v1312_v58 = vmov 4.0  }
  0x34   : > { %1292 = vrcp.f32 %v1312_v58  ;;  %v633_v59 = vmul.f32 %v1291_v55, %v632_v57 }
  0x36   : > { %v634_v61 = vadd.f32 %v1291_v55, %v633_v59 }
  0x3a   : > { %v1293_v60 = vpop.eup %1292 }
  0x3b   : > { %vm674_vm3 = vweird.f32 %v1293_v60 }
  0x41   : > { %1225 = vmatmul.msk.bf16.vlgmr.msrb.gmra.mxu0 %vm498_vm0, %v1152_v62 }
  0x42   : > { %1226 = vmatmul.msk.bf16.vlgmr.msrb.gmra.mxu2 %vm498_vm0, %v1152_v62  ;;  %v670_v62 = vmul.f32 4.0, %v1293_v60 }
  0x7f   : > { %v392_v2 = vpop.permute.xlu0 %391 }
  0x87   : > { %v397_v9 = vpop.permute.xlu0 %396 }
  0xae   : > { %v511_v63 = vpop.f32.mrf.mxu0 }
  0xaf   : > { %v512_v3 = vadd.f32 %v511_v63, %v392_v2  ;;  %v1475_v63 = vsel %vm635_vm2, %v1291_v55, %v634_v61 }
  0xb5   : > { %v539_v0 = vpop.f32.mrf.mxu2 }
  0xb6   : > { %v513_v1 = vpop.f32.mrf.mxu0  ;;  %v540_v10 = vadd.f32 %v539_v0, %v392_v2 }
  0xb7   : > { %v514_v11 = vadd.f32 %v513_v1, %v397_v9  ;;  %v671_v1 = vsub.f32 1.0, %v670_v62 }
  0xbd   : > { %v541_v4 = vpop.f32.mrf.mxu2 }
  0xbe   : > { %v525_v5 = vpop.f32.mrf.mxu0  ;;  %v542_v21 = vadd.f32 %v541_v4, %v397_v9 }
  0xbf   : > { %v526_v7 = vadd.f32 %v525_v5, %v512_v3  ;;  %v672_v5 = vmul.f32 %v1293_v60, %v671_v1 }
  0xc1   : > { %v562_v8 = vadd.f32 %v558_v6, %v526_v7 }
  0xc3   : > { %566 = vst [vmem:[%s360_s14] sm:$0xff] %v562_v8 }
  0xc5   : > { %v553_v12 = vpop.f32.mrf.mxu2 }
  0xc6   : > { %v554_v14 = vadd.f32 %v553_v12, %v540_v10  ;;  %v527_v15 = vpop.f32.mrf.mxu0  ;;  %v673_v10 = vadd.f32 %v1293_v60, %v672_v5 }
  0xc7   : > { %v528_v17 = vadd.f32 %v527_v15, %v514_v11 }
  0xc8   : > { %v563_v18 = vadd.f32 %v559_v13, %v554_v14 }
  0xc9   : > { %v564_v19 = vadd.f32 %v560_v16, %v528_v17 }
  0xca   : > { %567 = vst [vmem:[%s360_s14 + $0x8] sm:$0xff] %v563_v18  ;;  %v574_v20 = vrot.slane %v563_v18, 4 }
  0xcb   : > { %568 = vst [vmem:[%s360_s14 + $0x10] sm:$0xff] %v564_v19 }
  0xcc   : > { %v1445_v22 = vsel %vm576_vm1, %v562_v8, %v574_v20  ;;  %v1448_v23 = vsel %vm576_vm1, %v574_v20, %v562_v8 }
  0xcd   : > { %v579_v24 = vrot.slane %v1448_v23, 4  ;;  %587 = vst [vmem:[#allocation1] ss:$2 sm:$0xff] %v1445_v22  ;;  %v555_v25 = vpop.f32.mrf.mxu2 }
  0xce   : > { %v556_v27 = vadd.f32 %v555_v25, %v542_v21 }
  0xcf   : > { %591 = vst [vmem:[#allocation1 + $0x10] ss:$2 sm:$0xff] %v579_v24 }
  0xd0   : > { %v565_v28 = vadd.f32 %v561_v26, %v556_v27 }
  0xd2   : > { %569 = vst [vmem:[%s360_s14 + $0x18] sm:$0xff] %v565_v28  ;;  %v575_v29 = vrot.slane %v565_v28, 4 }
  0xd4   : > { %v1455_v30 = vsel %vm576_vm1, %v564_v19, %v575_v29  ;;  %v1458_v31 = vsel %vm576_vm1, %v575_v29, %v564_v19  ;;  %v588_v32 = vld.sshfl [vmem:[#allocation1] sm:$0xff pattern:$0x75316420]  ;;  %v589_v33 = vld.sshfl [vmem:[#allocation1 + $0x8] sm:$0xff pattern:$0x75316420]  ;;  %v1483_v19 = vsel %vm674_vm3, %v1293_v60, %v673_v10 }
  0xd5   : > { %v582_v34 = vrot.slane %v1458_v31, 4  ;;  %595 = vst [vmem:[#allocation1 + $0x20] ss:$2 sm:$0xff] %v1455_v30  ;;  %v610_v35 = vsel %vm576_vm1, %v588_v32, 0.0  ;;  %v611_v36 = vsel %vm576_vm1, %v589_v33, 0.0  ;;  %v853_v10 = vld [vmem:[%s1609_s5] sm:$0xff] }
  0xd6   : > { %v612_v37 = vadd.f32 %v611_v36, %v610_v35  ;;  %v592_v38 = vld.sshfl [vmem:[#allocation1 + $0x10] sm:$0xff pattern:$0x75316420]  ;;  %v593_v39 = vld.sshfl [vmem:[#allocation1 + $0x18] sm:$0xff pattern:$0x75316420] }
  0xd7   : > { %599 = vst [vmem:[#allocation1 + $0x30] ss:$2 sm:$0xff] %v582_v34  ;;  %v615_v40 = vsel %vm576_vm1, %v592_v38, 0.0  ;;  %v616_v41 = vsel %vm576_vm1, %v593_v39, 0.0 }
  0xd8   : > { %613 = vadd.xlane.f32.xlu1 %v612_v37  ;;  %v617_v47 = vadd.f32 %v616_v41, %v615_v40 }
  0xdc   : > { %v596_v42 = vld.sshfl [vmem:[#allocation1 + $0x20] sm:$0xff pattern:$0x75316420]  ;;  %v597_v43 = vld.sshfl [vmem:[#allocation1 + $0x28] sm:$0xff pattern:$0x75316420] }
  0xdd   : > { %v620_v44 = vsel %vm576_vm1, %v596_v42, 0.0  ;;  %v621_v45 = vsel %vm576_vm1, %v597_v43, 0.0 }
  0xde   : > { %v622_v46 = vadd.f32 %v621_v45, %v620_v44  ;;  %v600_v48 = vld.sshfl [vmem:[#allocation1 + $0x30] sm:$0xff pattern:$0x75316420]  ;;  %v601_v49 = vld.sshfl [vmem:[#allocation1 + $0x38] sm:$0xff pattern:$0x75316420] }
  0xdf   : > { %v625_v50 = vsel %vm576_vm1, %v600_v48, 0.0  ;;  %v626_v51 = vsel %vm576_vm1, %v601_v49, 0.0 }
  0xe0   : > { %623 = vadd.xlane.f32.xlu2 %v622_v46  ;;  %618 = vadd.xlane.f32.xlu1 %v617_v47  ;;  %v627_v52 = vadd.f32 %v626_v51, %v625_v50 }
  0xe8   : > { %628 = vadd.xlane.f32.xlu2 %v627_v52 }
 0x100   : > { %823 = vperm.xlu2 %1288, %v819_v53  }
 0x14b   : > { %v614_v0 = vpop.xlane.xlu1 %613 }
 0x14c   : > { %v637_v2 = vmul.f32 %v1475_v63, %v614_v0 }
 0x14e   : > { %v641_v3 = vsel %vm576_vm1, %v637_v2, 0.0 }
 0x14f   : > { %v642_v4 = vrot.slane %v641_v3, 4 }
 0x151   : > { %v643_v6 = vadd.f32 %v642_v4, %v641_v3 }
 0x153   : > { %v644_v7 = vrot.slane %v643_v6, 2  ;;  %v624_v8 = vpop.xlane.xlu2 %623  ;;  %v619_v9 = vpop.xlane.xlu1 %618 }
 0x154   : > { %v639_v11 = vmul.f32 %v1475_v63, %v624_v8  ;;  %v638_v12 = vmul.f32 %v1475_v63, %v619_v9  ;;  %v915_v9 = vld [vmem:[%s1611_s7 + $0x8] sm:$0xff] }
 0x155   : > { %v645_v13 = vadd.f32 %v644_v7, %v643_v6 }
 0x156   : > { %v655_v14 = vsel %vm576_vm1, %v639_v11, 0.0  ;;  %v648_v15 = vsel %vm576_vm1, %v638_v12, 0.0  ;;  %v854_v11 = vld [vmem:[%s1609_s5 + $0x8] sm:$0xff] }
 0x157   : > { %v646_v16 = vrot.slane %v645_v13, 1  ;;  %v656_v17 = vrot.slane %v655_v14, 4  ;;  %v649_v18 = vrot.slane %v648_v15, 4  ;;  %v820_v12 = vld [vmem:[%s1608_s4 + $0x8] sm:$0xff] }
 0x159   : > { %v647_v20 = vadd.f32 %v646_v16, %v645_v13  ;;  %v657_v21 = vadd.f32 %v656_v17, %v655_v14  ;;  %v650_v25 = vadd.f32 %v649_v18, %v648_v15  ;;  %v916_v13 = vld [vmem:[%s1611_s7 + $0x10] sm:$0xff]  ;;  %v914_v14 = vld [vmem:[%s1611_s7] sm:$0xff]  ;;  %v917_v16 = vld [vmem:[%s1611_s7 + $0x18] sm:$0xff] }
 0x15a   : > { %v918_v15 = vld [vmem:[%s1611_s7 + $0x20] sm:$0xff]  ;;  %v919_v17 = vld [vmem:[%s1611_s7 + $0x28] sm:$0xff] }
 0x15b   : > { %v676_v26 = vmul.f32 %v1483_v19, %v647_v20  ;;  %v658_v27 = vrot.slane %v657_v21, 2  ;;  %v651_v28 = vrot.slane %v650_v25, 2  ;;  %v629_v29 = vpop.xlane.xlu2 %628 }
 0x15c   : > { %v640_v32 = vmul.f32 %v1475_v63, %v629_v29 }
 0x15d   : > { %v1488_v33 = vsub.f32 %v1445_v22, %v676_v26  ;;  %v659_v35 = vadd.f32 %v658_v27, %v657_v21  ;;  %v652_v36 = vadd.f32 %v651_v28, %v650_v25 }
 0x15e   : > { %v662_v37 = vsel %vm576_vm1, %v640_v32, 0.0 }
 0x15f   : > { %v684_v38 = vmul.f32 %v1488_v33, %v1488_v33  ;;  %v660_v39 = vrot.slane %v659_v35, 1  ;;  %v653_v40 = vrot.slane %v652_v36, 1  ;;  %v663_v41 = vrot.slane %v662_v37, 4 }
 0x161   : > { %692 = vst [vmem:[#allocation1] ss:$2 sm:$0xff] %v684_v38  ;;  %v661_v42 = vadd.f32 %v660_v39, %v659_v35  ;;  %v654_v43 = vadd.f32 %v653_v40, %v652_v36  ;;  %v664_v44 = vadd.f32 %v663_v41, %v662_v37 }
 0x163   : > { %v678_v45 = vmul.f32 %v1483_v19, %v661_v42  ;;  %v677_v46 = vmul.f32 %v1483_v19, %v654_v43  ;;  %v665_v22 = vrot.slane %v664_v44, 2  ;;  %v1548_v18 = vpop.permute.xlu2 %823 }
 0x165   : > { %v1496_v47 = vsub.f32 %v1455_v30, %v678_v45  ;;  %v1500_v48 = vsub.f32 %v579_v24, %v677_v46  ;;  %v666_v49 = vadd.f32 %v665_v22, %v664_v44 }
 0x167   : > { %v686_v50 = vmul.f32 %v1496_v47, %v1496_v47  ;;  %v685_v51 = vmul.f32 %v1500_v48, %v1500_v48  ;;  %v667_v52 = vrot.slane %v666_v49, 1 }
 0x168   : > { %v693_v53 = vld.sshfl [vmem:[#allocation1] sm:$0xff pattern:$0x75316420]  ;;  %v694_v54 = vld.sshfl [vmem:[#allocation1 + $0x8] sm:$0xff pattern:$0x75316420] }
 0x169   : > { %700 = vst [vmem:[#allocation1 + $0x20] ss:$2 sm:$0xff] %v686_v50  ;;  %v668_v55 = vadd.f32 %v667_v52, %v666_v49  ;;  %v715_v56 = vsel %vm576_vm1, %v693_v53, 0.0  ;;  %v716_v30 = vsel %vm576_vm1, %v694_v54, 0.0 }
 0x16a   : > { %696 = vst [vmem:[#allocation1 + $0x10] ss:$2 sm:$0xff] %v685_v51  ;;  %v717_v23 = vadd.f32 %v716_v30, %v715_v56 }
 0x16b   : > { %v679_v24 = vmul.f32 %v1483_v19, %v668_v55 }
 0x16c   : > { %718 = vadd.xlane.f32.xlu0 %v717_v23 }
 0x16d   : > { %v1511_v57 = vsub.f32 %v582_v34, %v679_v24 }
 0x16f   : > { %v687_v58 = vmul.f32 %v1511_v57, %v1511_v57 }
 0x170   : > { %v701_v59 = vld.sshfl [vmem:[#allocation1 + $0x20] sm:$0xff pattern:$0x75316420]  ;;  %v702_v60 = vld.sshfl [vmem:[#allocation1 + $0x28] sm:$0xff pattern:$0x75316420] }
 0x171   : > { %704 = vst [vmem:[#allocation1 + $0x30] ss:$2 sm:$0xff] %v687_v58  ;;  %v725_v61 = vsel %vm576_vm1, %v701_v59, 0.0  ;;  %v726_v62 = vsel %vm576_vm1, %v702_v60, 0.0 }
 0x172   : > { %v727_v0 = vadd.f32 %v726_v62, %v725_v61  ;;  %v697_v1 = vld.sshfl [vmem:[#allocation1 + $0x10] sm:$0xff pattern:$0x75316420]  ;;  %v698_v2 = vld.sshfl [vmem:[#allocation1 + $0x18] sm:$0xff pattern:$0x75316420] }
 0x173   : > { %v720_v3 = vsel %vm576_vm1, %v697_v1, 0.0  ;;  %v721_v4 = vsel %vm576_vm1, %v698_v2, 0.0 }
 0x174   : > { %728 = vadd.xlane.f32.xlu2 %v727_v0  ;;  %v722_v31 = vadd.f32 %v721_v4, %v720_v3 }
 0x176   : > { %723 = vadd.xlane.f32.xlu1 %v722_v31  ;;  %v1313_v31 = vmov 839922192  }
 0x178   : > { %v705_v34 = vld.sshfl [vmem:[#allocation1 + $0x30] sm:$0xff pattern:$0x75316420]  ;;  %v706_v5 = vld.sshfl [vmem:[#allocation1 + $0x38] sm:$0xff pattern:$0x75316420] }
 0x179   : > { %v730_v6 = vsel %vm576_vm1, %v705_v34, 0.0  ;;  %v731_v7 = vsel %vm576_vm1, %v706_v5, 0.0  ;;  %v830_v34 = vunpack.c.l.s4 %v1313_v31 }
 0x17a   : > { %v732_v8 = vadd.f32 %v731_v7, %v730_v6 }
 0x17e   : > { %733 = vadd.xlane.f32.xlu1 %v732_v8 }
 0x180   : > { %927 = vperm.xlu0 %1287, %v915_v9  }
 0x18c   : > { %857 = vperm.xlu2 %1288, %v853_v10   ;;  %v831_v10 = vunpack.c.0.s8 %v830_v34  ;;  %v1269_v34 = vld [vmem:[%s1610_s6] sm:$0xff] }
 0x194   : > { %861 = vperm.xlu2 %1288, %v854_v11  }
 0x197   : > { %827 = vperm.xlu1 %1289, %v820_v12  }
 0x19c   : > { %932 = vperm.xlu2 %1288, %v916_v13  }
 0x19f   : > { %922 = vperm.xlu1 %1289, %v914_v14  }
 0x1a4   : > { %942 = vperm.xlu2 %1288, %v918_v15  }
 0x1a7   : > { %937 = vperm.xlu1 %1289, %v917_v16  }
 0x1af   : > { %947 = vperm.xlu1 %1289, %v919_v17  }
 0x1df   : > { %v719_v20 = vpop.xlane.xlu0 %718 }
 0x1e0   : > { %v735_v21 = vmul.f32 %v719_v20, %v1475_v63 }
 0x1e2   : > { %v739_v25 = vsel %vm576_vm1, %v735_v21, 0.0 }
 0x1e3   : > { %v740_v26 = vrot.slane %v739_v25, 4 }
 0x1e5   : > { %v741_v27 = vadd.f32 %v740_v26, %v739_v25  ;;  %v832_v25 = vperm.slane %v1548_v18, %v831_v10 }
 0x1e7   : > { %v742_v28 = vrot.slane %v741_v27, 2  ;;  %v729_v29 = vpop.xlane.xlu2 %728 }
 0x1e8   : > { %v737_v32 = vmul.f32 %v729_v29, %v1475_v63  ;;  %v1314_v29 = vmov 1985246804  }
 0x1e9   : > { %v743_v35 = vadd.f32 %v742_v28, %v741_v27  ;;  %v724_v36 = vpop.xlane.xlu1 %723 }
 0x1ea   : > { %v753_v37 = vsel %vm576_vm1, %v737_v32, 0.0  ;;  %v736_v38 = vmul.f32 %v724_v36, %v1475_v63  ;;  %v834_v32 = vunpack.c.l.s4 %v1314_v29 }
 0x1eb   : > { %v744_v39 = vrot.slane %v743_v35, 1  ;;  %v754_v40 = vrot.slane %v753_v37, 4 }
 0x1ec   : > { %v746_v41 = vsel %vm576_vm1, %v736_v38, 0.0 }
 0x1ed   : > { %v745_v42 = vadd.f32 %v744_v39, %v743_v35  ;;  %v755_v43 = vadd.f32 %v754_v40, %v753_v37  ;;  %v747_v44 = vrot.slane %v746_v41, 4 }
 0x1ef   : > { %v767_v45 = vmul.f32 %v745_v42, %v1483_v19  ;;  %v756_v46 = vrot.slane %v755_v43, 2  ;;  %v748_v22 = vadd.f32 %v747_v44, %v746_v41  ;;  %v858_v13 = vpop.permute.xlu2 %857 }
 0x1f0   : > { %v866_v35 = vperm.slane %v858_v13, %v831_v10 }
 0x1f1   : > { %v771_v49 = vadd.f32 1e-05, %v767_v45  ;;  %v757_v50 = vadd.f32 %v756_v46, %v755_v43  ;;  %v749_v51 = vrot.slane %v748_v22, 2  ;;  %v734_v52 = vpop.xlane.xlu1 %733  ;;  %v835_v43 = vunpack.c.0.s8 %v834_v32 }
 0x1f2   : > { %v738_v53 = vmul.f32 %v734_v52, %v1475_v63 }
 0x1f3   : > { %1294 = vrsqrt.f32 %v771_v49  ;;  %v758_v54 = vrot.slane %v757_v50, 1  ;;  %v750_v55 = vadd.f32 %v749_v51, %v748_v22  ;;  %vm781_vm5 = vweird.f32 %v771_v49 }
 0x1f4   : > { %v760_v56 = vsel %vm576_vm1, %v738_v53, 0.0  ;;  %v836_v52 = vperm.slane %v1548_v18, %v835_v43 }
 0x1f5   : > { %v759_v30 = vadd.f32 %v758_v54, %v757_v50  ;;  %v751_v23 = vrot.slane %v750_v55, 1  ;;  %v761_v24 = vrot.slane %v760_v56, 4 }
 0x1f7   : > { %v769_v58 = vmul.f32 %v759_v30, %v1483_v19  ;;  %v752_v59 = vadd.f32 %v751_v23, %v750_v55  ;;  %v762_v60 = vadd.f32 %v761_v24, %v760_v56  ;;  %v862_v46 = vpop.permute.xlu2 %861  ;;  %v870_v23 = vperm.slane %v858_v13, %v835_v43 }
 0x1f8   : > { %v874_v54 = vperm.slane %v862_v46, %v831_v10 }
 0x1f9   : > { %v1295_v61 = vpop.eup %1294  ;;  %v773_v62 = vadd.f32 1e-05, %v769_v58  ;;  %v768_v0 = vmul.f32 %v752_v59, %v1483_v19  ;;  %v763_v1 = vrot.slane %v762_v60, 2 }
 0x1fa   : > { %v776_v2 = vmul.f32 %v1295_v61, %v771_v49  ;;  %vm782_vm4 = vweird.f32 %v1295_v61 }
 0x1fb   : > { %1296 = vrsqrt.f32 %v773_v62  ;;  %v772_v63 = vadd.f32 1e-05, %v768_v0  ;;  %v764_v3 = vadd.f32 %v763_v1, %v762_v60  ;;  %vm783_vm6 = vmor %vm781_vm5, %vm782_vm4  ;;  %vm801_vm9 = vweird.f32 %v773_v62 }
 0x1fc   : > { %v777_v4 = vmul.f32 %v1295_v61, %v776_v2 }
 0x1fd   : > { %1298 = vrsqrt.f32 %v772_v63  ;;  %v765_v5 = vrot.slane %v764_v3, 1  ;;  %vm791_vm11 = vweird.f32 %v772_v63 }
 0x1fe   : > { %v778_v6 = vmul.f32 0.5, %v777_v4 }
 0x1ff   : > { %v766_v7 = vadd.f32 %v765_v5, %v764_v3  ;;  %v1271_v5 = vld [vmem:[%s1610_s6 + $0x10] sm:$0xff] }
 0x200   : > { %v779_v8 = vsub.f32 1.5, %v778_v6 }
 0x201   : > { %v1297_v9 = vpop.eup %1296  ;;  %v770_v11 = vmul.f32 %v766_v7, %v1483_v19 }
 0x202   : > { %v796_v12 = vmul.f32 %v1297_v9, %v773_v62  ;;  %v780_v14 = vmul.f32 %v1295_v61, %v779_v8  ;;  %vm802_vm7 = vweird.f32 %v1297_v9  ;;  %v878_v62 = vperm.slane %v862_v46, %v835_v43 }
 0x203   : > { %v1299_v15 = vpop.eup %1298  ;;  %v774_v16 = vadd.f32 1e-05, %v770_v11  ;;  %vm803_vm10 = vmor %vm801_vm9, %vm802_vm7  ;;  %v928_v11 = vpop.permute.xlu0 %927 }
 0x204   : > { %v786_v17 = vmul.f32 %v1299_v15, %v772_v63  ;;  %v784_v20 = vsel %vm783_vm6, %v1295_v61, %v780_v14  ;;  %v797_v21 = vmul.f32 %v1297_v9, %v796_v12  ;;  %vm792_vm8 = vweird.f32 %v1299_v15 }
 0x205   : > { %v815_v26 = vmul.f32 %v784_v20, %v1488_v33  ;;  %1300 = vrsqrt.f32 %v774_v16  ;;  %vm793_vm12 = vmor %vm791_vm11, %vm792_vm8  ;;  %vm811_vm14 = vweird.f32 %v774_v16 }
 0x206   : > { %v787_v27 = vmul.f32 %v1299_v15, %v786_v17  ;;  %v798_v28 = vmul.f32 0.5, %v797_v21 }
 0x207   : > { %v849_v19 = vmul.f32 %v832_v25, %v815_v26 }
 0x208   : > { %v788_v36 = vmul.f32 0.5, %v787_v27  ;;  %v799_v37 = vsub.f32 1.5, %v798_v28 }
 0x209   : > { %v883_v38 = vadd.f32 %v866_v35, %v849_v19  ;;  %v828_v41 = vpop.permute.xlu1 %827 }
 0x20a   : > { %v789_v39 = vsub.f32 1.5, %v788_v36  ;;  %v800_v40 = vmul.f32 %v1297_v9, %v799_v37  ;;  %v840_v33 = vperm.slane %v828_v41, %v831_v10 }
 0x20b   : > { %v1301_v42 = vpop.eup %1300  ;;  %897 = vst [vmem:[#allocation1] ss:$2 sm:$0xff] %v883_v38 }
 0x20c   : > { %v790_v44 = vmul.f32 %v1299_v15, %v789_v39  ;;  %v806_v45 = vmul.f32 %v1301_v42, %v774_v16  ;;  %v804_v22 = vsel %vm803_vm10, %v1297_v9, %v800_v40  ;;  %vm812_vm13 = vweird.f32 %v1301_v42  ;;  %v933_v16 = vpop.permute.xlu2 %932 }
 0x20d   : > { %v817_v49 = vmul.f32 %v804_v22, %v1496_v47  ;;  %vm813_vm15 = vmor %vm811_vm14, %vm812_vm13  ;;  %v844_v47 = vperm.slane %v828_v41, %v835_v43 }
 0x20e   : > { %v794_v50 = vsel %vm793_vm12, %v1299_v15, %v790_v44  ;;  %v807_v51 = vmul.f32 %v1301_v42, %v806_v45 }
 0x20f   : > { %v816_v53 = vmul.f32 %v794_v50, %v1500_v48  ;;  %v851_v55 = vmul.f32 %v840_v33, %v817_v49 }
 0x210   : > { %v808_v56 = vmul.f32 0.5, %v807_v51 }
 0x211   : > { %v850_v30 = vmul.f32 %v836_v52, %v816_v53  ;;  %v885_v24 = vadd.f32 %v874_v54, %v851_v55  ;;  %v923_v6 = vpop.permute.xlu1 %922 }
 0x212   : > { %v809_v58 = vsub.f32 1.5, %v808_v56 }
 0x213   : > { %v884_v59 = vadd.f32 %v870_v23, %v850_v30  ;;  %901 = vst [vmem:[#allocation1 + $0x10] ss:$2 sm:$0xff] %v885_v24 }
 0x214   : > { %v810_v60 = vmul.f32 %v1301_v42, %v809_v58  ;;  %v943_v19 = vpop.permute.xlu2 %942 }
 0x215   : > { %899 = vst [vmem:[#allocation1 + $0x1] ss:$2 sm:$0xff] %v884_v59 }
 0x216   : > { %v814_v61 = vsel %vm813_vm15, %v1301_v42, %v810_v60 }
 0x217   : > { %v818_v18 = vmul.f32 %v814_v61, %v1511_v57  ;;  %v1270_v57 = vld [vmem:[%s1610_s6 + $0x8] sm:$0xff] }
 0x219   : > { %v852_v48 = vmul.f32 %v844_v47, %v818_v18  ;;  %v938_v26 = vpop.permute.xlu1 %937 }
 0x21b   : > { %v886_v0 = vadd.f32 %v878_v62, %v852_v48 }
 0x21c   : > { %v904_v1 = vld.sshfl [vmem:[#allocation1] sm:$0xff pattern:$0x75316420]  ;;  %v905_v2 = vld.sshfl [vmem:[#allocation1 + $0x8] sm:$0xff pattern:$0x75316420] }
 0x21d   : > { %903 = vst [vmem:[#allocation1 + $0x11] ss:$2 sm:$0xff] %v886_v0 }
 0x221   : > { %v948_v39 = vpop.permute.xlu1 %947 }
 0x224   : > { %v906_v63 = vld.sshfl [vmem:[#allocation1 + $0x10] sm:$0xff pattern:$0x75316420]  ;;  %v907_v3 = vld.sshfl [vmem:[#allocation1 + $0x18] sm:$0xff pattern:$0x75316420] }
 0x225   : > { %v912_v4 = vpack.c.bf16 %v906_v63, %v904_v1  ;;  %v913_v31 = vpack.c.bf16 %v907_v3, %v905_v2 }
 0x227   : > { %981 = vmatpush.bf16.msra.mxu1 %v912_v4  ;;  %1005 = vmatpush.bf16.msra.mxu3 %v913_v31 }
 0x22a   : > { %1239 = vmatmul.msk.bf16.vlgmr.msra.gmra.mxu1 %vm498_vm0, %v1269_v34  ;;  %1242 = vmatmul.msk.bf16.vlgmr.msra.gmra.mxu3 %vm498_vm0, %v1269_v34 }
 0x23a   : > { %1240 = vmatmul.msk.bf16.gmra.mxu1 %vm498_vm0, %v1270_v57  ;;  %1243 = vmatmul.msk.bf16.gmra.mxu3 %vm498_vm0, %v1270_v57 }
 0x24a   : > { %1241 = vmatmul.msk.bf16.gmra.mxu1 %vm498_vm0, %v1271_v5  ;;  %1244 = vmatmul.msk.bf16.gmra.mxu3 %vm498_vm0, %v1271_v5 }
 0x2a7   : > { %v983_v7 = vpop.f32.mrf.mxu1 }
 0x2a8   : > { %v984_v8 = vadd.f32 %v983_v7, %v923_v6 }
 0x2aa   : > { %1022 = vst [vmem:[%s1587_s25] sm:$0xff] %v984_v8 }
 0x2ad   : > { %v1007_v9 = vpop.f32.mrf.mxu3 }
 0x2ae   : > { %v1008_v10 = vadd.f32 %v1007_v9, %v923_v6 }
 0x2af   : > { %v985_v12 = vpop.f32.mrf.mxu1 }
 0x2b0   : > { %1023 = vst [vmem:[%s1587_s25 + $0x8] sm:$0xff] %v1008_v10  ;;  %v986_v13 = vadd.f32 %v985_v12, %v928_v11 }
 0x2b2   : > { %1024 = vst [vmem:[%s1587_s25 + $0x10] sm:$0xff] %v986_v13 }
 0x2b5   : > { %v1009_v14 = vpop.f32.mrf.mxu3 }
 0x2b6   : > { %v1010_v15 = vadd.f32 %v1009_v14, %v928_v11 }
 0x2b7   : > { %v988_v17 = vpop.f32.mrf.mxu1 }
 0x2b8   : > { %1025 = vst [vmem:[%s1587_s25 + $0x18] sm:$0xff] %v1010_v15  ;;  %v989_v20 = vadd.f32 %v988_v17, %v933_v16 }
 0x2ba   : > { %1026 = vst [vmem:[%s1587_s25 + $0x20] sm:$0xff] %v989_v20 }
 0x2bd   : > { %v1012_v21 = vpop.f32.mrf.mxu3 }
 0x2be   : > { %v1013_v25 = vadd.f32 %v1012_v21, %v933_v16 }
 0x2bf   : > { %v990_v27 = vpop.f32.mrf.mxu1 }
 0x2c0   : > { %1027 = vst [vmem:[%s1587_s25 + $0x28] sm:$0xff] %v1013_v25  ;;  %v991_v28 = vadd.f32 %v990_v27, %v938_v26 }
 0x2c2   : > { %1028 = vst [vmem:[%s1587_s25 + $0x30] sm:$0xff] %v991_v28 }
 0x2c5   : > { %v1014_v29 = vpop.f32.mrf.mxu3 }
 0x2c6   : > { %v1015_v32 = vadd.f32 %v1014_v29, %v938_v26 }
 0x2c7   : > { %v993_v35 = vpop.f32.mrf.mxu1 }
 0x2c8   : > { %1029 = vst [vmem:[%s1587_s25 + $0x38] sm:$0xff] %v1015_v32  ;;  %v994_v36 = vadd.f32 %v993_v35, %v943_v19 }
 0x2ca   : > { %1030 = vst [vmem:[%s1587_s25 + $0x40] sm:$0xff] %v994_v36 }
 0x2cd   : > { %v1017_v37 = vpop.f32.mrf.mxu3 }
 0x2ce   : > { %v1018_v38 = vadd.f32 %v1017_v37, %v943_v19 }
 0x2cf   : > { %v995_v40 = vpop.f32.mrf.mxu1 }
 0x2d0   : > { %1031 = vst [vmem:[%s1587_s25 + $0x48] sm:$0xff] %v1018_v38  ;;  %v996_v41 = vadd.f32 %v995_v40, %v948_v39 }
 0x2d2   : > { %1032 = vst [vmem:[%s1587_s25 + $0x50] sm:$0xff] %v996_v41 }
 0x2d5   : > { %v1019_v42 = vpop.f32.mrf.mxu3 }
 0x2d6   : > { %v1020_v43 = vadd.f32 %v1019_v42, %v948_v39 }
 0x2d8   : > { %1033 = vst [vmem:[%s1587_s25 + $0x58] sm:$0xff] %v1020_v43 }
 0x2d9 PF: > { %s20_s30 = sadd.s32 1, %s1308_s30  }
 0x2da   : > { %p17_p4 = scmp.ge.s32.totalorder %s20_s30, 4  }
 0x2dc   :  { %19 = sbr.rel (!%p17_p4) target bundleno = 1 (0x1), region = 106 }

// kernel: unet_block_forward.9
= control target key start
LH: loop header
LB: loop body
LE: loop exit
PB: predicated region body
PF: predicated region fallthrough
CT: control target
= control target key end

     0   :  { %s2148_s15 = smov 0   ;;  %s3197_s0 = inlined_call_operand.vmem [shape: f32[2,48,256], index: 0, kind: input, shape index: {}]   ;;  %s3198_s1 = inlined_call_operand.vmem [shape: bf16[16,16], index: 1, kind: input, shape index: {}]   ;;  %s3199_s2 = inlined_call_operand.vmem [shape: f32[16,1], index: 2, kind: input, shape index: {}]   ;;  %s3200_s3 = inlined_call_operand.vmem [shape: f32[2,16,256], index: 3, kind: input, shape index: {}]   ;;  %s3201_s4 = inlined_call_operand.vmem [shape: f32[2,16,256], index: 4, kind: output, shape index: {}]  }
   0x1 LB: > { %s1750_s16 = sadd.s32 4294967295, %s2119_s15   ;;  %p1754_p0 = scmp.ge.s32.totalorder %s2119_s15, 1  ;;  %s2119_s15 = sphi %s2148_s15, %s14_s15  }
   0x2   : > { %p172_p1 = scmp.lt.s32.totalorder %s2119_s15, 3 }
   0x4   : > { %p173_p2 = pnand %p1754_p0, %p172_p1 }
   0x6   : > { %176 = sbr.rel (%p173_p2) target bundleno = 1489 (0x5d1), region = 36 }
   0xb   : > { %p203_p3 = scmp.lt.s32.totalorder %s1750_s16, 1  ;;  %vm311_vm0 = vcmask 1043456   ;;  %vm262_vm1 = vcmask 64512   ;;  %vm1639_vm2 = vcmask 130048  }
   0xd   : > { %s3412_s16 = smov (!%p203_p3, %s1750_s16), 1 }
   0xe   : > { %s1835_s17 = smul.u32 96, %s3412_s16  ;;  %s1832_s27 = sshll.u32 %s3412_s16, 5 }
   0xf   : > { %s212_s30 = scalar_lea.vmem %s3200_s3, %s1832_s27  ;;  %s217_s7 = scalar_lea.vmem %s3201_s4, %s1832_s27 }
  0x10   : > { %s2162_s20 = scalar_lea.vmem %s3197_s0, %s1835_s17 }
  0x11   : > { %v220_v0 = vld [vmem:[%s2162_s20] sm:$0xff]  ;;  %v221_v1 = vld [vmem:[%s2162_s20 + $0x8] sm:$0xff]  ;;  %v222_v17 = vld [vmem:[%s2162_s20 + $0x10] sm:$0xff] }
  0x12   : > { %v224_v2 = vld [vmem:[%s2162_s20 + $0x20] sm:$0xff]  ;;  %v232_v3 = vpack.c.bf16 %v220_v0, %v220_v0  ;;  %v233_v4 = vpack.c.bf16 %v221_v1, %v221_v1  ;;  %v225_v6 = vld [vmem:[%s2162_s20 + $0x28] sm:$0xff]  ;;  %v223_v18 = vld [vmem:[%s2162_s20 + $0x18] sm:$0xff]  ;;  %v926_v19 = vpack.c.bf16 %v222_v17, %v222_v17 }
  0x13   : > { %v234_v5 = vpack.c.bf16 %v224_v2, %v224_v2  ;;  %v235_v7 = vpack.c.bf16 %v225_v6, %v225_v6  ;;  %v927_v20 = vpack.c.bf16 %v223_v18, %v223_v18  ;;  %v226_v62 = vld [vmem:[%s2162_s20 + $0x30] sm:$0xff]  ;;  %v227_v63 = vld [vmem:[%s2162_s20 + $0x38] sm:$0xff] }
  0x14   : > { %238 = vxpose.binary.xlu0.c.b16.start.end [1/2] (short) %v233_v4, %v232_v3, 128  ;;  %v928_v0 = vpack.c.bf16 %v226_v62, %v226_v62  ;;  %v929_v1 = vpack.c.bf16 %v227_v63, %v227_v63 }
  0x15   : > { %v313_v8 = vsel %vm311_vm0, %v234_v5, 0  ;;  %v316_v9 = vsel %vm311_vm0, %v235_v7, 0 }
  0x16   : > { %325 = vmatpush.bf16.msra.mxu0 %v313_v8  ;;  %414 = vmatpush.bf16.msra.mxu1 %v316_v9  ;;  %v1005_v4 = vsel %vm311_vm0, %v928_v0, 0  ;;  %v1008_v5 = vsel %vm311_vm0, %v929_v1, 0 }
  0x1a   : > { %1017 = vmatpush.bf16.msrb.mxu0 %v1005_v4  ;;  %1106 = vmatpush.bf16.msrb.mxu1 %v1008_v5 }
  0x94   : > { %932 = vxpose.binary.xlu0.c.b16.start.end [1/2] (short) %v927_v20, %v926_v19, 128 }
  0xc0   : > { %v246_v10 = vpop.trf.xlu0 }
  0xc1   : > { %1760 = vmatmul.msk.bf16.vlgmr.msra.gmra.mxu0 %vm262_vm1, %v246_v10  ;;  %1776 = vmatmul.msk.bf16.vlgmr.msra.gmra.mxu1 %vm262_vm1, %v246_v10 }
  0xc8   : > { %v247_v11 = vpop.trf.xlu0 }
  0xd0   : > { %v248_v12 = vpop.trf.xlu0 }
  0xd1   : > { %1761 = vmatmul.msk.bf16.gmra.mxu0 %vm262_vm1, %v248_v12  ;;  %1777 = vmatmul.msk.bf16.gmra.mxu1 %vm262_vm1, %v248_v12 }
  0xd8   : > { %v249_v13 = vpop.trf.xlu0 }
  0xe0   : > { %v250_v14 = vpop.trf.xlu0 }
  0xe1   : > { %1762 = vmatmul.msk.bf16.gmra.mxu0 %vm262_vm1, %v250_v14  ;;  %1778 = vmatmul.msk.bf16.gmra.mxu1 %vm262_vm1, %v250_v14 }
  0xe8   : > { %v251_v15 = vpop.trf.xlu0 }
  0xf0   : > { %v252_v16 = vpop.trf.xlu0 }
  0xf1   : > { %1763 = vmatmul.msk.bf16.gmra.mxu0 %vm262_vm1, %v252_v16  ;;  %1779 = vmatmul.msk.bf16.gmra.mxu1 %vm262_vm1, %v252_v16 }
  0xf8   : > { %v253_v21 = vpop.trf.xlu0 }
 0x100   : > { %v254_v22 = vpop.trf.xlu0 }
 0x101   : > { %1764 = vmatmul.msk.bf16.gmra.mxu0 %vm262_vm1, %v254_v22  ;;  %1780 = vmatmul.msk.bf16.gmra.mxu1 %vm262_vm1, %v254_v22 }
 0x108   : > { %v255_v23 = vpop.trf.xlu0 }
 0x110   : > { %v256_v24 = vpop.trf.xlu0 }
 0x111   : > { %1765 = vmatmul.msk.bf16.gmra.mxu0 %vm262_vm1, %v256_v24  ;;  %1781 = vmatmul.msk.bf16.gmra.mxu1 %vm262_vm1, %v256_v24 }
 0x118   : > { %v257_v25 = vpop.trf.xlu0 }
 0x120   : > { %v258_v26 = vpop.trf.xlu0 }
 0x121   : > { %1766 = vmatmul.msk.bf16.gmra.mxu0 %vm262_vm1, %v258_v26  ;;  %1782 = vmatmul.msk.bf16.gmra.mxu1 %vm262_vm1, %v258_v26 }
 0x128   : > { %v2186_v27 = vpop.trf.xlu0 }
 0x130   : > { %v260_v28 = vpop.trf.xlu0 }
 0x131   : > { %1767 = vmatmul.msk.bf16.gmra.mxu0 %vm262_vm1, %v260_v28  ;;  %1783 = vmatmul.msk.bf16.gmra.mxu1 %vm262_vm1, %v260_v28 }
 0x138   : > { %v261_v61 = vpop.trf.xlu0 }
 0x13e   : > { %v2190_v29 = vpop.f32.mrf.mxu0  ;;  %v2192_v30 = vpop.f32.mrf.mxu1 }
 0x140   : > { %v940_v7 = vpop.trf.xlu0 }
 0x141   : > { %1768 = vmatmul.msk.bf16.gmra.mxu0 %vm262_vm1, %v247_v11  ;;  %1784 = vmatmul.msk.bf16.gmra.mxu1 %vm262_vm1, %v247_v11 }
 0x146   : > { %v2196_v31 = vpop.f32.mrf.mxu0  ;;  %v2198_v32 = vpop.f32.mrf.mxu1 }
 0x148   : > { %v2286_v11 = vpop.trf.xlu0 }
 0x14e   : > { %v2200_v33 = vpop.f32.mrf.mxu0  ;;  %v2202_v34 = vpop.f32.mrf.mxu1 }
 0x151   : > { %1769 = vmatmul.msk.bf16.gmra.mxu0 %vm262_vm1, %v249_v13  ;;  %1785 = vmatmul.msk.bf16.gmra.mxu1 %vm262_vm1, %v249_v13 }
 0x156   : > { %v2206_v35 = vpop.f32.mrf.mxu0  ;;  %v2208_v36 = vpop.f32.mrf.mxu1 }
 0x15e   : > { %v2210_v37 = vpop.f32.mrf.mxu0  ;;  %v2212_v38 = vpop.f32.mrf.mxu1 }
 0x15f   : > { %v508_v39 = vmax.f32 %v2210_v37, %v2212_v38 }
 0x161   : > { %509 = vmax.xlane.f32.xlu1 %v508_v39  ;;  %1770 = vmatmul.msk.bf16.gmra.mxu0 %vm262_vm1, %v251_v15 }
 0x162   : > { %1786 = vmatmul.msk.bf16.gmra.mxu1 %vm262_vm1, %v251_v15  ;;  %v942_v15 = vpop.trf.xlu0 }
 0x166   : > { %v2218_v40 = vpop.f32.mrf.mxu0  ;;  %v2220_v41 = vpop.f32.mrf.mxu1 }
 0x167   : > { %v511_v42 = vmax.f32 %v2218_v40, %v2220_v41 }
 0x169   : > { %512 = vmax.xlane.f32.xlu2 %v511_v42 }
 0x16e   : > { %v2224_v43 = vpop.f32.mrf.mxu0  ;;  %v2226_v44 = vpop.f32.mrf.mxu1 }
 0x16f   : > { %v514_v45 = vmax.f32 %v2224_v43, %v2226_v44 }
 0x171   : > { %515 = vmax.xlane.f32.xlu1 %v514_v45  ;;  %1771 = vmatmul.msk.bf16.gmra.mxu0 %vm262_vm1, %v253_v21 }
 0x172   : > { %1787 = vmatmul.msk.bf16.gmra.mxu1 %vm262_vm1, %v253_v21  ;;  %v2306_v21 = vpop.trf.xlu0 }
 0x176   : > { %v2232_v46 = vpop.f32.mrf.mxu0  ;;  %v2234_v47 = vpop.f32.mrf.mxu1 }
 0x177   : > { %v517_v48 = vmax.f32 %v2232_v46, %v2234_v47 }
 0x179   : > { %518 = vmax.xlane.f32.xlu2 %v517_v48 }
 0x17a   : > { %v944_v24 = vpop.trf.xlu0 }
 0x17e   : > { %v2238_v49 = vpop.f32.mrf.mxu0  ;;  %v2240_v50 = vpop.f32.mrf.mxu1 }
 0x17f   : > { %v520_v51 = vmax.f32 %v2238_v49, %v2240_v50 }
 0x181   : > { %521 = vmax.xlane.f32.xlu1 %v520_v51  ;;  %1772 = vmatmul.msk.bf16.gmra.mxu0 %vm262_vm1, %v255_v23 }
 0x182   : > { %1788 = vmatmul.msk.bf16.gmra.mxu1 %vm262_vm1, %v255_v23  ;;  %v2320_v28 = vpop.trf.xlu0 }
 0x183   : > { %3277 = vst [vmem:[#allocation7_spill] sm:$0xff] %v2320_v28 }
 0x186   : > { %v2246_v52 = vpop.f32.mrf.mxu0  ;;  %v2248_v53 = vpop.f32.mrf.mxu1 }
 0x187   : > { %v523_v54 = vmax.f32 %v2246_v52, %v2248_v53 }
 0x189   : > { %524 = vmax.xlane.f32.xlu2 %v523_v54 }
 0x18a   : > { %v946_v63 = vpop.trf.xlu0 }
 0x18e   : > { %v2252_v55 = vpop.f32.mrf.mxu0  ;;  %v2254_v56 = vpop.f32.mrf.mxu1 }
 0x18f   : > { %v526_v57 = vmax.f32 %v2252_v55, %v2254_v56 }
 0x191   : > { %527 = vmax.xlane.f32.xlu1 %v526_v57  ;;  %1773 = vmatmul.msk.bf16.gmra.mxu0 %vm262_vm1, %v257_v25 }
 0x192   : > { %1789 = vmatmul.msk.bf16.gmra.mxu1 %vm262_vm1, %v257_v25 }
 0x196   : > { %v2260_v58 = vpop.f32.mrf.mxu0  ;;  %v2262_v59 = vpop.f32.mrf.mxu1 }
 0x197   : > { %v529_v60 = vmax.f32 %v2260_v58, %v2262_v59 }
 0x199   : > { %530 = vmax.xlane.f32.xlu2 %v529_v60 }
 0x19e   : > { %v2268_v2 = vpop.f32.mrf.mxu0  ;;  %v2270_v3 = vpop.f32.mrf.mxu1 }
 0x19f   : > { %v532_v6 = vmax.f32 %v2268_v2, %v2270_v3 }
 0x1a1   : > { %533 = vmax.xlane.f32.xlu2 %v532_v6  ;;  %1774 = vmatmul.msk.bf16.gmra.mxu0 %vm262_vm1, %v2186_v27 }
 0x1a2   : > { %1790 = vmatmul.msk.bf16.gmra.mxu1 %vm262_vm1, %v2186_v27 }
 0x1a6   : > { %v2280_v8 = vpop.f32.mrf.mxu0  ;;  %v2282_v9 = vpop.f32.mrf.mxu1 }
 0x1a7   : > { %v535_v10 = vmax.f32 %v2280_v8, %v2282_v9 }
 0x1a9   : > { %536 = vmax.xlane.f32.xlu2 %v535_v10 }
 0x1ae   : > { %v2288_v12 = vpop.f32.mrf.mxu0  ;;  %v2290_v13 = vpop.f32.mrf.mxu1 }
 0x1af   : > { %v538_v14 = vmax.f32 %v2288_v12, %v2290_v13 }
 0x1b1   : > { %539 = vmax.xlane.f32.xlu1 %v538_v14  ;;  %1775 = vmatmul.msk.bf16.gmra.mxu0 %vm262_vm1, %v261_v61 }
 0x1b2   : > { %1791 = vmatmul.msk.bf16.gmra.mxu1 %vm262_vm1, %v261_v61 }
 0x1b6   : > { %v2296_v16 = vpop.f32.mrf.mxu0  ;;  %v2298_v17 = vpop.f32.mrf.mxu1 }
 0x1b7   : > { %v541_v18 = vmax.f32 %v2296_v16, %v2298_v17 }
 0x1b9   : > { %542 = vmax.xlane.f32.xlu1 %v541_v18 }
 0x1be   : > { %v2302_v19 = vpop.f32.mrf.mxu0  ;;  %v2304_v20 = vpop.f32.mrf.mxu1 }
 0x1bf   : > { %3272 = vst [vmem:[#allocation2_spill] sm:$0xff] %v2302_v19 }
 0x1c0   : > { %3273 = vst [vmem:[#allocation3_spill] sm:$0xff] %v2304_v20 }
 0x1c1   : > { %1792 = vmatmul.msk.bf16.vlgmr.msrb.gmra.mxu0 %vm262_vm1, %v940_v7 }
 0x1c2   : > { %1808 = vmatmul.msk.bf16.vlgmr.msrb.gmra.mxu1 %vm262_vm1, %v940_v7  ;;  %v2340_v7 = vpop.trf.xlu0 }
 0x1c3   : > { %3282 = vst [vmem:[#allocation12_spill] sm:$0xff] %v2340_v7 }
 0x1c6   : > { %v2310_v22 = vpop.f32.mrf.mxu0  ;;  %v2312_v23 = vpop.f32.mrf.mxu1 }
 0x1c7   : > { %3274 = vst [vmem:[#allocation4_spill] sm:$0xff] %v2310_v22 }
 0x1c8   : > { %3275 = vst [vmem:[#allocation5_spill] sm:$0xff] %v2312_v23 }
 0x1ce   : > { %v2314_v25 = vpop.f32.mrf.mxu0  ;;  %v2316_v26 = vpop.f32.mrf.mxu1 }
 0x1cf   : > { %3276 = vst [vmem:[#allocation6_spill] sm:$0xff] %v2314_v25 }
 0x1d1   : > { %1793 = vmatmul.msk.bf16.gmra.mxu0 %vm262_vm1, %v942_v15 }
 0x1d2   : > { %1809 = vmatmul.msk.bf16.gmra.mxu1 %vm262_vm1, %v942_v15 }
 0x1d4   : > { %v510_v27 = vpop.xlane.xlu1 %509 }
 0x1d5   : > { %v600_v45 = vsub.f32 %v2210_v37, %v510_v27  ;;  %v601_v48 = vsub.f32 %v2212_v38, %v510_v27 }
 0x1d6   : > { %v2322_v39 = vpop.f32.mrf.mxu0  ;;  %v2324_v42 = vpop.f32.mrf.mxu1 }
 0x1d7   : > { %3278 = vst [vmem:[#allocation8_spill] sm:$0xff] %v2322_v39  ;;  %v672_v51 = vmul.f32 1.442695, %v600_v45  ;;  %v674_v54 = vmul.f32 1.442695, %v601_v48 }
 0x1d8   : > { %3279 = vst [vmem:[#allocation9_spill] sm:$0xff] %v2324_v42 }
 0x1d9   : > { %1849 = vpow2.f32 %v672_v51 }
 0x1da   : > { %1851 = vpow2.f32 %v674_v54 }
 0x1dc   : > { %v513_v57 = vpop.xlane.xlu2 %512 }
 0x1dd   : > { %v602_v60 = vsub.f32 %v2218_v40, %v513_v57  ;;  %v603_v61 = vsub.f32 %v2220_v41, %v513_v57 }
 0x1de   : > { %v2330_v62 = vpop.f32.mrf.mxu0 }
 0x1df   : > { %v676_v0 = vmul.f32 1.442695, %v602_v60  ;;  %v678_v1 = vmul.f32 1.442695, %v603_v61  ;;  %v2332_v4 = vpop.f32.mrf.mxu1  ;;  %v1850_v37 = vpop.eup %1849 }
 0x1e0   : > { %v1852_v38 = vpop.eup %1851 }
 0x1e1   : > { %1853 = vpow2.f32 %v676_v0  ;;  %1794 = vmatmul.msk.bf16.gmra.mxu0 %vm262_vm1, %v944_v24 }
 0x1e2   : > { %1855 = vpow2.f32 %v678_v1  ;;  %1810 = vmatmul.msk.bf16.gmra.mxu1 %vm262_vm1, %v944_v24  ;;  %v948_v24 = vpop.trf.xlu0 }
 0x1e4   : > { %v2370_v0 = vpop.xlane.xlu1 %515 }
 0x1e6   : > { %v2336_v40 = vpop.f32.mrf.mxu0 }
 0x1e7   : > { %3280 = vst [vmem:[#allocation10_spill] sm:$0xff] %v2336_v40  ;;  %v1854_v41 = vpop.eup %1853  ;;  %v2338_v5 = vpop.f32.mrf.mxu1 }
 0x1e8   : > { %3281 = vst [vmem:[#allocation11_spill] sm:$0xff] %v2338_v5  ;;  %v1856_v6 = vpop.eup %1855  ;;  %v2342_v10 = vpack.c.bf16 %v1854_v41, %v1850_v37 }
 0x1e9   : > { %v2344_v14 = vpack.c.bf16 %v1856_v6, %v1852_v38 }
 0x1ea   : > { %3283 = vst [vmem:[#allocation13_spill] sm:$0xff] %v2342_v10  ;;  %v2356_v48 = vpop.trf.xlu0 }
 0x1eb   : > { %3284 = vst [vmem:[#allocation14_spill] sm:$0xff] %v2344_v14 }
 0x1ec   : > { %3285 = vst [vmem:[#allocation15_spill] sm:$0xff] %v2356_v48 }
 0x1ee   : > { %v2346_v15 = vpop.f32.mrf.mxu0 }
 0x1ef   : > { %v2348_v18 = vpop.f32.mrf.mxu1 }
 0x1f1   : > { %1795 = vmatmul.msk.bf16.gmra.mxu0 %vm262_vm1, %v946_v63 }
 0x1f2   : > { %1811 = vmatmul.msk.bf16.gmra.mxu1 %vm262_vm1, %v946_v63  ;;  %v950_v60 = vpop.trf.xlu0  ;;  %v2368_v63 = vpop.xlane.xlu2 %518 }
 0x1f6   : > { %v2352_v27 = vpop.f32.mrf.mxu0 }
 0x1f7   : > { %v2354_v45 = vpop.f32.mrf.mxu1 }
 0x1fa   : > { %v2378_v41 = vpop.trf.xlu0 }
 0x1fb   : > { %3288 = vst [vmem:[#allocation18_spill] sm:$0xff] %v2378_v41 }
 0x1fc   : > { %v2380_v6 = vpop.xlane.xlu2 %524 }
 0x1fe   : > { %v2358_v51 = vpop.f32.mrf.mxu0 }
 0x1ff   : > { %v2360_v54 = vpop.f32.mrf.mxu1 }
 0x201   : > { %1796 = vmatmul.msk.bf16.gmra.mxu0 %vm262_vm1, %v948_v24 }
 0x202   : > { %1812 = vmatmul.msk.bf16.gmra.mxu1 %vm262_vm1, %v948_v24  ;;  %v2384_v24 = vpop.xlane.xlu1 %521  ;;  %v952_v41 = vpop.trf.xlu0 }
 0x206   : > { %v2364_v57 = vpop.f32.mrf.mxu0 }
 0x207   : > { %v2366_v61 = vpop.f32.mrf.mxu1 }
 0x20c   : > { %v2392_v23 = vpop.xlane.xlu2 %530 }
 0x20e   : > { %v2372_v1 = vpop.f32.mrf.mxu0 }
 0x20f   : > { %3286 = vst [vmem:[#allocation16_spill] sm:$0xff] %v2372_v1  ;;  %v2374_v37 = vpop.f32.mrf.mxu1 }
 0x210   : > { %3287 = vst [vmem:[#allocation17_spill] sm:$0xff] %v2374_v37  ;;  %v574_v38 = vmax.f32 %v2372_v1, %v2374_v37  ;;  %v2394_v37 = vpop.xlane.xlu1 %527 }
 0x211   : > { %1797 = vmatmul.msk.bf16.gmra.mxu0 %vm262_vm1, %v950_v60 }
 0x212   : > { %575 = vmax.xlane.f32.xlu1 %v574_v38  ;;  %1813 = vmatmul.msk.bf16.gmra.mxu1 %vm262_vm1, %v950_v60 }
 0x214   : > { %v534_v39 = vpop.xlane.xlu2 %533 }
 0x216   : > { %v2386_v48 = vpop.f32.mrf.mxu0 }
 0x217   : > { %3289 = vst [vmem:[#allocation19_spill] sm:$0xff] %v2386_v48  ;;  %v2388_v7 = vpop.f32.mrf.mxu1 }
 0x218   : > { %3290 = vst [vmem:[#allocation20_spill] sm:$0xff] %v2388_v7  ;;  %v577_v22 = vmax.f32 %v2386_v48, %v2388_v7  ;;  %v2404_v48 = vpop.trf.xlu0 }
 0x219   : > { %3293 = vst [vmem:[#allocation23_spill] sm:$0xff] %v2404_v48 }
 0x21a   : > { %578 = vmax.xlane.f32.xlu2 %v577_v22 }
 0x21e   : > { %v2396_v1 = vpop.f32.mrf.mxu0 }
 0x21f   : > { %3291 = vst [vmem:[#allocation21_spill] sm:$0xff] %v2396_v1  ;;  %v2398_v38 = vpop.f32.mrf.mxu1 }
 0x220   : > { %3292 = vst [vmem:[#allocation22_spill] sm:$0xff] %v2398_v38  ;;  %v580_v60 = vmax.f32 %v2396_v1, %v2398_v38  ;;  %v954_v40 = vpop.trf.xlu0 }
 0x221   : > { %1798 = vmatmul.msk.bf16.gmra.mxu0 %vm262_vm1, %v952_v41 }
 0x222   : > { %581 = vmax.xlane.f32.xlu1 %v580_v60  ;;  %1814 = vmatmul.msk.bf16.gmra.mxu1 %vm262_vm1, %v952_v41  ;;  %v537_v41 = vpop.xlane.xlu2 %536 }
 0x224   : > { %v540_v7 = vpop.xlane.xlu1 %539 }
 0x225   : > { %v620_v42 = vsub.f32 %v2288_v12, %v540_v7  ;;  %v621_v20 = vsub.f32 %v2290_v13, %v540_v7  ;;  %v618_v13 = vsub.f32 %v2280_v8, %v537_v41 }
 0x226   : > { %v2406_v22 = vpop.f32.mrf.mxu0 }
 0x227   : > { %v2409_v19 = vpop.f32.mrf.mxu1  ;;  %v712_v1 = vmul.f32 1.442695, %v620_v42  ;;  %v714_v60 = vmul.f32 1.442695, %v621_v20  ;;  %v619_v42 = vsub.f32 %v2282_v9, %v537_v41  ;;  %v708_v7 = vmul.f32 1.442695, %v618_v13 }
 0x228   : > { %v583_v38 = vmax.f32 %v2406_v22, %v2409_v19  ;;  %v615_v41 = vsub.f32 %v2262_v59, %v2392_v23  ;;  %v612_v13 = vsub.f32 %v2252_v55, %v2394_v37 }
 0x229   : > { %1857 = vpow2.f32 %v712_v1  ;;  %v710_v8 = vmul.f32 1.442695, %v619_v42 }
 0x22a   : > { %584 = vmax.xlane.f32.xlu2 %v583_v38  ;;  %1859 = vpow2.f32 %v714_v60  ;;  %v702_v42 = vmul.f32 1.442695, %v615_v41 }
 0x22c   : > { %v543_v14 = vpop.xlane.xlu1 %542 }
 0x22d   : > { %v622_v10 = vsub.f32 %v2296_v16, %v543_v14  ;;  %v623_v48 = vsub.f32 %v2298_v17, %v543_v14  ;;  %v616_v16 = vsub.f32 %v2268_v2, %v534_v39  ;;  %v617_v17 = vsub.f32 %v2270_v3, %v534_v39 }
 0x22e   : > { %v2416_v28 = vpop.f32.mrf.mxu0  ;;  %v568_v2 = vmax.f32 %v2358_v51, %v2360_v54 }
 0x22f   : > { %v716_v12 = vmul.f32 1.442695, %v622_v10  ;;  %v718_v5 = vmul.f32 1.442695, %v623_v48  ;;  %v2418_v25 = vpop.f32.mrf.mxu1  ;;  %v1858_v10 = vpop.eup %1857  ;;  %v704_v48 = vmul.f32 1.442695, %v616_v16 }
 0x230   : > { %v586_v20 = vmax.f32 %v2416_v28, %v2418_v25  ;;  %v1860_v14 = vpop.eup %1859  ;;  %v706_v9 = vmul.f32 1.442695, %v617_v17 }
 0x231   : > { %1861 = vpow2.f32 %v716_v12  ;;  %1799 = vmatmul.msk.bf16.gmra.mxu0 %vm262_vm1, %v954_v40 }
 0x232   : > { %1863 = vpow2.f32 %v718_v5  ;;  %587 = vmax.xlane.f32.xlu1 %v586_v20  ;;  %1815 = vmatmul.msk.bf16.gmra.mxu1 %vm262_vm1, %v954_v40  ;;  %v614_v40 = vsub.f32 %v2260_v58, %v2392_v23  ;;  %v613_v58 = vsub.f32 %v2254_v56, %v2394_v37  ;;  %v696_v23 = vmul.f32 1.442695, %v612_v13 }
 0x233   : > { %1865 = vpow2.f32 %v708_v7  ;;  %v502_v56 = vmax.f32 %v2200_v33, %v2202_v34  ;;  %v571_v37 = vmax.f32 %v2364_v57, %v2366_v61 }
 0x234   : > { %1867 = vpow2.f32 %v710_v8  ;;  %v700_v20 = vmul.f32 1.442695, %v614_v40  ;;  %v698_v7 = vmul.f32 1.442695, %v613_v58  ;;  %v610_v8 = vsub.f32 %v2246_v52, %v2380_v6 }
 0x235   : > { %1869 = vpow2.f32 %v704_v48  ;;  %v611_v48 = vsub.f32 %v2248_v53, %v2380_v6  ;;  %v608_v52 = vsub.f32 %v2238_v49, %v2384_v24 }
 0x236   : > { %v2428_v1 = vpop.f32.mrf.mxu0  ;;  %1871 = vpow2.f32 %v706_v9  ;;  %v692_v53 = vmul.f32 1.442695, %v610_v8 }
 0x237   : > { %v1862_v38 = vpop.eup %1861  ;;  %v2430_v60 = vpop.f32.mrf.mxu1  ;;  %1873 = vpow2.f32 %v700_v20  ;;  %v694_v6 = vmul.f32 1.442695, %v611_v48  ;;  %v688_v49 = vmul.f32 1.442695, %v608_v52 }
 0x238   : > { %v1864_v5 = vpop.eup %1863  ;;  %v589_v3 = vmax.f32 %v2428_v1, %v2430_v60  ;;  %v2438_v39 = vpack.c.bf16 %v1862_v38, %v1858_v10  ;;  %1875 = vpow2.f32 %v702_v42  ;;  %v607_v42 = vsub.f32 %v2234_v47, %v2368_v63 }
 0x239   : > { %v2442_v12 = vpack.c.bf16 %v1864_v5, %v1860_v14  ;;  %v1866_v59 = vpop.eup %1865  ;;  %1877 = vpow2.f32 %v696_v23  ;;  %v604_v23 = vsub.f32 %v2224_v43, %v2370_v0 }
 0x23a   : > { %569 = vmax.xlane.f32.xlu1 %v568_v2  ;;  %590 = vmax.xlane.f32.xlu2 %v589_v3  ;;  %v1868_v17 = vpop.eup %1867  ;;  %v609_v2 = vsub.f32 %v2240_v50, %v2384_v24  ;;  %1879 = vpow2.f32 %v698_v7  ;;  %v606_v50 = vsub.f32 %v2232_v46, %v2368_v63  ;;  %v505_v24 = vmax.f32 %v2206_v35, %v2208_v36 }
 0x23b   : > { %3294 = vst [vmem:[#allocation24_spill] sm:$0xff] %v2442_v12  ;;  %816 = vmatpush.bf16.xpose.msra.mxu2 %v2438_v39  ;;  %829 = vmatpush.bf16.xpose.msra.mxu3 %v2442_v12  ;;  %v1870_v10 = vpop.eup %1869  ;;  %1881 = vpow2.f32 %v692_v53  ;;  %v686_v47 = vmul.f32 1.442695, %v607_v42  ;;  %v3313_v42 = vld [vmem:[#allocation6_spill] sm:$0xff] }
 0x23c   : > { %v1872_v14 = vpop.eup %1871  ;;  %v2464_v38 = vpack.c.bf16 %v1866_v59, %v1870_v10  ;;  %v690_v41 = vmul.f32 1.442695, %v609_v2  ;;  %1883 = vpow2.f32 %v694_v6  ;;  %v684_v7 = vmul.f32 1.442695, %v606_v50 }
 0x23d   : > { %v2468_v9 = vpack.c.bf16 %v1868_v17, %v1872_v14  ;;  %v1874_v5 = vpop.eup %1873  ;;  %1885 = vpow2.f32 %v688_v49  ;;  %v605_v17 = vsub.f32 %v2226_v44, %v2370_v0  ;;  %v680_v10 = vmul.f32 1.442695, %v604_v23 }
 0x23e   : > { %v2450_v16 = vpop.f32.mrf.mxu0  ;;  %3297 = vst [vmem:[#allocation27_spill] sm:$0xff] %v2464_v38  ;;  %v1876_v3 = vpop.eup %1875  ;;  %1887 = vpow2.f32 %v690_v41  ;;  %v496_v44 = vmax.f32 %v2190_v29, %v2192_v30  ;;  %v565_v0 = vmax.f32 %v2352_v27, %v2354_v45  ;;  %v556_v41 = vmax.f32 %v2330_v62, %v2332_v4 }
 0x23f   : > { %3295 = vst [vmem:[#allocation25_spill] sm:$0xff] %v2450_v16  ;;  %v2452_v55 = vpop.f32.mrf.mxu1  ;;  %v1878_v58 = vpop.eup %1877  ;;  %1889 = vpow2.f32 %v684_v7  ;;  %v550_v23 = vmax.f32 %v3313_v42, %v2316_v26  ;;  %v3315_v7 = vld [vmem:[#allocation10_spill] sm:$0xff]  ;;  %v3334_v16 = vld [vmem:[#allocation15_spill] sm:$0xff] }
 0x240   : > { %3296 = vst [vmem:[#allocation26_spill] sm:$0xff] %v2452_v55  ;;  %v1880_v20 = vpop.eup %1879  ;;  %v2488_v59 = vpack.c.bf16 %v1874_v5, %v1878_v58  ;;  %1891 = vpow2.f32 %v686_v47  ;;  %v499_v58 = vmax.f32 %v2196_v31, %v2198_v32 }
 0x241   : > { %1800 = vmatmul.msk.bf16.gmra.mxu0 %vm262_vm1, %v2286_v11  ;;  %3298 = vst [vmem:[#allocation28_spill] sm:$0xff] %v2468_v9  ;;  %v2492_v46 = vpack.c.bf16 %v1876_v3, %v1880_v20  ;;  %v1882_v63 = vpop.eup %1881  ;;  %1893 = vpow2.f32 %v680_v10  ;;  %v3317_v10 = vld [vmem:[#allocation13_spill] sm:$0xff] }
 0x242   : > { %503 = vmax.xlane.f32.xlu1 %v502_v56  ;;  %572 = vmax.xlane.f32.xlu2 %v571_v37  ;;  %3301 = vst [vmem:[#allocation31_spill] sm:$0xff] %v2488_v59  ;;  %v1884_v43 = vpop.eup %1883  ;;  %v682_v56 = vmul.f32 1.442695, %v605_v17  ;;  %v3314_v17 = vld [vmem:[#allocation11_spill] sm:$0xff] }
 0x243   : > { %1816 = vmatmul.msk.bf16.gmra.mxu1 %vm262_vm1, %v2286_v11  ;;  %817 = vmatpush.bf16.xpose.msra.mxu2 %v2464_v38  ;;  %v562_v11 = vmax.f32 %v2346_v15, %v2348_v18  ;;  %3302 = vst [vmem:[#allocation32_spill] sm:$0xff] %v2492_v46  ;;  %v1886_v14 = vpop.eup %1885  ;;  %v559_v47 = vmax.f32 %v3315_v7, %v3314_v17 }
 0x244   : > { %830 = vmatpush.bf16.xpose.msra.mxu3 %v2468_v9  ;;  %v1888_v48 = vpop.eup %1887  ;;  %v2508_v52 = vpack.c.bf16 %v1882_v63, %v1886_v14  ;;  %1895 = vpow2.f32 %v682_v56  ;;  %v3316_v63 = vld [vmem:[#allocation7_spill] sm:$0xff] }
 0x245   : > { %v2510_v2 = vpack.c.bf16 %v1884_v43, %v1888_v48  ;;  %v1890_v53 = vpop.eup %1889  ;;  %v3318_v43 = vld [vmem:[#allocation14_spill] sm:$0xff] }
 0x246   : > { %v2476_v40 = vpop.f32.mrf.mxu0  ;;  %3305 = vst [vmem:[#allocation35_spill] sm:$0xff] %v2508_v52  ;;  %v1892_v5 = vpop.eup %1891 }
 0x247   : > { %3299 = vst [vmem:[#allocation29_spill] sm:$0xff] %v2476_v40  ;;  %v2478_v13 = vpop.f32.mrf.mxu1  ;;  %v1894_v3 = vpop.eup %1893 }
 0x248   : > { %3300 = vst [vmem:[#allocation30_spill] sm:$0xff] %v2478_v13 }
 0x249   : > { %3306 = vst [vmem:[#allocation36_spill] sm:$0xff] %v2510_v2 }
 0x24a   : > { %563 = vmax.xlane.f32.xlu1 %v562_v11  ;;  %506 = vmax.xlane.f32.xlu2 %v505_v24  ;;  %v1896_v50 = vpop.eup %1895  ;;  %v2524_v11 = vpack.c.bf16 %v1890_v53, %v1894_v3  ;;  %v3323_v53 = vld [vmem:[#allocation9_spill] sm:$0xff] }
 0x24b   : > { %818 = vmatpush.bf16.xpose.msra.mxu2 %v2488_v59 }
 0x24c   : > { %831 = vmatpush.bf16.xpose.msra.mxu3 %v2492_v46  ;;  %3309 = vst [vmem:[#allocation39_spill] sm:$0xff] %v2524_v11 }
 0x24e   : > { %v2498_v8 = vpop.f32.mrf.mxu0 }
 0x24f   : > { %3303 = vst [vmem:[#allocation33_spill] sm:$0xff] %v2498_v8  ;;  %v2500_v37 = vpop.f32.mrf.mxu1  ;;  %v3338_v8 = vld [vmem:[#allocation17_spill] sm:$0xff] }
 0x250   : > { %3304 = vst [vmem:[#allocation34_spill] sm:$0xff] %v2500_v37 }
 0x251   : > { %1801 = vmatmul.msk.bf16.gmra.mxu0 %vm262_vm1, %v2306_v21 }
 0x252   : > { %497 = vmax.xlane.f32.xlu1 %v496_v44  ;;  %566 = vmax.xlane.f32.xlu2 %v565_v0  ;;  %v3321_v44 = vld [vmem:[#allocation3_spill] sm:$0xff]  ;;  %v3322_v0 = vld [vmem:[#allocation2_spill] sm:$0xff] }
 0x253   : > { %1817 = vmatmul.msk.bf16.gmra.mxu1 %vm262_vm1, %v2306_v21  ;;  %819 = vmatpush.bf16.xpose.msra.mxu2 %v2508_v52  ;;  %v2526_v21 = vpack.c.bf16 %v1892_v5, %v1896_v50  ;;  %v544_v48 = vmax.f32 %v3322_v0, %v3321_v44  ;;  %v3324_v5 = vld [vmem:[#allocation8_spill] sm:$0xff]  ;;  %v3327_v50 = vld [vmem:[#allocation5_spill] sm:$0xff] }
 0x254   : > { %832 = vmatpush.bf16.xpose.msra.mxu3 %v2510_v2  ;;  %v553_v3 = vmax.f32 %v3324_v5, %v3323_v53  ;;  %v3340_v52 = vld [vmem:[#allocation20_spill] sm:$0xff] }
 0x255   : > { %3310 = vst [vmem:[#allocation40_spill] sm:$0xff] %v2526_v21 }
 0x256   : > { %v2516_v6 = vpop.f32.mrf.mxu0 }
 0x257   : > { %3307 = vst [vmem:[#allocation37_spill] sm:$0xff] %v2516_v6  ;;  %v2518_v49 = vpop.f32.mrf.mxu1 }
 0x258   : > { %3308 = vst [vmem:[#allocation38_spill] sm:$0xff] %v2518_v49 }
 0x25a   : > { %557 = vmax.xlane.f32.xlu1 %v556_v41  ;;  %500 = vmax.xlane.f32.xlu2 %v499_v58 }
 0x25b   : > { %820 = vmatpush.bf16.xpose.msra.mxu2 %v2524_v11  ;;  %v3339_v11 = vld [vmem:[#allocation19_spill] sm:$0xff] }
 0x25c   : > { %833 = vmatpush.bf16.xpose.msra.mxu3 %v2526_v21 }
 0x25e   : > { %v2530_v24 = vpop.f32.mrf.mxu0 }
 0x25f   : > { %3311 = vst [vmem:[#allocation41_spill] sm:$0xff] %v2530_v24  ;;  %v2532_v20 = vpop.f32.mrf.mxu1 }
 0x260   : > { %3312 = vst [vmem:[#allocation42_spill] sm:$0xff] %v2532_v20 }
 0x261   : > { %1802 = vmatmul.msk.bf16.gmra.mxu0 %vm262_vm1, %v3316_v63 }
 0x262   : > { %551 = vmax.xlane.f32.xlu1 %v550_v23  ;;  %560 = vmax.xlane.f32.xlu2 %v559_v47  ;;  %v3328_v23 = vld [vmem:[#allocation4_spill] sm:$0xff] }
 0x263   : > { %1818 = vmatmul.msk.bf16.gmra.mxu1 %vm262_vm1, %v3316_v63  ;;  %821 = vmatpush.bf16.xpose.msra.mxu2 %v3317_v10  ;;  %v547_v47 = vmax.f32 %v3328_v23, %v3327_v50  ;;  %v3329_v63 = vld [vmem:[#allocation12_spill] sm:$0xff] }
 0x264   : > { %834 = vmatpush.bf16.xpose.msra.mxu3 %v3318_v43 }
 0x266   : > { %v2544_v56 = vpop.f32.mrf.mxu0 }
 0x267   : > { %3319 = vst [vmem:[#allocation6_spill] sm:$0xff] %v2544_v56  ;;  %v2546_v14 = vpop.f32.mrf.mxu1 }
 0x268   : > { %3320 = vst [vmem:[#allocation11_spill] sm:$0xff] %v2546_v14 }
 0x26a   : > { %545 = vmax.xlane.f32.xlu1 %v544_v48  ;;  %554 = vmax.xlane.f32.xlu2 %v553_v3 }
 0x26e   : > { %v2552_v41 = vpop.f32.mrf.mxu0 }
 0x26f   : > { %3325 = vst [vmem:[#allocation10_spill] sm:$0xff] %v2552_v41  ;;  %v2554_v58 = vpop.f32.mrf.mxu1 }
 0x270   : > { %3326 = vst [vmem:[#allocation7_spill] sm:$0xff] %v2554_v58 }
 0x271   : > { %1803 = vmatmul.msk.bf16.gmra.mxu0 %vm262_vm1, %v3329_v63 }
 0x272   : > { %548 = vmax.xlane.f32.xlu2 %v547_v47 }
 0x273   : > { %1819 = vmatmul.msk.bf16.gmra.mxu1 %vm262_vm1, %v3329_v63  ;;  %v3337_v63 = vld [vmem:[#allocation16_spill] sm:$0xff] }
 0x276   : > { %v2562_v40 = vpop.f32.mrf.mxu0 }
 0x277   : > { %3330 = vst [vmem:[#allocation3_spill] sm:$0xff] %v2562_v40  ;;  %v2564_v13 = vpop.f32.mrf.mxu1 }
 0x278   : > { %3331 = vst [vmem:[#allocation2_spill] sm:$0xff] %v2564_v13 }
 0x27e   : > { %v2566_v48 = vpop.f32.mrf.mxu0 }
 0x27f   : > { %3332 = vst [vmem:[#allocation9_spill] sm:$0xff] %v2566_v48  ;;  %v2568_v3 = vpop.f32.mrf.mxu1 }
 0x280   : > { %3333 = vst [vmem:[#allocation8_spill] sm:$0xff] %v2568_v3 }
 0x281   : > { %1804 = vmatmul.msk.bf16.gmra.mxu0 %vm262_vm1, %v3334_v16 }
 0x283   : > { %1820 = vmatmul.msk.bf16.gmra.mxu1 %vm262_vm1, %v3334_v16 }
 0x285   : > { %v576_v55 = vpop.xlane.xlu1 %575 }
 0x286   : > { %v2574_v6 = vpop.f32.mrf.mxu0  ;;  %v644_v49 = vsub.f32 %v3337_v63, %v576_v55  ;;  %v645_v37 = vsub.f32 %v3338_v8, %v576_v55  ;;  %v3343_v63 = vld [vmem:[#allocation18_spill] sm:$0xff] }
 0x287   : > { %3335 = vst [vmem:[#allocation5_spill] sm:$0xff] %v2574_v6  ;;  %v2576_v47 = vpop.f32.mrf.mxu1 }
 0x288   : > { %3336 = vst [vmem:[#allocation4_spill] sm:$0xff] %v2576_v47  ;;  %v760_v43 = vmul.f32 1.442695, %v644_v49  ;;  %v762_v10 = vmul.f32 1.442695, %v645_v37 }
 0x28a   : > { %1897 = vpow2.f32 %v760_v43 }
 0x28b   : > { %1899 = vpow2.f32 %v762_v10 }
 0x28d   : > { %v579_v21 = vpop.xlane.xlu2 %578 }
 0x28e   : > { %v646_v2 = vsub.f32 %v3339_v11, %v579_v21  ;;  %v647_v46 = vsub.f32 %v3340_v52, %v579_v21  ;;  %v2582_v59 = vpop.f32.mrf.mxu0 }
 0x28f   : > { %3341 = vst [vmem:[#allocation12_spill] sm:$0xff] %v2582_v59  ;;  %v2584_v9 = vpop.f32.mrf.mxu1 }
 0x290   : > { %3342 = vst [vmem:[#allocation15_spill] sm:$0xff] %v2584_v9  ;;  %v764_v16 = vmul.f32 1.442695, %v646_v2  ;;  %v766_v38 = vmul.f32 1.442695, %v647_v46  ;;  %v1218_v12 = vmax.f32 %v2582_v59, %v2584_v9  ;;  %v1898_v55 = vpop.eup %1897  ;;  %v1212_v2 = vmax.f32 %v2566_v48, %v2568_v3 }
 0x291   : > { %1805 = vmatmul.msk.bf16.gmra.mxu0 %vm262_vm1, %v3343_v63  ;;  %v1900_v37 = vpop.eup %1899  ;;  %v1203_v48 = vmax.f32 %v2544_v56, %v2546_v14 }
 0x292   : > { %1901 = vpow2.f32 %v764_v16  ;;  %1219 = vmax.xlane.f32.xlu2 %v1218_v12  ;;  %v1206_v16 = vmax.f32 %v2552_v41, %v2554_v58  ;;  %v1200_v58 = vmax.f32 %v2530_v24, %v2532_v20  ;;  %v1209_v41 = vmax.f32 %v2562_v40, %v2564_v13 }
 0x293   : > { %1903 = vpow2.f32 %v766_v38  ;;  %1821 = vmatmul.msk.bf16.gmra.mxu1 %vm262_vm1, %v3343_v63  ;;  %v1215_v63 = vmax.f32 %v2574_v6, %v2576_v47 }
 0x295   : > { %v2604_v38 = vpop.xlane.xlu1 %581 }
 0x296   : > { %v2592_v8 = vpop.f32.mrf.mxu0 }
 0x297   : > { %3344 = vst [vmem:[#allocation16_spill] sm:$0xff] %v2592_v8  ;;  %v2594_v52 = vpop.f32.mrf.mxu1 }
 0x298   : > { %3345 = vst [vmem:[#allocation17_spill] sm:$0xff] %v2594_v52  ;;  %v1902_v46 = vpop.eup %1901  ;;  %v1221_v49 = vmax.f32 %v2592_v8, %v2594_v52 }
 0x299   : > { %v1904_v11 = vpop.eup %1903  ;;  %v2600_v21 = vpack.c.bf16 %v1902_v46, %v1898_v55  ;;  %v3348_v46 = vld [vmem:[#allocation23_spill] sm:$0xff] }
 0x29a   : > { %1213 = vmax.xlane.f32.xlu2 %v1212_v2  ;;  %1222 = vmax.xlane.f32.xlu1 %v1221_v49  ;;  %v2602_v12 = vpack.c.bf16 %v1904_v11, %v1900_v37 }
 0x29d   : > { %v2620_v37 = vpop.xlane.xlu2 %584 }
 0x29e   : > { %v2606_v10 = vpop.f32.mrf.mxu0 }
 0x29f   : > { %3346 = vst [vmem:[#allocation19_spill] sm:$0xff] %v2606_v10  ;;  %v2608_v43 = vpop.f32.mrf.mxu1 }
 0x2a0   : > { %3347 = vst [vmem:[#allocation20_spill] sm:$0xff] %v2608_v43  ;;  %v1224_v55 = vmax.f32 %v2606_v10, %v2608_v43 }
 0x2a1   : > { %1806 = vmatmul.msk.bf16.gmra.mxu0 %vm262_vm1, %v3348_v46 }
 0x2a2   : > { %1207 = vmax.xlane.f32.xlu2 %v1206_v16  ;;  %1216 = vmax.xlane.f32.xlu1 %v1215_v63 }
 0x2a3   : > { %1225 = vmax.xlane.f32.xlu0 %v1224_v55  ;;  %1822 = vmatmul.msk.bf16.gmra.mxu1 %vm262_vm1, %v3348_v46  ;;  %v955_v46 = vpop.trf.xlu0 }
 0x2a5   : > { %v2622_v2 = vpop.xlane.xlu1 %587 }
 0x2a6   : > { %v2624_v49 = vpop.f32.mrf.mxu0 }
 0x2a7   : > { %3349 = vst [vmem:[#allocation18_spill] sm:$0xff] %v2624_v49  ;;  %v2626_v11 = vpop.f32.mrf.mxu1 }
 0x2a8   : > { %3350 = vst [vmem:[#allocation23_spill] sm:$0xff] %v2626_v11  ;;  %v1227_v13 = vmax.f32 %v2624_v49, %v2626_v11  ;;  %v653_v49 = vsub.f32 %v2418_v25, %v2622_v2  ;;  %v650_v25 = vsub.f32 %v2406_v22, %v2620_v37 }
 0x2aa   : > { %1201 = vmax.xlane.f32.xlu2 %v1200_v58  ;;  %1210 = vmax.xlane.f32.xlu1 %v1209_v41 }
 0x2ad   : > { %v2632_v16 = vpop.xlane.xlu1 %569  ;;  %v591_v63 = vpop.xlane.xlu2 %590 }
 0x2ae   : > { %v2634_v55 = vpop.f32.mrf.mxu0 }
 0x2af   : > { %v2636_v3 = vpop.f32.mrf.mxu1 }
 0x2b1   : > { %1807 = vmatmul.msk.bf16.gmra.mxu0 %vm262_vm1, %v955_v46 }
 0x2b2   : > { %1204 = vmax.xlane.f32.xlu1 %v1203_v48 }
 0x2b3   : > { %1823 = vmatmul.msk.bf16.gmra.mxu1 %vm262_vm1, %v955_v46 }
 0x2b5   : > { %v504_v20 = vpop.xlane.xlu1 %503  ;;  %v2642_v24 = vpop.xlane.xlu2 %572 }
 0x2b6   : > { %v2644_v41 = vpop.f32.mrf.mxu0  ;;  %v596_v14 = vsub.f32 %v2200_v33, %v504_v20  ;;  %v597_v48 = vsub.f32 %v2202_v34, %v504_v20  ;;  %v1230_v33 = vmax.f32 %v2634_v55, %v2636_v3  ;;  %v654_v20 = vsub.f32 %v2428_v1, %v591_v63 }
 0x2b7   : > { %v2646_v58 = vpop.f32.mrf.mxu1 }
 0x2b8   : > { %v1233_v40 = vmax.f32 %v2644_v41, %v2646_v58  ;;  %v664_v47 = vmul.f32 1.442695, %v596_v14  ;;  %v666_v8 = vmul.f32 1.442695, %v597_v48  ;;  %v780_v10 = vmul.f32 1.442695, %v654_v20 }
 0x2ba   : > { %1228 = vmax.xlane.f32.xlu1 %v1227_v13  ;;  %1234 = vmax.xlane.f32.xlu2 %v1233_v40  ;;  %1905 = vpow2.f32 %v664_v47 }
 0x2bb   : > { %1907 = vpow2.f32 %v666_v8 }
 0x2bd   : > { %v2654_v46 = vpop.xlane.xlu1 %563  ;;  %v507_v56 = vpop.xlane.xlu2 %506 }
 0x2be   : > { %v598_v6 = vsub.f32 %v2206_v35, %v507_v56  ;;  %v599_v9 = vsub.f32 %v2208_v36, %v507_v56  ;;  %v2658_v52 = vpop.f32.mrf.mxu0  ;;  %v652_v36 = vsub.f32 %v2416_v28, %v2622_v2  ;;  %v3357_v2 = vld [vmem:[#allocation21_spill] sm:$0xff] }
 0x2bf   : > { %3351 = vst [vmem:[#allocation43_spill] sm:$0xff] %v2658_v52 }
 0x2c0   : > { %v668_v59 = vmul.f32 1.442695, %v598_v6  ;;  %v2660_v43 = vpop.f32.mrf.mxu1  ;;  %v670_v40 = vmul.f32 1.442695, %v599_v9  ;;  %v1906_v6 = vpop.eup %1905  ;;  %v655_v9 = vsub.f32 %v2430_v60, %v591_v63  ;;  %v776_v48 = vmul.f32 1.442695, %v652_v36 }
 0x2c1   : > { %3352 = vst [vmem:[#allocation44_spill] sm:$0xff] %v2660_v43  ;;  %v1908_v14 = vpop.eup %1907 }
 0x2c2   : > { %1231 = vmax.xlane.f32.xlu1 %v1230_v33  ;;  %1909 = vpow2.f32 %v668_v59  ;;  %v782_v11 = vmul.f32 1.442695, %v655_v9  ;;  %v648_v9 = vsub.f32 %v3357_v2, %v2604_v38 }
 0x2c3   : > { %1911 = vpow2.f32 %v670_v40 }
 0x2c4   : > { %1913 = vpow2.f32 %v776_v48 }
 0x2c5   : > { %v2664_v34 = vpop.xlane.xlu2 %566  ;;  %v498_v13 = vpop.xlane.xlu1 %497  ;;  %1915 = vpow2.f32 %v780_v10 }
 0x2c6   : > { %v2666_v35 = vpop.f32.mrf.mxu0  ;;  %v592_v59 = vsub.f32 %v2190_v29, %v498_v13  ;;  %v593_v33 = vsub.f32 %v2192_v30, %v498_v13  ;;  %1917 = vpow2.f32 %v782_v11 }
 0x2c7   : > { %3353 = vst [vmem:[#allocation45_spill] sm:$0xff] %v2666_v35 }
 0x2c8   : > { %v2671_v56 = vpop.f32.mrf.mxu1  ;;  %v1910_v47 = vpop.eup %1909  ;;  %v656_v60 = vmul.f32 1.442695, %v592_v59  ;;  %v658_v36 = vmul.f32 1.442695, %v593_v33 }
 0x2c9   : > { %3354 = vst [vmem:[#allocation46_spill] sm:$0xff] %v2671_v56  ;;  %v1912_v8 = vpop.eup %1911  ;;  %v2676_v40 = vpack.c.bf16 %v1910_v47, %v1906_v6  ;;  %v3358_v47 = vld [vmem:[#allocation22_spill] sm:$0xff] }
 0x2ca   : > { %v2678_v28 = vpack.c.bf16 %v1912_v8, %v1908_v14  ;;  %v778_v14 = vmul.f32 1.442695, %v653_v49  ;;  %1919 = vpow2.f32 %v656_v60  ;;  %v649_v11 = vsub.f32 %v3358_v47, %v2604_v38 }
 0x2cb   : > { %822 = vmatpush.bf16.xpose.msra.mxu2 %v2676_v40  ;;  %1921 = vpow2.f32 %v658_v36  ;;  %v772_v8 = vmul.f32 1.442695, %v650_v25  ;;  %v643_v47 = vsub.f32 %v2366_v61, %v2642_v24 }
 0x2cc   : > { %835 = vmatpush.bf16.xpose.msra.mxu3 %v2678_v28  ;;  %v770_v60 = vmul.f32 1.442695, %v649_v11 }
 0x2cd   : > { %v501_v1 = vpop.xlane.xlu2 %500 }
 0x2ce   : > { %v594_v29 = vsub.f32 %v2196_v31, %v501_v1  ;;  %v595_v63 = vsub.f32 %v2198_v32, %v501_v1  ;;  %v2686_v30 = vpop.f32.mrf.mxu0  ;;  %v651_v31 = vsub.f32 %v2409_v19, %v2620_v37  ;;  %v1914_v32 = vpop.eup %1913  ;;  %v768_v37 = vmul.f32 1.442695, %v648_v9 }
 0x2cf   : > { %3355 = vst [vmem:[#allocation47_spill] sm:$0xff] %v2686_v30  ;;  %v1916_v10 = vpop.eup %1915  ;;  %v642_v9 = vsub.f32 %v2364_v57, %v2642_v24  ;;  %v758_v57 = vmul.f32 1.442695, %v643_v47 }
 0x2d0   : > { %v660_v13 = vmul.f32 1.442695, %v594_v29  ;;  %v2688_v6 = vpop.f32.mrf.mxu1  ;;  %v662_v20 = vmul.f32 1.442695, %v595_v63  ;;  %v1918_v59 = vpop.eup %1917  ;;  %v774_v48 = vmul.f32 1.442695, %v651_v31 }
 0x2d1   : > { %3356 = vst [vmem:[#allocation48_spill] sm:$0xff] %v2688_v6  ;;  %v1920_v22 = vpop.eup %1919 }
 0x2d2   : > { %1923 = vpow2.f32 %v660_v13  ;;  %v1922_v19 = vpop.eup %1921  ;;  %v2706_v13 = vpack.c.bf16 %v1916_v10, %v1914_v32 }
 0x2d3   : > { %1925 = vpow2.f32 %v662_v20 }
 0x2d4   : > { %1927 = vpow2.f32 %v778_v14 }
 0x2d5   : > { %1929 = vpow2.f32 %v772_v8 }
 0x2d6   : > { %v2698_v49 = vpop.f32.mrf.mxu0  ;;  %1931 = vpow2.f32 %v774_v48 }
 0x2d7   : > { %1933 = vpow2.f32 %v768_v37 }
 0x2d8   : > { %v2700_v33 = vpop.f32.mrf.mxu1  ;;  %v1924_v1 = vpop.eup %1923  ;;  %1935 = vpow2.f32 %v770_v60  ;;  %v637_v60 = vsub.f32 %v2348_v18, %v2654_v46 }
 0x2d9   : > { %v1926_v29 = vpop.eup %1925  ;;  %v2702_v63 = vpack.c.bf16 %v1924_v1, %v1920_v22  ;;  %v641_v22 = vsub.f32 %v2360_v54, %v2632_v16  ;;  %v639_v54 = vsub.f32 %v2354_v45, %v2664_v34  ;;  %v636_v1 = vsub.f32 %v2346_v15, %v2654_v46 }
 0x2da   : > { %v1928_v36 = vpop.eup %1927  ;;  %v2704_v38 = vpack.c.bf16 %v1926_v29, %v1922_v19  ;;  %v756_v19 = vmul.f32 1.442695, %v642_v9  ;;  %v558_v29 = vpop.xlane.xlu1 %557 }
 0x2db   : > { %823 = vmatpush.bf16.xpose.msra.mxu2 %v2702_v63  ;;  %v2709_v20 = vpack.c.bf16 %v1918_v59, %v1928_v36  ;;  %v1930_v31 = vpop.eup %1929  ;;  %v640_v59 = vsub.f32 %v2358_v51, %v2632_v16  ;;  %v754_v24 = vmul.f32 1.442695, %v641_v22  ;;  %v638_v51 = vsub.f32 %v2352_v27, %v2664_v34  ;;  %v561_v16 = vpop.xlane.xlu2 %560 }
 0x2dc   : > { %836 = vmatpush.bf16.xpose.msra.mxu3 %v2704_v38  ;;  %v1932_v2 = vpop.eup %1931  ;;  %1937 = vpow2.f32 %v756_v19  ;;  %v750_v27 = vmul.f32 1.442695, %v639_v54  ;;  %v634_v18 = vsub.f32 %v3315_v7, %v561_v16  ;;  %v228_v19 = vld [vmem:[%s2162_s20 + $0x40] sm:$0xff] }
 0x2dd   : > { %v1934_v32 = vpop.eup %1933  ;;  %v752_v61 = vmul.f32 1.442695, %v640_v59  ;;  %1939 = vpow2.f32 %v758_v57  ;;  %v632_v59 = vsub.f32 %v2330_v62, %v558_v29  ;;  %v229_v57 = vld [vmem:[%s2162_s20 + $0x48] sm:$0xff] }
 0x2de   : > { %v2713_v14 = vpop.f32.mrf.mxu0  ;;  %v1936_v10 = vpop.eup %1935  ;;  %v2722_v11 = vpack.c.bf16 %v1930_v31, %v1934_v32  ;;  %v748_v31 = vmul.f32 1.442695, %v638_v51  ;;  %v746_v32 = vmul.f32 1.442695, %v637_v60  ;;  %v2763_v51 = vpack.c.bf16 %v228_v19, %v228_v19 }
 0x2df   : > { %v2726_v8 = vpack.c.bf16 %v1932_v2, %v1936_v10  ;;  %1941 = vpow2.f32 %v752_v61  ;;  %v744_v2 = vmul.f32 1.442695, %v636_v1  ;;  %v635_v10 = vsub.f32 %v3314_v17, %v561_v16 }
 0x2e0   : > { %v2716_v25 = vpop.f32.mrf.mxu1  ;;  %1943 = vpow2.f32 %v754_v24  ;;  %v633_v61 = vsub.f32 %v2332_v4, %v558_v29  ;;  %v2765_v17 = vpack.c.bf16 %v229_v57, %v229_v57  ;;  %v740_v54 = vmul.f32 1.442695, %v634_v18 }
 0x2e1   : > { %1945 = vpow2.f32 %v748_v31  ;;  %v742_v16 = vmul.f32 1.442695, %v635_v10  ;;  %v736_v60 = vmul.f32 1.442695, %v632_v59 }
 0x2e2   : > { %v1938_v34 = vpop.eup %1937  ;;  %1947 = vpow2.f32 %v750_v27  ;;  %v552_v62 = vpop.xlane.xlu1 %551  ;;  %824 = vmatmul.bf16.vlgmr.msra.gmra.mxu2 %v2763_v51  ;;  %v738_v31 = vmul.f32 1.442695, %v633_v61 }
 0x2e3   : > { %842 = vmatpush.bf16.xpose.msrb.mxu2 %v2706_v13  ;;  %v1940_v15 = vpop.eup %1939  ;;  %1949 = vpow2.f32 %v744_v2  ;;  %v555_v24 = vpop.xlane.xlu2 %554  ;;  %837 = vmatmul.bf16.vlgmr.msra.gmra.mxu3 %v2765_v17 }
 0x2e4   : > { %855 = vmatpush.bf16.xpose.msrb.mxu3 %v2709_v20  ;;  %1951 = vpow2.f32 %v746_v32 }
 0x2e5   : > { %v1942_v9 = vpop.eup %1941  ;;  %1953 = vpow2.f32 %v740_v54 }
 0x2e6   : > { %v2731_v48 = vpop.f32.mrf.mxu0  ;;  %v1944_v46 = vpop.eup %1943  ;;  %v2752_v47 = vpack.c.bf16 %v1938_v34, %v1942_v9  ;;  %v630_v34 = vsub.f32 %v3324_v5, %v555_v24  ;;  %1955 = vpow2.f32 %v742_v16  ;;  %v628_v9 = vsub.f32 %v3313_v42, %v552_v62 }
 0x2e7   : > { %v2755_v22 = vpack.c.bf16 %v1940_v15, %v1944_v46  ;;  %v1946_v4 = vpop.eup %1945  ;;  %v631_v15 = vsub.f32 %v3323_v53, %v555_v24  ;;  %1957 = vpow2.f32 %v736_v60  ;;  %v629_v46 = vsub.f32 %v2316_v26, %v552_v62 }
 0x2e8   : > { %v2734_v37 = vpop.f32.mrf.mxu1  ;;  %v1948_v29 = vpop.eup %1947  ;;  %1959 = vpow2.f32 %v738_v31  ;;  %v732_v59 = vmul.f32 1.442695, %v630_v34  ;;  %v728_v61 = vmul.f32 1.442695, %v628_v9 }
 0x2e9   : > { %v1950_v27 = vpop.eup %1949  ;;  %v734_v5 = vmul.f32 1.442695, %v631_v15  ;;  %v730_v42 = vmul.f32 1.442695, %v629_v46 }
 0x2ea   : > { %v1952_v2 = vpop.eup %1951  ;;  %v2774_v32 = vpack.c.bf16 %v1946_v4, %v1950_v27  ;;  %v546_v54 = vpop.xlane.xlu1 %545  ;;  %1961 = vpow2.f32 %v732_v59 }
 0x2eb   : > { %843 = vmatpush.bf16.xpose.msrb.mxu2 %v2722_v11  ;;  %v2777_v18 = vpack.c.bf16 %v1948_v29, %v1952_v2  ;;  %v549_v19 = vpop.xlane.xlu2 %548  ;;  %v1954_v57 = vpop.eup %1953  ;;  %1963 = vpow2.f32 %v734_v5  ;;  %v624_v29 = vsub.f32 %v3322_v0, %v546_v54  ;;  %v625_v27 = vsub.f32 %v3321_v44, %v546_v54 }
 0x2ec   : > { %856 = vmatpush.bf16.xpose.msrb.mxu3 %v2726_v8  ;;  %v1956_v24 = vpop.eup %1955  ;;  %v626_v26 = vsub.f32 %v3328_v23, %v549_v19  ;;  %v627_v4 = vsub.f32 %v3327_v50, %v549_v19  ;;  %1965 = vpow2.f32 %v728_v61 }
 0x2ed   : > { %v1958_v16 = vpop.eup %1957  ;;  %1967 = vpow2.f32 %v730_v42  ;;  %v720_v9 = vmul.f32 1.442695, %v624_v29  ;;  %v722_v59 = vmul.f32 1.442695, %v625_v27  ;;  %v3361_v27 = vld [vmem:[#allocation24_spill] sm:$0xff] }
 0x2ee   : > { %v2745_v36 = vpop.f32.mrf.mxu0  ;;  %v1960_v62 = vpop.eup %1959  ;;  %v2788_v60 = vpack.c.bf16 %v1954_v57, %v1958_v16  ;;  %v724_v2 = vmul.f32 1.442695, %v626_v26  ;;  %v726_v23 = vmul.f32 1.442695, %v627_v4 }
 0x2ef   : > { %v2791_v31 = vpack.c.bf16 %v1956_v24, %v1960_v62 }
 0x2f0   : > { %v2748_v45 = vpop.f32.mrf.mxu1  ;;  %v1962_v50 = vpop.eup %1961  ;;  %1969 = vpow2.f32 %v724_v2 }
 0x2f1   : > { %v1964_v46 = vpop.eup %1963  ;;  %1971 = vpow2.f32 %v726_v23 }
 0x2f2   : > { %v1966_v0 = vpop.eup %1965  ;;  %1973 = vpow2.f32 %v720_v9  ;;  %v3362_v9 = vld [vmem:[#allocation27_spill] sm:$0xff] }
 0x2f3   : > { %844 = vmatpush.bf16.xpose.msrb.mxu2 %v2600_v21  ;;  %v1968_v5 = vpop.eup %1967  ;;  %v2800_v19 = vpack.c.bf16 %v1962_v50, %v1966_v0  ;;  %1975 = vpow2.f32 %v722_v59 }
 0x2f4   : > { %857 = vmatpush.bf16.xpose.msrb.mxu3 %v2602_v12  ;;  %v2802_v44 = vpack.c.bf16 %v1964_v46, %v1968_v5  ;;  %v3363_v46 = vld [vmem:[#allocation28_spill] sm:$0xff]  ;;  %v3365_v5 = vld [vmem:[#allocation31_spill] sm:$0xff] }
 0x2f6   : > { %v2761_v7 = vpop.f32.mrf.mxu0  ;;  %v1970_v24 = vpop.eup %1969 }
 0x2f7   : > { %v1972_v54 = vpop.eup %1971 }
 0x2f8   : > { %v2768_v1 = vpop.f32.mrf.mxu1  ;;  %v1974_v16 = vpop.eup %1973 }
 0x2f9   : > { %v1976_v26 = vpop.eup %1975  ;;  %v2812_v62 = vpack.c.bf16 %v1970_v24, %v1974_v16  ;;  %v3366_v24 = vld [vmem:[#allocation32_spill] sm:$0xff] }
 0x2fa   : > { %v2814_v4 = vpack.c.bf16 %v1972_v54, %v1976_v26  ;;  %v3367_v54 = vld [vmem:[#allocation35_spill] sm:$0xff]  ;;  %v3368_v16 = vld [vmem:[#allocation36_spill] sm:$0xff] }
 0x2fb   : > { %845 = vmatpush.bf16.xpose.msrb.mxu2 %v2752_v47 }
 0x2fc   : > { %858 = vmatpush.bf16.xpose.msrb.mxu3 %v2755_v22 }
 0x2fe   : > { %v2781_v10 = vpop.f32.mrf.mxu0 }
 0x2ff   : > { %3359 = vst [vmem:[#allocation21_spill] sm:$0xff] %v2781_v10 }
 0x300   : > { %v2784_v53 = vpop.f32.mrf.mxu1 }
 0x301   : > { %3360 = vst [vmem:[#allocation22_spill] sm:$0xff] %v2784_v53 }
 0x303   : > { %846 = vmatpush.bf16.xpose.msrb.mxu2 %v2774_v32 }
 0x304   : > { %859 = vmatpush.bf16.xpose.msrb.mxu3 %v2777_v18 }
 0x306   : > { %v2795_v34 = vpop.f32.mrf.mxu0 }
 0x308   : > { %v2798_v15 = vpop.f32.mrf.mxu1 }
 0x30b   : > { %847 = vmatpush.bf16.xpose.msrb.mxu2 %v2788_v60 }
 0x30c   : > { %860 = vmatpush.bf16.xpose.msrb.mxu3 %v2791_v31 }
 0x30e   : > { %v2805_v57 = vpop.f32.mrf.mxu0 }
 0x310   : > { %v2808_v61 = vpop.f32.mrf.mxu1 }
 0x311   : > { %v1266_v42 = vmax.f32 %v2805_v57, %v2808_v61 }
 0x313   : > { %848 = vmatpush.bf16.xpose.msrb.mxu2 %v2800_v19  ;;  %1267 = vmax.xlane.f32.xlu2 %v1266_v42 }
 0x314   : > { %861 = vmatpush.bf16.xpose.msrb.mxu3 %v2802_v44 }
 0x316   : > { %v2817_v29 = vpop.f32.mrf.mxu0 }
 0x318   : > { %v2822_v2 = vpop.f32.mrf.mxu1 }
 0x319   : > { %v1269_v23 = vmax.f32 %v2817_v29, %v2822_v2 }
 0x31b   : > { %849 = vmatpush.bf16.xpose.msrb.mxu2 %v2812_v62  ;;  %1270 = vmax.xlane.f32.xlu1 %v1269_v23 }
 0x31c   : > { %862 = vmatpush.bf16.xpose.msrb.mxu3 %v2814_v4 }
 0x31e   : > { %v2827_v50 = vpop.f32.mrf.mxu0 }
 0x320   : > { %v2832_v59 = vpop.f32.mrf.mxu1 }
 0x321   : > { %3364 = vst [vmem:[#allocation24_spill] sm:$0xff] %v2832_v59 }
 0x322   : > { %850 = vmatmul.bf16.vlgmr.msrb.gmra.mxu2 %v2763_v51 }
 0x323   : > { %868 = vmatpush.bf16.xpose.msra.mxu2 %v2438_v39  ;;  %863 = vmatmul.bf16.vlgmr.msrb.gmra.mxu3 %v2765_v17  ;;  %v1272_v39 = vmax.f32 %v2827_v50, %v2832_v59 }
 0x324   : > { %881 = vmatpush.bf16.xpose.msra.mxu3 %v3361_v27 }
 0x325   : > { %1273 = vmax.xlane.f32.xlu2 %v1272_v39 }
 0x326   : > { %v2836_v0 = vpop.f32.mrf.mxu0 }
 0x328   : > { %v2840_v51 = vpop.f32.mrf.mxu1 }
 0x329   : > { %v1275_v17 = vmax.f32 %v2836_v0, %v2840_v51 }
 0x32b   : > { %869 = vmatpush.bf16.xpose.msra.mxu2 %v3362_v9  ;;  %1276 = vmax.xlane.f32.xlu1 %v1275_v17  ;;  %v3369_v9 = vld [vmem:[#allocation39_spill] sm:$0xff]  ;;  %v3371_v17 = vld [vmem:[#allocation13_spill] sm:$0xff] }
 0x32c   : > { %882 = vmatpush.bf16.xpose.msra.mxu3 %v3363_v46  ;;  %v3370_v46 = vld [vmem:[#allocation40_spill] sm:$0xff] }
 0x32e   : > { %v2844_v42 = vpop.f32.mrf.mxu0 }
 0x330   : > { %v2848_v26 = vpop.f32.mrf.mxu1 }
 0x331   : > { %v1278_v27 = vmax.f32 %v2844_v42, %v2848_v26 }
 0x333   : > { %870 = vmatpush.bf16.xpose.msra.mxu2 %v3365_v5  ;;  %1279 = vmax.xlane.f32.xlu2 %v1278_v27  ;;  %v1260_v5 = vmax.f32 %v2781_v10, %v2784_v53  ;;  %v3373_v27 = vld [vmem:[#allocation34_spill] sm:$0xff]  ;;  %v2878_v10 = vpop.xlane.xlu2 %1219 }
 0x334   : > { %883 = vmatpush.bf16.xpose.msra.mxu3 %v3366_v24 }
 0x336   : > { %v2852_v23 = vpop.f32.mrf.mxu0 }
 0x338   : > { %v2856_v39 = vpop.f32.mrf.mxu1 }
 0x339   : > { %v1281_v24 = vmax.f32 %v2852_v23, %v2856_v39 }
 0x33b   : > { %871 = vmatpush.bf16.xpose.msra.mxu2 %v3367_v54  ;;  %1261 = vmax.xlane.f32.xlu2 %v1260_v5  ;;  %v3372_v54 = vld [vmem:[#allocation14_spill] sm:$0xff]  ;;  %v1254_v5 = vmax.f32 %v2745_v36, %v2748_v45 }
 0x33c   : > { %884 = vmatpush.bf16.xpose.msra.mxu3 %v3368_v16  ;;  %1282 = vmax.xlane.f32.xlu1 %v1281_v24  ;;  %v2864_v16 = vpop.xlane.xlu1 %1222  ;;  %v3375_v24 = vld [vmem:[#allocation38_spill] sm:$0xff] }
 0x343   : > { %872 = vmatpush.bf16.xpose.msra.mxu2 %v3369_v9  ;;  %v3374_v9 = vld [vmem:[#allocation33_spill] sm:$0xff] }
 0x344   : > { %885 = vmatpush.bf16.xpose.msra.mxu3 %v3370_v46  ;;  %v1194_v59 = vmax.f32 %v3374_v9, %v3373_v27  ;;  %v1263_v46 = vmax.f32 %v2795_v34, %v2798_v15  ;;  %v2876_v53 = vpop.xlane.xlu1 %1216 }
 0x346   : > { %1195 = vmax.xlane.f32.xlu2 %v1194_v59  ;;  %1264 = vmax.xlane.f32.xlu1 %v1263_v46  ;;  %v1257_v46 = vmax.f32 %v2761_v7, %v2768_v1 }
 0x34b   : > { %873 = vmatpush.bf16.xpose.msra.mxu2 %v3371_v17  ;;  %v3376_v17 = vld [vmem:[#allocation37_spill] sm:$0xff] }
 0x34c   : > { %886 = vmatpush.bf16.xpose.msra.mxu3 %v3372_v54  ;;  %v1197_v54 = vmax.f32 %v3376_v17, %v3375_v24 }
 0x34e   : > { %1255 = vmax.xlane.f32.xlu2 %v1254_v5  ;;  %1198 = vmax.xlane.f32.xlu1 %v1197_v54  ;;  %v2888_v5 = vpop.xlane.xlu1 %1210  ;;  %v3264_v54 = vmov 1065369472  }
 0x353   : > { %874 = vmatpush.bf16.xpose.msra.mxu2 %v2676_v40  ;;  %v3377_v40 = vld [vmem:[#allocation26_spill] sm:$0xff] }
 0x354   : > { %887 = vmatpush.bf16.xpose.msra.mxu3 %v2678_v28  ;;  %v3378_v28 = vld [vmem:[#allocation25_spill] sm:$0xff] }
 0x355   : > { %v1188_v59 = vmax.f32 %v3378_v28, %v3377_v40 }
 0x356   : > { %1258 = vmax.xlane.f32.xlu1 %v1257_v46  ;;  %v2900_v46 = vpop.xlane.xlu1 %1204 }
 0x357   : > { %1189 = vmax.xlane.f32.xlu2 %v1188_v59 }
 0x35b   : > { %875 = vmatpush.bf16.xpose.msra.mxu2 %v2702_v63  ;;  %v2893_v63 = vpop.xlane.xlu2 %1213 }
 0x35c   : > { %888 = vmatpush.bf16.xpose.msra.mxu3 %v2704_v38  ;;  %v1248_v38 = vmax.f32 %v2713_v14, %v2716_v25 }
 0x35f   : > { %1249 = vmax.xlane.f32.xlu2 %v1248_v38  ;;  %v1229_v38 = vpop.xlane.xlu1 %1228 }
 0x362   : > { %876 = vmatmul.bf16.vlgmr.msra.gmra.mxu2 %v3264_v54 }
 0x363   : > { %894 = vmatpush.bf16.xpose.msrb.mxu2 %v2706_v13  ;;  %889 = vmatmul.bf16.vlgmr.msra.gmra.mxu3 %v3264_v54  ;;  %v3379_v13 = vld [vmem:[#allocation30_spill] sm:$0xff]  ;;  %v2908_v54 = vpop.xlane.xlu2 %1207 }
 0x364   : > { %907 = vmatpush.bf16.xpose.msrb.mxu3 %v2709_v20  ;;  %v3380_v20 = vld [vmem:[#allocation29_spill] sm:$0xff] }
 0x365   : > { %v1191_v59 = vmax.f32 %v3380_v20, %v3379_v13 }
 0x367   : > { %1192 = vmax.xlane.f32.xlu1 %v1191_v59 }
 0x36b   : > { %895 = vmatpush.bf16.xpose.msrb.mxu2 %v2722_v11  ;;  %v1242_v11 = vmax.f32 %v2686_v30, %v2688_v6  ;;  %v2916_v59 = vpop.xlane.xlu2 %1201  ;;  %v1226_v6 = vpop.xlane.xlu0 %1225  ;;  %v3382_v30 = vld [vmem:[#allocation23_spill] sm:$0xff] }
 0x36c   : > { %908 = vmatpush.bf16.xpose.msrb.mxu3 %v2726_v8  ;;  %v1251_v8 = vmax.f32 %v2731_v48, %v2734_v37 }
 0x36d   : > { %1243 = vmax.xlane.f32.xlu2 %v1242_v11  ;;  %v1232_v11 = vpop.xlane.xlu1 %1231 }
 0x36f   : > { %1252 = vmax.xlane.f32.xlu1 %v1251_v8  ;;  %v1312_v8 = vsub.f32 %v2634_v55, %v1232_v11  ;;  %v1311_v55 = vsub.f32 %v3382_v30, %v1229_v38  ;;  %v3386_v30 = vld [vmem:[#allocation16_spill] sm:$0xff] }
 0x373   : > { %896 = vmatpush.bf16.xpose.msrb.mxu2 %v2600_v21  ;;  %v1236_v21 = vmax.f32 %v2658_v52, %v2660_v43  ;;  %v1313_v43 = vsub.f32 %v2636_v3, %v1232_v11  ;;  %v3383_v3 = vld [vmem:[#allocation19_spill] sm:$0xff] }
 0x374   : > { %909 = vmatpush.bf16.xpose.msrb.mxu3 %v2602_v12  ;;  %v1245_v12 = vmax.f32 %v2698_v49, %v2700_v33  ;;  %v1308_v11 = vsub.f32 %v3383_v3, %v1226_v6 }
 0x375   : > { %1237 = vmax.xlane.f32.xlu2 %v1236_v21 }
 0x377   : > { %1246 = vmax.xlane.f32.xlu1 %v1245_v12 }
 0x37b   : > { %897 = vmatpush.bf16.xpose.msrb.mxu2 %v2752_v47  ;;  %v1239_v47 = vmax.f32 %v2666_v35, %v2671_v56  ;;  %v3381_v35 = vld [vmem:[#allocation18_spill] sm:$0xff] }
 0x37c   : > { %910 = vmatpush.bf16.xpose.msrb.mxu3 %v2755_v22  ;;  %v1235_v22 = vpop.xlane.xlu2 %1234 }
 0x37d   : > { %v1314_v52 = vsub.f32 %v2644_v41, %v1235_v22  ;;  %v1315_v21 = vsub.f32 %v2646_v58, %v1235_v22  ;;  %v3384_v41 = vld [vmem:[#allocation20_spill] sm:$0xff]  ;;  %v1396_v22 = vmul.f32 1.442695, %v1308_v11 }
 0x37e   : > { %v1309_v58 = vsub.f32 %v3384_v41, %v1226_v6 }
 0x37f   : > { %1240 = vmax.xlane.f32.xlu1 %v1239_v47  ;;  %v1408_v12 = vmul.f32 1.442695, %v1314_v52  ;;  %v1410_v56 = vmul.f32 1.442695, %v1315_v21  ;;  %v1310_v47 = vsub.f32 %v3381_v35, %v1229_v38  ;;  %v1402_v52 = vmul.f32 1.442695, %v1311_v55 }
 0x380   : > { %v1306_v38 = vsub.f32 %v3386_v30, %v2864_v16  ;;  %v1398_v21 = vmul.f32 1.442695, %v1309_v58 }
 0x382   : > { %v1392_v11 = vmul.f32 1.442695, %v1306_v38  ;;  %v3390_v38 = vld [vmem:[#allocation4_spill] sm:$0xff] }
 0x383   : > { %898 = vmatpush.bf16.xpose.msrb.mxu2 %v2774_v32  ;;  %v1404_v32 = vmul.f32 1.442695, %v1312_v8 }
 0x384   : > { %911 = vmatpush.bf16.xpose.msrb.mxu3 %v2777_v18  ;;  %v1406_v18 = vmul.f32 1.442695, %v1313_v43  ;;  %v1400_v43 = vmul.f32 1.442695, %v1310_v47 }
 0x385   : > { %1977 = vpow2.f32 %v1404_v32 }
 0x386   : > { %1979 = vpow2.f32 %v1406_v18 }
 0x387   : > { %1981 = vpow2.f32 %v1408_v12  ;;  %v3388_v12 = vld [vmem:[#allocation15_spill] sm:$0xff] }
 0x388   : > { %1983 = vpow2.f32 %v1410_v56  ;;  %v1268_v56 = vpop.xlane.xlu2 %1267  ;;  %v1305_v47 = vsub.f32 %v3388_v12, %v2878_v10 }
 0x389   : > { %1985 = vpow2.f32 %v1400_v43  ;;  %v1336_v41 = vsub.f32 %v2805_v57, %v1268_v56  ;;  %v1337_v58 = vsub.f32 %v2808_v61, %v1268_v56 }
 0x38a   : > { %1987 = vpow2.f32 %v1402_v52  ;;  %v1390_v43 = vmul.f32 1.442695, %v1305_v47  ;;  %v825_v52 = vpop.f32.mrf.mxu2 }
 0x38b   : > { %899 = vmatpush.bf16.xpose.msrb.mxu2 %v2788_v60  ;;  %v1978_v60 = vpop.eup %1977  ;;  %1989 = vpow2.f32 %v1396_v22 }
 0x38c   : > { %912 = vmatpush.bf16.xpose.msrb.mxu3 %v2791_v31  ;;  %v3385_v31 = vld [vmem:[#allocation12_spill] sm:$0xff]  ;;  %v1980_v8 = vpop.eup %1979  ;;  %1991 = vpow2.f32 %v1398_v21  ;;  %v1303_v21 = vsub.f32 %v3390_v38, %v2876_v53  ;;  %v3396_v38 = vld [vmem:[#allocation10_spill] sm:$0xff] }
 0x38d   : > { %v1304_v35 = vsub.f32 %v3385_v31, %v2878_v10  ;;  %v1982_v32 = vpop.eup %1981  ;;  %v1452_v31 = vmul.f32 1.442695, %v1336_v41 }
 0x38e   : > { %v1984_v6 = vpop.eup %1983  ;;  %v1271_v30 = vpop.xlane.xlu1 %1270 }
 0x38f   : > { %v1388_v55 = vmul.f32 1.442695, %v1304_v35  ;;  %v2945_v3 = vpack.c.bf16 %v1984_v6, %v1980_v8  ;;  %v1986_v10 = vpop.eup %1985  ;;  %v1454_v8 = vmul.f32 1.442695, %v1337_v58  ;;  %v3392_v6 = vld [vmem:[#allocation9_spill] sm:$0xff] }
 0x390   : > { %v1300_v12 = vsub.f32 %v3392_v6, %v2893_v63  ;;  %v1386_v58 = vmul.f32 1.442695, %v1303_v21  ;;  %v1296_v21 = vsub.f32 %v3396_v38, %v2908_v54  ;;  %v3397_v6 = vld [vmem:[#allocation7_spill] sm:$0xff] }
 0x391   : > { %1993 = vpow2.f32 %v1388_v55  ;;  %v3393_v55 = vld [vmem:[#allocation8_spill] sm:$0xff] }
 0x392   : > { %1995 = vpow2.f32 %v1392_v11  ;;  %v1301_v11 = vsub.f32 %v3393_v55, %v2893_v63 }
 0x393   : > { %900 = vmatpush.bf16.xpose.msrb.mxu2 %v2800_v19  ;;  %v3387_v19 = vld [vmem:[#allocation17_spill] sm:$0xff] }
 0x394   : > { %913 = vmatpush.bf16.xpose.msrb.mxu3 %v2802_v44  ;;  %v1307_v18 = vsub.f32 %v3387_v19, %v2864_v16  ;;  %v2940_v44 = vpack.c.bf16 %v1982_v32, %v1978_v60  ;;  %v1988_v60 = vpop.eup %1987  ;;  %v3391_v32 = vmov 1065369472   ;;  %v1338_v19 = vsub.f32 %v2817_v29, %v1271_v30 }
 0x395   : > { %v1990_v57 = vpop.eup %1989 }
 0x396   : > { %v1394_v16 = vmul.f32 1.442695, %v1307_v18  ;;  %v1992_v61 = vpop.eup %1991  ;;  %v1339_v18 = vsub.f32 %v2822_v2, %v1271_v30  ;;  %v2961_v56 = vpack.c.bf16 %v1986_v10, %v1990_v57 }
 0x397   : > { %v2966_v47 = vpack.c.bf16 %v1988_v60, %v1992_v61  ;;  %v1994_v29 = vpop.eup %1993  ;;  %v1382_v60 = vmul.f32 1.442695, %v1301_v11 }
 0x398   : > { %1997 = vpow2.f32 %v1394_v16  ;;  %v1458_v41 = vmul.f32 1.442695, %v1339_v18  ;;  %v1996_v16 = vpop.eup %1995 }
 0x399   : > { %1999 = vpow2.f32 %v1390_v43  ;;  %v1380_v43 = vmul.f32 1.442695, %v1300_v12  ;;  %v2976_v30 = vpack.c.bf16 %v1996_v16, %v1994_v29  ;;  %v1297_v12 = vsub.f32 %v3397_v6, %v2908_v54 }
 0x39a   : > { %2001 = vpow2.f32 %v1452_v31  ;;  %v3394_v31 = vld [vmem:[#allocation3_spill] sm:$0xff] }
 0x39b   : > { %901 = vmatpush.bf16.xpose.msrb.mxu2 %v2812_v62  ;;  %v838_v62 = vpop.f32.mrf.mxu3  ;;  %2003 = vpow2.f32 %v1454_v8  ;;  %v1298_v57 = vsub.f32 %v3394_v31, %v2888_v5 }
 0x39c   : > { %914 = vmatpush.bf16.xpose.msrb.mxu3 %v2814_v4  ;;  %v2952_v35 = vadd.f32 %v838_v62, %v825_v52  ;;  %v3389_v4 = vld [vmem:[#allocation5_spill] sm:$0xff]  ;;  %v827_v52 = vpop.f32.mrf.mxu2 }
 0x39d   : > { %v1302_v22 = vsub.f32 %v3389_v4, %v2876_v53  ;;  %v1456_v53 = vmul.f32 1.442695, %v1338_v19  ;;  %v1376_v11 = vmul.f32 1.442695, %v1298_v57  ;;  %v2992_v52 = vpop.xlane.xlu2 %1273  ;;  %v3400_v57 = vld [vmem:[#allocation41_spill] sm:$0xff] }
 0x39e   : > { %v1998_v10 = vpop.eup %1997 }
 0x39f   : > { %v1384_v2 = vmul.f32 1.442695, %v1302_v22  ;;  %2005 = vpow2.f32 %v1456_v53  ;;  %v2000_v63 = vpop.eup %1999  ;;  %v3395_v22 = vld [vmem:[#allocation2_spill] sm:$0xff] }
 0x3a0   : > { %2007 = vpow2.f32 %v1458_v41  ;;  %v2002_v4 = vpop.eup %2001  ;;  %v1299_v8 = vsub.f32 %v3395_v22, %v2888_v5  ;;  %v2980_v19 = vpack.c.bf16 %v1998_v10, %v2000_v63 }
 0x3a1   : > { %2009 = vpow2.f32 %v1384_v2  ;;  %v2004_v61 = vpop.eup %2003  ;;  %v1372_v2 = vmul.f32 1.442695, %v1296_v21 }
 0x3a2   : > { %902 = vmatmul.bf16.vlgmr.msrb.gmra.mxu2 %v3391_v32  ;;  %2011 = vpow2.f32 %v1386_v58  ;;  %v1378_v53 = vmul.f32 1.442695, %v1299_v8  ;;  %v1374_v58 = vmul.f32 1.442695, %v1297_v12  ;;  %v3401_v8 = vld [vmem:[#allocation42_spill] sm:$0xff] }
 0x3a3   : > { %1508 = vmatpush.bf16.xpose.msra.mxu2 %v2940_v44  ;;  %915 = vmatmul.bf16.vlgmr.msrb.gmra.mxu3 %v3391_v32  ;;  %v840_v62 = vpop.f32.mrf.mxu3  ;;  %2013 = vpow2.f32 %v1380_v43  ;;  %v3398_v43 = vld [vmem:[#allocation6_spill] sm:$0xff] }
 0x3a4   : > { %1521 = vmatpush.bf16.xpose.msra.mxu3 %v2945_v3  ;;  %2015 = vpow2.f32 %v1382_v60  ;;  %v1294_v54 = vsub.f32 %v3398_v43, %v2900_v46  ;;  %v3399_v60 = vld [vmem:[#allocation11_spill] sm:$0xff] }
 0x3a5   : > { %v2006_v18 = vpop.eup %2005  ;;  %2017 = vpow2.f32 %v1376_v11  ;;  %v1295_v63 = vsub.f32 %v3399_v60, %v2900_v46  ;;  %v3006_v11 = vpop.xlane.xlu1 %1276 }
 0x3a6   : > { %v2008_v55 = vpop.eup %2007  ;;  %v2986_v5 = vpack.c.bf16 %v2006_v18, %v2002_v4  ;;  %2019 = vpow2.f32 %v1378_v53  ;;  %v1292_v4 = vsub.f32 %v3400_v57, %v2916_v59  ;;  %v1368_v38 = vmul.f32 1.442695, %v1294_v54  ;;  %v3008_v53 = vpop.xlane.xlu2 %1279 }
 0x3a7   : > { %v2988_v41 = vpack.c.bf16 %v2008_v55, %v2004_v61  ;;  %v2010_v29 = vpop.eup %2009  ;;  %2021 = vpow2.f32 %v1372_v2  ;;  %v1293_v61 = vsub.f32 %v3401_v8, %v2916_v59  ;;  %v1370_v21 = vmul.f32 1.442695, %v1295_v63 }
 0x3a8   : > { %v2012_v16 = vpop.eup %2011  ;;  %2023 = vpow2.f32 %v1374_v58  ;;  %v1364_v46 = vmul.f32 1.442695, %v1292_v4  ;;  %v851_v58 = vpop.f32.mrf.mxu2 }
 0x3a9   : > { %v2014_v10 = vpop.eup %2013  ;;  %v1366_v12 = vmul.f32 1.442695, %v1293_v61  ;;  %2025 = vpow2.f32 %v1368_v38 }
 0x3aa   : > { %v2016_v62 = vpop.eup %2015  ;;  %v2996_v31 = vpack.c.bf16 %v2010_v29, %v2014_v10  ;;  %2027 = vpow2.f32 %v1370_v21 }
 0x3ab   : > { %1509 = vmatpush.bf16.xpose.msra.mxu2 %v2961_v56  ;;  %v3000_v22 = vpack.c.bf16 %v2012_v16, %v2016_v62  ;;  %v2018_v18 = vpop.eup %2017  ;;  %2029 = vpow2.f32 %v1364_v46  ;;  %v864_v10 = vpop.f32.mrf.mxu3 }
 0x3ac   : > { %1522 = vmatpush.bf16.xpose.msra.mxu3 %v2966_v47  ;;  %v2020_v6 = vpop.eup %2019  ;;  %2031 = vpow2.f32 %v1366_v12  ;;  %v3018_v63 = vadd.f32 %v864_v10, %v851_v58 }
 0x3ad   : > { %v2022_v55 = vpop.eup %2021 }
 0x3ae   : > { %v2024_v29 = vpop.eup %2023  ;;  %v3010_v2 = vpack.c.bf16 %v2018_v18, %v2022_v55  ;;  %v3016_v62 = vpop.xlane.xlu2 %1261 }
 0x3af   : > { %v3012_v59 = vpack.c.bf16 %v2020_v6, %v2024_v29  ;;  %v2026_v16 = vpop.eup %2025  ;;  %v1283_v60 = vpop.xlane.xlu1 %1282 }
 0x3b0   : > { %v2028_v43 = vpop.eup %2027  ;;  %v853_v61 = vpop.f32.mrf.mxu2 }
 0x3b1   : > { %v2030_v54 = vpop.eup %2029 }
 0x3b2   : > { %v2032_v57 = vpop.eup %2031  ;;  %v3020_v4 = vpack.c.bf16 %v2026_v16, %v2030_v54 }
 0x3b3   : > { %1510 = vmatpush.bf16.xpose.msra.mxu2 %v2976_v30  ;;  %v3022_v8 = vpack.c.bf16 %v2028_v43, %v2032_v57  ;;  %v866_v38 = vpop.f32.mrf.mxu3 }
 0x3b4   : > { %1523 = vmatpush.bf16.xpose.msra.mxu3 %v2980_v19  ;;  %v1346_v38 = vsub.f32 %v2852_v23, %v1283_v60  ;;  %v1345_v23 = vsub.f32 %v2848_v26, %v3008_v53  ;;  %v1342_v26 = vsub.f32 %v2836_v0, %v3006_v11 }
 0x3b9   : > { %v1196_v21 = vpop.xlane.xlu2 %1195  ;;  %v3026_v18 = vpop.xlane.xlu1 %1264 }
 0x3ba   : > { %v1288_v46 = vsub.f32 %v3374_v9, %v1196_v21  ;;  %v1289_v6 = vsub.f32 %v3373_v27, %v1196_v21  ;;  %v1344_v27 = vsub.f32 %v2844_v42, %v3008_v53  ;;  %v3402_v53 = vld [vmem:[#allocation24_spill] sm:$0xff] }
 0x3bb   : > { %1511 = vmatpush.bf16.xpose.msra.mxu2 %v2996_v31 }
 0x3bc   : > { %1524 = vmatpush.bf16.xpose.msra.mxu3 %v3000_v22  ;;  %v1356_v29 = vmul.f32 1.442695, %v1288_v46  ;;  %v1358_v10 = vmul.f32 1.442695, %v1289_v6 }
 0x3be   : > { %2033 = vpow2.f32 %v1356_v29 }
 0x3bf   : > { %2035 = vpow2.f32 %v1358_v10 }
 0x3c1   : > { %v3030_v12 = vpop.xlane.xlu2 %1255  ;;  %v1199_v55 = vpop.xlane.xlu1 %1198 }
 0x3c2   : > { %v1290_v16 = vsub.f32 %v3376_v17, %v1199_v55  ;;  %v1291_v58 = vsub.f32 %v3375_v24, %v1199_v55  ;;  %v1347_v17 = vsub.f32 %v2856_v39, %v1283_v60  ;;  %v1468_v55 = vmul.f32 1.442695, %v1344_v27 }
 0x3c3   : > { %1512 = vmatpush.bf16.xpose.msra.mxu2 %v3010_v2 }
 0x3c4   : > { %1525 = vmatpush.bf16.xpose.msra.mxu3 %v3012_v59  ;;  %v1360_v43 = vmul.f32 1.442695, %v1290_v16  ;;  %v1362_v54 = vmul.f32 1.442695, %v1291_v58  ;;  %v2034_v61 = vpop.eup %2033  ;;  %v1472_v58 = vmul.f32 1.442695, %v1346_v38  ;;  %v1341_v38 = vsub.f32 %v3402_v53, %v2992_v52 }
 0x3c5   : > { %v2036_v21 = vpop.eup %2035  ;;  %v1474_v42 = vmul.f32 1.442695, %v1347_v17 }
 0x3c6   : > { %2037 = vpow2.f32 %v1360_v43  ;;  %v1462_v0 = vmul.f32 1.442695, %v1341_v38  ;;  %v3403_v38 = vld [vmem:[#allocation21_spill] sm:$0xff] }
 0x3c7   : > { %2039 = vpow2.f32 %v1362_v54 }
 0x3c8   : > { %2041 = vpow2.f32 %v1468_v55 }
 0x3c9   : > { %v3034_v57 = vpop.xlane.xlu1 %1258  ;;  %2043 = vpow2.f32 %v1472_v58 }
 0x3ca   : > { %v1190_v9 = vpop.xlane.xlu2 %1189  ;;  %2045 = vpow2.f32 %v1474_v42 }
 0x3cb   : > { %1513 = vmatpush.bf16.xpose.msra.mxu2 %v3020_v4  ;;  %v1284_v46 = vsub.f32 %v3378_v28, %v1190_v9  ;;  %v1285_v29 = vsub.f32 %v3377_v40, %v1190_v9  ;;  %v1340_v9 = vsub.f32 %v2827_v50, %v2992_v52  ;;  %v1464_v50 = vmul.f32 1.442695, %v1342_v26 }
 0x3cc   : > { %1526 = vmatpush.bf16.xpose.msra.mxu3 %v3022_v8  ;;  %v2038_v24 = vpop.eup %2037  ;;  %v1334_v26 = vsub.f32 %v2795_v34, %v3026_v18 }
 0x3cd   : > { %v2040_v6 = vpop.eup %2039  ;;  %v3042_v16 = vpack.c.bf16 %v2038_v24, %v2034_v61  ;;  %v1348_v39 = vmul.f32 1.442695, %v1284_v46  ;;  %v1350_v40 = vmul.f32 1.442695, %v1285_v29  ;;  %v1470_v61 = vmul.f32 1.442695, %v1345_v23 }
 0x3ce   : > { %v3044_v10 = vpack.c.bf16 %v2040_v6, %v2036_v21  ;;  %v1460_v17 = vmul.f32 1.442695, %v1340_v9 }
 0x3cf   : > { %2047 = vpow2.f32 %v1348_v39 }
 0x3d0   : > { %2049 = vpow2.f32 %v1350_v40 }
 0x3d3   : > { %1514 = vmatpush.bf16.xpose.msra.mxu2 %v3042_v16 }
 0x3d4   : > { %1527 = vmatpush.bf16.xpose.msra.mxu3 %v3044_v10 }
 0x3da   : > { %v1193_v43 = vpop.xlane.xlu1 %1192 }
 0x3db   : > { %v1286_v28 = vsub.f32 %v3380_v20, %v1193_v43  ;;  %v1287_v60 = vsub.f32 %v3379_v13, %v1193_v43  ;;  %v1343_v20 = vsub.f32 %v2840_v51, %v3006_v11  ;;  %v2042_v13 = vpop.eup %2041 }
 0x3dc   : > { %v2044_v21 = vpop.eup %2043 }
 0x3dd   : > { %v1352_v54 = vmul.f32 1.442695, %v1286_v28  ;;  %v1354_v27 = vmul.f32 1.442695, %v1287_v60  ;;  %v2046_v24 = vpop.eup %2045  ;;  %v1466_v6 = vmul.f32 1.442695, %v1343_v20  ;;  %v3064_v39 = vpack.c.bf16 %v2044_v21, %v2042_v13 }
 0x3de   : > { %v2048_v46 = vpop.eup %2047  ;;  %v1335_v13 = vsub.f32 %v2798_v15, %v3026_v18  ;;  %v1332_v21 = vsub.f32 %v3403_v38, %v3016_v62 }
 0x3df   : > { %2051 = vpow2.f32 %v1352_v54  ;;  %v2050_v29 = vpop.eup %2049 }
 0x3e0   : > { %2053 = vpow2.f32 %v1354_v27  ;;  %v1450_v15 = vmul.f32 1.442695, %v1335_v13  ;;  %v1444_v18 = vmul.f32 1.442695, %v1332_v21 }
 0x3e1   : > { %2055 = vpow2.f32 %v1470_v61 }
 0x3e2   : > { %2057 = vpow2.f32 %v1460_v17 }
 0x3e3   : > { %2059 = vpow2.f32 %v1464_v50  ;;  %v3404_v50 = vld [vmem:[#allocation22_spill] sm:$0xff] }
 0x3e4   : > { %2061 = vpow2.f32 %v1466_v6  ;;  %v1448_v6 = vmul.f32 1.442695, %v1334_v26 }
 0x3e5   : > { %v877_v55 = vpop.f32.mrf.mxu2  ;;  %v2052_v42 = vpop.eup %2051  ;;  %2063 = vpow2.f32 %v1462_v0 }
 0x3e6   : > { %v890_v58 = vpop.f32.mrf.mxu3  ;;  %v2054_v11 = vpop.eup %2053  ;;  %v3060_v43 = vpack.c.bf16 %v2052_v42, %v2048_v46  ;;  %v1333_v46 = vsub.f32 %v3404_v50, %v3016_v62  ;;  %v1331_v62 = vsub.f32 %v2768_v1, %v3034_v57 }
 0x3e7   : > { %v891_v51 = vadd.f32 %v890_v58, %v877_v55  ;;  %v2056_v52 = vpop.eup %2055  ;;  %v3062_v23 = vpack.c.bf16 %v2054_v11, %v2050_v29  ;;  %v1330_v29 = vsub.f32 %v2761_v7, %v3034_v57  ;;  %v1253_v0 = vpop.xlane.xlu1 %1252  ;;  %v1329_v58 = vsub.f32 %v2748_v45, %v3030_v12  ;;  %v231_v11 = vld [vmem:[%s2162_s20 + $0x58] sm:$0xff] }
 0x3e8   : > { %1515 = vmatpush.bf16.xpose.msra.mxu2 %v3060_v43  ;;  %v3067_v28 = vpack.c.bf16 %v2046_v24, %v2056_v52  ;;  %v2058_v60 = vpop.eup %2057  ;;  %v1446_v55 = vmul.f32 1.442695, %v1333_v46  ;;  %v1250_v42 = vpop.xlane.xlu2 %1249  ;;  %v3103_v1 = vpack.c.bf16 %v231_v11, %v231_v11  ;;  %v1442_v57 = vmul.f32 1.442695, %v1331_v62 }
 0x3e9   : > { %2065 = vrcp.f32 %v891_v51  ;;  %1528 = vmatpush.bf16.xpose.msra.mxu3 %v3062_v23  ;;  %v2060_v54 = vpop.eup %2059  ;;  %v230_v51 = vld [vmem:[%s2162_s20 + $0x50] sm:$0xff]  ;;  %v1440_v52 = vmul.f32 1.442695, %v1330_v29  ;;  %v1438_v45 = vmul.f32 1.442695, %v1329_v58  ;;  %v1324_v26 = vsub.f32 %v2713_v14, %v1250_v42  ;;  %v3405_v29 = vld [vmem:[#allocation47_spill] sm:$0xff] }
 0x3ea   : > { %v2062_v9 = vpop.eup %2061  ;;  %v3076_v53 = vpack.c.bf16 %v2060_v54, %v2058_v60  ;;  %2067 = vpow2.f32 %v1448_v6  ;;  %v3101_v7 = vpack.c.bf16 %v230_v51, %v230_v51  ;;  %v1326_v54 = vsub.f32 %v2731_v48, %v1253_v0 }
 0x3eb   : > { %v2064_v61 = vpop.eup %2063  ;;  %2069 = vpow2.f32 %v1450_v15  ;;  %v1325_v13 = vsub.f32 %v2716_v25, %v1250_v42 }
 0x3ec   : > { %v3080_v24 = vpack.c.bf16 %v2062_v9, %v2064_v61  ;;  %2071 = vpow2.f32 %v1444_v18  ;;  %v1327_v9 = vsub.f32 %v2734_v37, %v1253_v0  ;;  %v1432_v21 = vmul.f32 1.442695, %v1326_v54  ;;  %v3408_v54 = vld [vmem:[#allocation46_spill] sm:$0xff] }
 0x3ed   : > { %v879_v40 = vpop.f32.mrf.mxu2  ;;  %2073 = vpow2.f32 %v1446_v55  ;;  %v1428_v37 = vmul.f32 1.442695, %v1324_v26  ;;  %v1430_v6 = vmul.f32 1.442695, %v1325_v13  ;;  %v3409_v26 = vld [vmem:[#allocation43_spill] sm:$0xff] }
 0x3ee   : > { %v892_v27 = vpop.f32.mrf.mxu3  ;;  %2075 = vpow2.f32 %v1440_v52 }
 0x3ef   : > { %v2066_v20 = vpop.eup %2065  ;;  %1516 = vmatmul.bf16.vlgmr.msra.gmra.mxu2 %v3101_v7  ;;  %2077 = vpow2.f32 %v1442_v57  ;;  %v1247_v38 = vpop.xlane.xlu1 %1246 }
 0x3f0   : > { %1534 = vmatpush.bf16.xpose.msrb.mxu2 %v3064_v39  ;;  %v922_v17 = vperm.slane %v2066_v20, 0  ;;  %v2068_v60 = vpop.eup %2067  ;;  %1529 = vmatmul.bf16.vlgmr.msra.gmra.mxu3 %v3103_v1  ;;  %v1244_v48 = vpop.xlane.xlu2 %1243  ;;  %v1322_v14 = vsub.f32 %v2698_v49, %v1247_v38  ;;  %v1323_v25 = vsub.f32 %v2700_v33, %v1247_v38 }
 0x3f1   : > { %1547 = vmatpush.bf16.xpose.msrb.mxu3 %v3067_v28  ;;  %v1320_v62 = vsub.f32 %v3405_v29, %v1244_v48 }
 0x3f2   : > { %v3086_v34 = vmul.f32 %v922_v17, %v2952_v35  ;;  %v1328_v35 = vsub.f32 %v2745_v36, %v3030_v12  ;;  %v2070_v36 = vpop.eup %2069  ;;  %v1434_v17 = vmul.f32 1.442695, %v1327_v9  ;;  %v1424_v42 = vmul.f32 1.442695, %v1322_v14 }
 0x3f3   : > { %v2072_v12 = vpop.eup %2071  ;;  %v1426_v49 = vmul.f32 1.442695, %v1323_v25  ;;  %v1420_v52 = vmul.f32 1.442695, %v1320_v62 }
 0x3f4   : > { %v1436_v40 = vmul.f32 1.442695, %v1328_v35  ;;  %v2074_v27 = vpop.eup %2073  ;;  %v3109_v61 = vpack.c.bf16 %v2068_v60, %v2072_v12  ;;  %v3406_v35 = vld [vmem:[#allocation48_spill] sm:$0xff] }
 0x3f5   : > { %v3112_v20 = vpack.c.bf16 %v2070_v36, %v2074_v27  ;;  %v2076_v50 = vpop.eup %2075  ;;  %v1321_v58 = vsub.f32 %v3406_v35, %v1244_v48  ;;  %v3407_v36 = vld [vmem:[#allocation45_spill] sm:$0xff] }
 0x3f6   : > { %2079 = vpow2.f32 %v1436_v40  ;;  %v2078_v46 = vpop.eup %2077 }
 0x3f7   : > { %2081 = vpow2.f32 %v1438_v45  ;;  %v1241_v51 = vpop.xlane.xlu1 %1240  ;;  %v1422_v57 = vmul.f32 1.442695, %v1321_v58 }
 0x3f8   : > { %1535 = vmatpush.bf16.xpose.msrb.mxu2 %v3076_v53  ;;  %2083 = vpow2.f32 %v1432_v21  ;;  %v1238_v60 = vpop.xlane.xlu2 %1237  ;;  %v1318_v45 = vsub.f32 %v3407_v36, %v1241_v51  ;;  %v1319_v27 = vsub.f32 %v3408_v54, %v1241_v51  ;;  %v3410_v21 = vld [vmem:[#allocation44_spill] sm:$0xff] }
 0x3f9   : > { %1548 = vmatpush.bf16.xpose.msrb.mxu3 %v3080_v24  ;;  %2085 = vpow2.f32 %v1434_v17  ;;  %v1316_v13 = vsub.f32 %v3409_v26, %v1238_v60  ;;  %v1317_v48 = vsub.f32 %v3410_v21, %v1238_v60 }
 0x3fa   : > { %2087 = vpow2.f32 %v1428_v37  ;;  %v1416_v17 = vmul.f32 1.442695, %v1318_v45 }
 0x3fb   : > { %2089 = vpow2.f32 %v1430_v6 }
 0x3fc   : > { %v2080_v15 = vpop.eup %2079  ;;  %2091 = vpow2.f32 %v1424_v42 }
 0x3fd   : > { %v2082_v18 = vpop.eup %2081  ;;  %v3119_v55 = vpack.c.bf16 %v2076_v50, %v2080_v15  ;;  %2093 = vpow2.f32 %v1426_v49  ;;  %v1418_v50 = vmul.f32 1.442695, %v1319_v27  ;;  %v1414_v15 = vmul.f32 1.442695, %v1317_v48  ;;  %v1671_v27 = vld [vmem:[%s212_s30] sm:$0xff] }
 0x3fe   : > { %v3122_v0 = vpack.c.bf16 %v2078_v46, %v2082_v18  ;;  %v2084_v11 = vpop.eup %2083  ;;  %2095 = vpow2.f32 %v1420_v52  ;;  %v1412_v46 = vmul.f32 1.442695, %v1316_v13 }
 0x3ff   : > { %v2086_v33 = vpop.eup %2085  ;;  %2097 = vpow2.f32 %v1422_v57 }
 0x400   : > { %1536 = vmatpush.bf16.xpose.msrb.mxu2 %v2986_v5  ;;  %v2088_v40 = vpop.eup %2087  ;;  %2099 = vpow2.f32 %v1416_v17  ;;  %v1673_v17 = vld [vmem:[%s212_s30 + $0x10] sm:$0xff] }
 0x401   : > { %1549 = vmatpush.bf16.xpose.msrb.mxu3 %v2988_v41  ;;  %v2090_v12 = vpop.eup %2089  ;;  %v3129_v9 = vpack.c.bf16 %v2084_v11, %v2088_v40  ;;  %2101 = vpow2.f32 %v1418_v50 }
 0x402   : > { %v3132_v38 = vpack.c.bf16 %v2086_v33, %v2090_v12  ;;  %v2092_v37 = vpop.eup %2091  ;;  %2103 = vpow2.f32 %v1412_v46  ;;  %v1672_v46 = vld [vmem:[%s212_s30 + $0x8] sm:$0xff] }
 0x403   : > { %v2094_v6 = vpop.eup %2093  ;;  %2105 = vpow2.f32 %v1414_v15 }
 0x404   : > { %v2096_v14 = vpop.eup %2095 }
 0x405   : > { %v2098_v18 = vpop.eup %2097  ;;  %v1494_v25 = vpack.c.bf16 %v2092_v37, %v2096_v14 }
 0x406   : > { %v1495_v29 = vpack.c.bf16 %v2094_v6, %v2098_v18  ;;  %v2100_v62 = vpop.eup %2099  ;;  %v1674_v18 = vld [vmem:[%s212_s30 + $0x18] sm:$0xff] }
 0x407   : > { %v2102_v58 = vpop.eup %2101 }
 0x408   : > { %1537 = vmatpush.bf16.xpose.msrb.mxu2 %v3109_v61  ;;  %v2104_v49 = vpop.eup %2103 }
 0x409   : > { %1550 = vmatpush.bf16.xpose.msrb.mxu3 %v3112_v20  ;;  %v2106_v11 = vpop.eup %2105  ;;  %v1492_v52 = vpack.c.bf16 %v2100_v62, %v2104_v49 }
 0x40a   : > { %v1493_v33 = vpack.c.bf16 %v2102_v58, %v2106_v11 }
 0x410   : > { %1538 = vmatpush.bf16.xpose.msrb.mxu2 %v3119_v55 }
 0x411   : > { %1551 = vmatpush.bf16.xpose.msrb.mxu3 %v3122_v0 }
 0x418   : > { %1539 = vmatpush.bf16.xpose.msrb.mxu2 %v3129_v9 }
 0x419   : > { %1552 = vmatpush.bf16.xpose.msrb.mxu3 %v3132_v38 }
 0x420   : > { %1540 = vmatpush.bf16.xpose.msrb.mxu2 %v1494_v25 }
 0x421   : > { %1553 = vmatpush.bf16.xpose.msrb.mxu3 %v1495_v29 }
 0x425   : > { %v903_v35 = vpop.f32.mrf.mxu2 }
 0x426   : > { %v916_v42 = vpop.f32.mrf.mxu3 }
 0x427   : > { %v917_v51 = vadd.f32 %v916_v42, %v903_v35 }
 0x428   : > { %1541 = vmatpush.bf16.xpose.msrb.mxu2 %v1492_v52 }
 0x429   : > { %2107 = vrcp.f32 %v917_v51  ;;  %1554 = vmatpush.bf16.xpose.msrb.mxu3 %v1493_v33 }
 0x42d   : > { %v905_v57 = vpop.f32.mrf.mxu2 }
 0x42e   : > { %v918_v60 = vpop.f32.mrf.mxu3 }
 0x42f   : > { %v2108_v40 = vpop.eup %2107  ;;  %1542 = vmatmul.bf16.vlgmr.msrb.gmra.mxu2 %v3101_v7 }
 0x430   : > { %1560 = vmatpush.bf16.xpose.msra.mxu2 %v2940_v44  ;;  %v923_v36 = vperm.slane %v2108_v40, 0  ;;  %1555 = vmatmul.bf16.vlgmr.msrb.gmra.mxu3 %v3103_v1 }
 0x431   : > { %1573 = vmatpush.bf16.xpose.msra.mxu3 %v2945_v3 }
 0x432   : > { %v3141_v45 = vmul.f32 %v923_v36, %v3018_v63 }
 0x438   : > { %1561 = vmatpush.bf16.xpose.msra.mxu2 %v2961_v56 }
 0x439   : > { %1574 = vmatpush.bf16.xpose.msra.mxu3 %v2966_v47 }
 0x440   : > { %1562 = vmatpush.bf16.xpose.msra.mxu2 %v2976_v30 }
 0x441   : > { %1575 = vmatpush.bf16.xpose.msra.mxu3 %v2980_v19 }
 0x448   : > { %1563 = vmatpush.bf16.xpose.msra.mxu2 %v2996_v31 }
 0x449   : > { %1576 = vmatpush.bf16.xpose.msra.mxu3 %v3000_v22 }
 0x450   : > { %1564 = vmatpush.bf16.xpose.msra.mxu2 %v3010_v2 }
 0x451   : > { %1577 = vmatpush.bf16.xpose.msra.mxu3 %v3012_v59 }
 0x458   : > { %1565 = vmatpush.bf16.xpose.msra.mxu2 %v3020_v4 }
 0x459   : > { %1578 = vmatpush.bf16.xpose.msra.mxu3 %v3022_v8 }
 0x460   : > { %1566 = vmatpush.bf16.xpose.msra.mxu2 %v3042_v16 }
 0x461   : > { %1579 = vmatpush.bf16.xpose.msra.mxu3 %v3044_v10 }
 0x468   : > { %1567 = vmatpush.bf16.xpose.msra.mxu2 %v3060_v43 }
 0x469   : > { %1580 = vmatpush.bf16.xpose.msra.mxu3 %v3062_v23 }
 0x46f   : > { %1568 = vmatmul.bf16.vlgmr.msra.gmra.mxu2 %v3391_v32 }
 0x470   : > { %1586 = vmatpush.bf16.xpose.msrb.mxu2 %v3064_v39  ;;  %1581 = vmatmul.bf16.vlgmr.msra.gmra.mxu3 %v3391_v32  ;;  %v1623_v39 = vld [vmem:[%s3199_s2 + $0x8] sm:$0xff] }
 0x471   : > { %1599 = vmatpush.bf16.xpose.msrb.mxu3 %v3067_v28  ;;  %v1622_v28 = vld [vmem:[%s3199_s2] sm:$0xff] }
 0x472   : > { %v1517_v44 = vpop.f32.mrf.mxu2 }
 0x473   : > { %v1530_v3 = vpop.f32.mrf.mxu3 }
 0x474   : > { %v1531_v56 = vadd.f32 %v1530_v3, %v1517_v44 }
 0x478   : > { %1587 = vmatpush.bf16.xpose.msrb.mxu2 %v3076_v53  ;;  %v2122_v53 = vmov 0  }
 0x479   : > { %1600 = vmatpush.bf16.xpose.msrb.mxu3 %v3080_v24  ;;  %1847 = vset.pattern.permute.xlu1 %v2122_v53 }
 0x47a   : > { %v1519_v47 = vpop.f32.mrf.mxu2  ;;  %1846 = vset.pattern.permute.xlu2 %v2122_v53  ;;  %1631 = vperm.xlu1 %1847, %v1623_v39  }
 0x47b   : > { %v1532_v30 = vpop.f32.mrf.mxu3  ;;  %1626 = vperm.xlu2 %1846, %v1622_v28   ;;  %1848 = vset.pattern.permute.xlu0 %v2122_v53 }
 0x480   : > { %1588 = vmatpush.bf16.xpose.msrb.mxu2 %v2986_v5 }
 0x481   : > { %1601 = vmatpush.bf16.xpose.msrb.mxu3 %v2988_v41 }
 0x488   : > { %1589 = vmatpush.bf16.xpose.msrb.mxu2 %v3109_v61 }
 0x489   : > { %1602 = vmatpush.bf16.xpose.msrb.mxu3 %v3112_v20 }
 0x490   : > { %1590 = vmatpush.bf16.xpose.msrb.mxu2 %v3119_v55 }
 0x491   : > { %1603 = vmatpush.bf16.xpose.msrb.mxu3 %v3122_v0 }
 0x498   : > { %1591 = vmatpush.bf16.xpose.msrb.mxu2 %v3129_v9 }
 0x499   : > { %1604 = vmatpush.bf16.xpose.msrb.mxu3 %v3132_v38 }
 0x4a0   : > { %1592 = vmatpush.bf16.xpose.msrb.mxu2 %v1494_v25 }
 0x4a1   : > { %1605 = vmatpush.bf16.xpose.msrb.mxu3 %v1495_v29 }
 0x4a8   : > { %1593 = vmatpush.bf16.xpose.msrb.mxu2 %v1492_v52 }
 0x4a9   : > { %1606 = vmatpush.bf16.xpose.msrb.mxu3 %v1493_v33 }
 0x4af   : > { %1594 = vmatmul.bf16.vlgmr.msrb.gmra.mxu2 %v3391_v32 }
 0x4b0   : > { %1607 = vmatmul.bf16.vlgmr.msrb.gmra.mxu3 %v3391_v32  ;;  %v1834_v32 = vld [vmem:[%s3198_s1] sm:$0xff] }
 0x4b2   : > { %v1543_v19 = vpop.f32.mrf.mxu2 }
 0x4b3   : > { %v1556_v5 = vpop.f32.mrf.mxu3 }
 0x4b4   : > { %v1557_v41 = vadd.f32 %v1556_v5, %v1543_v19 }
 0x4ba   : > { %v1545_v31 = vpop.f32.mrf.mxu2 }
 0x4bb   : > { %v1558_v22 = vpop.f32.mrf.mxu3 }
 0x4d5   : > { %v1627_v9 = vpop.permute.xlu2 %1626 }
 0x4ec   : > { %v1632_v13 = vpop.permute.xlu1 %1631 }
 0x4f2   : > { %v1569_v2 = vpop.f32.mrf.mxu2 }
 0x4f3   : > { %v1582_v59 = vpop.f32.mrf.mxu3 }
 0x4f4   : > { %v1583_v63 = vadd.f32 %v1582_v59, %v1569_v2 }
 0x4f6   : > { %2109 = vrcp.f32 %v1583_v63 }
 0x4fa   : > { %v1571_v4 = vpop.f32.mrf.mxu2 }
 0x4fb   : > { %v1584_v8 = vpop.f32.mrf.mxu3 }
 0x4fc   : > { %v2110_v16 = vpop.eup %2109 }
 0x4fd   : > { %v1614_v10 = vperm.slane %v2110_v16, 0 }
 0x4ff   : > { %v1616_v43 = vmul.f32 %v1614_v10, %v1531_v56 }
 0x501   : > { %v1620_v23 = vpack.c.bf16 %v1616_v43, %v3086_v34 }
 0x503   : > { %1650 = vmatpush.bf16.msra.mxu0 %v1620_v23 }
 0x506   : > { %1828 = vmatmul.msk.bf16.vlgmr.msra.gmra.mxu0 %vm1639_vm2, %v1834_v32 }
 0x532   : > { %v1595_v24 = vpop.f32.mrf.mxu2 }
 0x533   : > { %v1608_v34 = vpop.f32.mrf.mxu3 }
 0x534   : > { %v1609_v7 = vadd.f32 %v1608_v34, %v1595_v24 }
 0x536   : > { %2111 = vrcp.f32 %v1609_v7 }
 0x53a   : > { %v1597_v1 = vpop.f32.mrf.mxu2 }
 0x53b   : > { %v1610_v61 = vpop.f32.mrf.mxu3 }
 0x53c   : > { %v2112_v20 = vpop.eup %2111 }
 0x53d   : > { %v1615_v55 = vperm.slane %v2112_v20, 0 }
 0x53f   : > { %v1617_v0 = vmul.f32 %v1615_v55, %v1557_v41 }
 0x541   : > { %v1621_v12 = vpack.c.bf16 %v1617_v0, %v3141_v45 }
 0x543   : > { %1664 = vmatpush.bf16.msra.mxu1 %v1621_v12 }
 0x546   : > { %1829 = vmatmul.msk.bf16.vlgmr.msra.gmra.mxu1 %vm1639_vm2, %v1834_v32 }
 0x583   : > { %v1652_v54 = vpop.f32.mrf.mxu0 }
 0x584   : > { %v1653_v26 = vadd.f32 %v1652_v54, %v1627_v9 }
 0x586   : > { %v1675_v48 = vadd.f32 %v1671_v27, %v1653_v26 }
 0x588   : > { %1679 = vst [vmem:[%s217_s7] sm:$0xff] %v1675_v48 }
 0x58b   : > { %v1654_v38 = vpop.f32.mrf.mxu0 }
 0x58c   : > { %v1655_v21 = vadd.f32 %v1654_v38, %v1632_v13 }
 0x58e   : > { %v1677_v50 = vadd.f32 %v1673_v17, %v1655_v21 }
 0x590   : > { %1681 = vst [vmem:[%s217_s7 + $0x10] sm:$0xff] %v1677_v50 }
 0x5c3   : > { %v1666_v37 = vpop.f32.mrf.mxu1 }
 0x5c4   : > { %v1667_v6 = vadd.f32 %v1666_v37, %v1627_v9 }
 0x5c6   : > { %v1676_v15 = vadd.f32 %v1672_v46, %v1667_v6 }
 0x5c8   : > { %1680 = vst [vmem:[%s217_s7 + $0x8] sm:$0xff] %v1676_v15 }
 0x5cb   : > { %v1668_v14 = vpop.f32.mrf.mxu1 }
 0x5cc   : > { %v1669_v25 = vadd.f32 %v1668_v14, %v1632_v13 }
 0x5ce   : > { %v1678_v29 = vadd.f32 %v1674_v18, %v1669_v25 }
 0x5d0   : > { %1682 = vst [vmem:[%s217_s7 + $0x18] sm:$0xff] %v1678_v29 }
 0x5d1 PF: > { %s14_s15 = sadd.s32 1, %s2119_s15  }
 0x5d2   : > { %p11_p4 = scmp.ge.s32.totalorder %s14_s15, 4  }
 0x5d4   :  { %13 = sbr.rel (!%p11_p4) target bundleno = 1 (0x1), region = 69 }

</bundles_post_ra>
